<compile_context>
chip_gen: v7x
topology: tpu7x:2x2x1
jax: 0.10.0
libtpu: 0.0.40
codegen_flags: <defaults>
</compile_context>

<pallas_src>
import functools

import jax
import jax.numpy as jnp
from jax.experimental import pallas as pl
from jax.experimental.pallas import tpu as pltpu

BN_EPS = 1e-5
# 48 MiB fits v7x's 64 MiB physical VMEM with headroom; v5e/v6e have 128 MiB.
VMEM_LIMIT_BYTES = 48 * 1024 * 1024


def _conv_taps(x_ref, w_ref, row0, *, th, w, cin, fuse_taps):
    """Conv output tile (th*w, Cout_pad) f32 for output rows [row0, row0+th).

    x_ref: (1, H+2, W+2, Cin) padded NHWC image, bf16, resident across H tiles.
    w_ref: (9*Cin, Cout_pad) bf16 when fuse_taps else (9, Cin, Cout_pad) bf16.
    """
    cout_p = w_ref.shape[-1]

    if fuse_taps:
        # Primary path: build the (th*w, 9*Cin) bf16 im2col tile in VMEM from
        # the resident image (3 aligned full-width band loads, in-register
        # window slices), then ONE MXU matmul with K = 9*Cin.
        pieces = []
        for ki in range(3):
            band = x_ref[:, pl.ds(row0 + ki, th), :, :]          # (1, th, W+2, Cin)
            for kj in range(3):
                pieces.append(band[:, :, kj:kj + w, :])          # (1, th, W, Cin)
        patches = jnp.concatenate(pieces, axis=-1)               # (1, th, W, 9*Cin)
        patches = patches.reshape(th * w, 9 * cin)
        return jnp.dot(patches, w_ref[...],
                       preferred_element_type=jnp.float32)

    # Compatibility fallback: 32-bit staging slab + nine K=Cin matmuls
    # (previously validated lowering path; only used when the fused path
    # fails to lower on an older Mosaic toolchain).
    slab = x_ref[:, pl.ds(row0, th + 2), :, :].astype(jnp.float32)
    y = jnp.zeros((th * w, cout_p), dtype=jnp.float32)
    for ki in range(3):
        for kj in range(3):
            piece = slab[:, ki:ki + th, kj:kj + w, :].reshape(th * w, cin)
            wk = w_ref[3 * ki + kj]                              # (Cin, Cout_pad)
            y = y + jnp.dot(piece.astype(jnp.bfloat16), wk,
                            preferred_element_type=jnp.float32)
    return y


def _conv_stats_kernel(x_ref, w_ref, sum_ref, sq_ref, *, th, w, cin, fuse_taps):
    """Pass 1: per-(image, H-tile) channel sum / sum-of-squares of the conv."""
    row0 = pl.program_id(1) * th
    y = _conv_taps(x_ref, w_ref, row0, th=th, w=w, cin=cin, fuse_taps=fuse_taps)
    # No cross-tile accumulation: stats are written per (ni, hi) block so both
    # grid axes stay "parallel"; the tiny reduction finishes in the wrapper.
    sum_ref[...] = jnp.sum(y, axis=0, keepdims=True)[None]       # (1, 1, Cout_pad)
    sq_ref[...] = jnp.sum(y * y, axis=0, keepdims=True)[None]


def _conv_apply_kernel(x_ref, w_ref, shift_ref, o_ref, *, th, w, cin, fuse_taps):
    """Pass 2: recompute conv with the scale-folded weight, add shift, store."""
    row0 = pl.program_id(1) * th
    y = _conv_taps(x_ref, w_ref, row0, th=th, w=w, cin=cin, fuse_taps=fuse_taps)
    y = y + shift_ref[...]                                       # (th*w,C)+(1,C)
    o_ref[...] = y.reshape(o_ref.shape).astype(o_ref.dtype)


def _choose_th(h, w, hp, wp, cin, cout_pad):
    """Rows-per-tile: target ~1024 output rows per M-tile within the VMEM budget."""
    def vmem_bytes(t):
        img = 2 * hp * wp * cin * 2                  # resident padded image, x2 buffers, bf16
        wts = 2 * 9 * cin * cout_pad * 2             # weights, x2 buffers, bf16
        outb = 2 * t * w * cout_pad * 4              # pass-2 output tile, x2 buffers
        live = t * w * (9 * cin * 2 + 2 * cout_pad * 4)   # im2col + f32 acc/epilogue temps
        return img + wts + outb + live

    budget = (3 * VMEM_LIMIT_BYTES) // 4             # leave headroom for the compiler
    th = min(h, max(1, 1024 // max(w, 1)))
    while th > 1 and (h % th or vmem_bytes(th) > budget):
        th -= 1
    return th


def conv_bn2d(x, conv_weight, bn_gamma, bn_beta, *, eps=BN_EPS,
              fuse_taps=True, return_nhwc=False):
    """x: (N, Cin, H, W) f32; conv_weight: (Cout, Cin, 3, 3); returns (N, Cout, H, W)."""
    n, cin, h, w = x.shape
    cout, cin_w, kh, kw = conv_weight.shape
    assert (kh, kw) == (3, 3) and cin_w == cin, "kernel specialized to 3x3, stride 1, pad 1"

    # Lane-dense output channels (128-granular; 256-granular only above 128).
    if cout <= 128:
        cout_pad = 128
    else:
        cout_pad = pl.cdiv(cout, 256) * 256

    hp, wp = h + 2, w + 2
    th = _choose_th(h, w, hp, wp, cin, cout_pad)
    num_h = h // th

    # NCHW -> NHWC at the boundary only; spatial zero-pad; bf16 MXU operands.
    x_nhwc = jnp.transpose(x, (0, 2, 3, 1))
    xp = jnp.pad(x_nhwc, ((0, 0), (1, 1), (1, 1), (0, 0))).astype(jnp.bfloat16)

    # Weight master copy (3,3,Cin,Cout_pad) f32; flatten order matches the
    # in-kernel (ki, kj, cin) im2col channel order.  Padded Cout columns are
    # zero so padded lanes never alias real channels.
    w_f32 = jnp.transpose(conv_weight.astype(jnp.float32), (2, 3, 1, 0))
    w_f32 = jnp.pad(w_f32, ((0, 0), (0, 0), (0, 0), (0, cout_pad - cout)))

    def kernel_weight(wf):
        wb = wf.astype(jnp.bfloat16)
        if fuse_taps:
            return wb.reshape(9 * cin, cout_pad)     # single K = 9*Cin operand
        return wb.reshape(9, cin, cout_pad)          # per-tap operand (fallback)

    x_spec = pl.BlockSpec((1, hp, wp, cin), lambda ni, hi: (ni, 0, 0, 0))
    if fuse_taps:
        w_spec = pl.BlockSpec((9 * cin, cout_pad), lambda ni, hi: (0, 0))
    else:
        w_spec = pl.BlockSpec((9, cin, cout_pad), lambda ni, hi: (0, 0, 0))

    kparams = pltpu.CompilerParams(
        dimension_semantics=("parallel", "parallel"),   # both axes shard across TCs
        vmem_limit_bytes=VMEM_LIMIT_BYTES,
    )
    conv_flops = 2 * n * h * w * (9 * cin) * cout_pad
    w_bytes = 9 * cin * cout_pad * 2

    # ---------------- pass 1: conv -> per-tile BN statistics ----------------
    csum, csq = pl.pallas_call(
        functools.partial(_conv_stats_kernel, th=th, w=w, cin=cin,
                          fuse_taps=fuse_taps),
        grid=(n, num_h),
        in_specs=[x_spec, w_spec],
        out_specs=(
            pl.BlockSpec((1, 1, cout_pad), lambda ni, hi: (ni, hi, 0)),
            pl.BlockSpec((1, 1, cout_pad), lambda ni, hi: (ni, hi, 0)),
        ),
        out_shape=(
            jax.ShapeDtypeStruct((n, num_h, cout_pad), jnp.float32),
            jax.ShapeDtypeStruct((n, num_h, cout_pad), jnp.float32),
        ),
        compiler_params=kparams,
        cost_estimate=pl.CostEstimate(
            flops=conv_flops, transcendentals=0,
            bytes_accessed=xp.size * 2 + w_bytes + 2 * n * num_h * cout_pad * 4),
    )(xp, kernel_weight(w_f32))

    # -------------- fold BN stats + affine into (weight scale, shift) --------------
    m_total = n * h * w
    ssum = jnp.sum(csum, axis=(0, 1))
    ssq = jnp.sum(csq, axis=(0, 1))
    mean = ssum / m_total
    # Biased variance (what PyTorch normalizes with); clamp guards the
    # E[y^2]-E[y]^2 cancellation in f32.
    var = jnp.maximum(ssq / m_total - mean * mean, 0.0)
    inv = jax.lax.rsqrt(var + eps)
    gamma_p = jnp.pad(bn_gamma.astype(jnp.float32), (0, cout_pad - cout))
    beta_p = jnp.pad(bn_beta.astype(jnp.float32), (0, cout_pad - cout))
    scale = gamma_p * inv                                   # folded into pass-2 weight
    shift = (beta_p - mean * scale).reshape(1, cout_pad)    # single add in the epilogue

    # ---------------- pass 2: recompute conv + apply folded BN ----------------
    out_nhwc = pl.pallas_call(
        functools.partial(_conv_apply_kernel, th=th, w=w, cin=cin,
                          fuse_taps=fuse_taps),
        grid=(n, num_h),
        in_specs=[x_spec, w_spec,
                  pl.BlockSpec((1, cout_pad), lambda ni, hi: (0, 0))],
        out_specs=pl.BlockSpec((1, th, w, cout_pad), lambda ni, hi: (ni, hi, 0, 0)),
        out_shape=jax.ShapeDtypeStruct((n, h, w, cout_pad), x.dtype),
        compiler_params=kparams,
        cost_estimate=pl.CostEstimate(
            flops=conv_flops, transcendentals=0,
            bytes_accessed=xp.size * 2 + w_bytes
                           + n * h * w * cout_pad * x.dtype.itemsize),
    )(xp, kernel_weight(w_f32 * scale[None, None, None, :]), shift)

    if return_nhwc:
        return out_nhwc[..., :cout]                  # NHWC, lane-friendly for a fused consumer
    out = out_nhwc[..., :cout]                       # drop padded channels
    return jnp.transpose(out, (0, 3, 1, 2))          # back to NCHW (module contract)


def _reference(x, conv_weight, bn_gamma, bn_beta, eps=BN_EPS):
    y = jax.lax.conv_general_dilated(
        x, conv_weight, window_strides=(1, 1), padding=((1, 1), (1, 1)),
        dimension_numbers=("NCHW", "OIHW", "NCHW"),
        preferred_element_type=jnp.float32)
    mean = jnp.mean(y, axis=(0, 2, 3), keepdims=True)
    var = jnp.mean((y - mean) ** 2, axis=(0, 2, 3), keepdims=True)
    g = bn_gamma.reshape(1, -1, 1, 1)
    b = bn_beta.reshape(1, -1, 1, 1)
    return (y - mean) * jax.lax.rsqrt(var + eps) * g + b


if __name__ == "__main__":
    key = jax.random.PRNGKey(0)
    kx, kwt = jax.random.split(key)

    N, Cin, Cout, H, W = 2, 4, 8, 16, 16
    x = jax.random.normal(kx, (N, Cin, H, W), dtype=jnp.float32)
    conv_weight = 0.1 * jax.random.normal(kwt, (Cout, Cin, 3, 3), dtype=jnp.float32)
    bn_gamma = jnp.ones((Cout,), dtype=jnp.float32)
    bn_beta = jnp.zeros((Cout,), dtype=jnp.float32)

    try:
        y = conv_bn2d(x, conv_weight, bn_gamma, bn_beta)
        jax.block_until_ready(y)
    except Exception:
        # Compatibility fallback: per-tap matmul formulation for toolchains whose
        # Mosaic lowering lacks unaligned lane concat / packed-bf16 window slices.
        y = conv_bn2d(x, conv_weight, bn_gamma, bn_beta, fuse_taps=False)
        jax.block_until_ready(y)

    assert y.shape == (N, Cout, H, W)

    # Sanity check against a pure-JAX reference (loose tol: bf16 MXU operands).
    y_ref = _reference(x, conv_weight, bn_gamma, bn_beta)
    err = float(jnp.max(jnp.abs(y - y_ref)))
    assert err < 0.1, f"max abs error vs reference too large: {err}"

    print("KERNEL_OK")
</pallas_src>

<mosaic_0001>
module attributes {stable_mosaic.version = 11 : i64} {
  func.func @_conv_stats_kernel(%arg0: i32, %arg1: i32, %arg2: memref<1x18x18x4xbf16, #tpu.memory_space<vmem>>, %arg3: memref<36x128xbf16, #tpu.memory_space<vmem>>, %arg4: memref<1x1x128xf32, #tpu.memory_space<vmem>>, %arg5: memref<1x1x128xf32, #tpu.memory_space<vmem>>) attributes {dimension_semantics = [#tpu.dimension_semantics<parallel>, #tpu.dimension_semantics<parallel>], iteration_bounds = array<i64: 2, 1>, scalar_prefetch = 0 : i64, scratch_operands = 0 : i64, tpu.core_type = #tpu.core_type<tc>, window_params = [{transform_indices = @transform_0, window_bounds = array<i64: 1, 18, 18, 4>}, {pipeline_mode = #tpu.pipeline_mode<synchronous>, transform_indices = @transform_1, window_bounds = array<i64: 36, 128>}, {transform_indices = @transform_2, window_bounds = array<i64: 1, 1, 128>}, {transform_indices = @transform_3, window_bounds = array<i64: 1, 1, 128>}]} {
    %c16_i32 = arith.constant 16 : i32
    %0 = arith.muli %arg1, %c16_i32 : i32
    %c0_i32 = arith.constant 0 : i32
    %1 = arith.addi %0, %c0_i32 : i32
    %c0 = arith.constant 0 : index
    %2 = arith.index_cast %1 : i32 to index
    %c0_0 = arith.constant 0 : index
    %c0_1 = arith.constant 0 : index
    %3 = vector.load %arg2[%c0, %2, %c0_0, %c0_1] : memref<1x18x18x4xbf16, #tpu.memory_space<vmem>>, vector<1x16x18x4xbf16>
    %4 = vector.extract_strided_slice %3 {offsets = [0, 0, 0, 0], sizes = [1, 16, 16, 4], strides = [1, 1, 1, 1]} : vector<1x16x18x4xbf16> to vector<1x16x16x4xbf16>
    %5 = vector.extract_strided_slice %3 {offsets = [0, 0, 1, 0], sizes = [1, 16, 16, 4], strides = [1, 1, 1, 1]} : vector<1x16x18x4xbf16> to vector<1x16x16x4xbf16>
    %6 = vector.extract_strided_slice %3 {offsets = [0, 0, 2, 0], sizes = [1, 16, 16, 4], strides = [1, 1, 1, 1]} : vector<1x16x18x4xbf16> to vector<1x16x16x4xbf16>
    %c1_i32 = arith.constant 1 : i32
    %7 = arith.addi %0, %c1_i32 : i32
    %c0_2 = arith.constant 0 : index
    %8 = arith.index_cast %7 : i32 to index
    %c0_3 = arith.constant 0 : index
    %c0_4 = arith.constant 0 : index
    %9 = vector.load %arg2[%c0_2, %8, %c0_3, %c0_4] : memref<1x18x18x4xbf16, #tpu.memory_space<vmem>>, vector<1x16x18x4xbf16>
    %10 = vector.extract_strided_slice %9 {offsets = [0, 0, 0, 0], sizes = [1, 16, 16, 4], strides = [1, 1, 1, 1]} : vector<1x16x18x4xbf16> to vector<1x16x16x4xbf16>
    %11 = vector.extract_strided_slice %9 {offsets = [0, 0, 1, 0], sizes = [1, 16, 16, 4], strides = [1, 1, 1, 1]} : vector<1x16x18x4xbf16> to vector<1x16x16x4xbf16>
    %12 = vector.extract_strided_slice %9 {offsets = [0, 0, 2, 0], sizes = [1, 16, 16, 4], strides = [1, 1, 1, 1]} : vector<1x16x18x4xbf16> to vector<1x16x16x4xbf16>
    %c2_i32 = arith.constant 2 : i32
    %13 = arith.addi %0, %c2_i32 : i32
    %c0_5 = arith.constant 0 : index
    %14 = arith.index_cast %13 : i32 to index
    %c0_6 = arith.constant 0 : index
    %c0_7 = arith.constant 0 : index
    %15 = vector.load %arg2[%c0_5, %14, %c0_6, %c0_7] : memref<1x18x18x4xbf16, #tpu.memory_space<vmem>>, vector<1x16x18x4xbf16>
    %16 = vector.extract_strided_slice %15 {offsets = [0, 0, 0, 0], sizes = [1, 16, 16, 4], strides = [1, 1, 1, 1]} : vector<1x16x18x4xbf16> to vector<1x16x16x4xbf16>
    %17 = vector.extract_strided_slice %15 {offsets = [0, 0, 1, 0], sizes = [1, 16, 16, 4], strides = [1, 1, 1, 1]} : vector<1x16x18x4xbf16> to vector<1x16x16x4xbf16>
    %18 = vector.extract_strided_slice %15 {offsets = [0, 0, 2, 0], sizes = [1, 16, 16, 4], strides = [1, 1, 1, 1]} : vector<1x16x18x4xbf16> to vector<1x16x16x4xbf16>
    %19 = tpu.concatenate %4, %5, %6, %10, %11, %12, %16, %17, %18 in 3 : vector<1x16x16x4xbf16>, vector<1x16x16x4xbf16>, vector<1x16x16x4xbf16>, vector<1x16x16x4xbf16>, vector<1x16x16x4xbf16>, vector<1x16x16x4xbf16>, vector<1x16x16x4xbf16>, vector<1x16x16x4xbf16>, vector<1x16x16x4xbf16> -> vector<1x16x16x36xbf16>
    %20 = vector.shape_cast %19 : vector<1x16x16x36xbf16> to vector<256x36xbf16>
    %c0_8 = arith.constant 0 : index
    %c0_9 = arith.constant 0 : index
    %21 = vector.load %arg3[%c0_8, %c0_9] : memref<36x128xbf16, #tpu.memory_space<vmem>>, vector<36x128xbf16>
    %cst = arith.constant dense<0.000000e+00> : vector<256x128xf32>
    %22 = tpu.matmul %20, %21, %cst {dimension_numbers = #tpu.dot_dimension_numbers<[1], [0], [0], [1], [0, 0, 1, 1], [], []>} : vector<256x36xbf16>, vector<36x128xbf16>, vector<256x128xf32> -> vector<256x128xf32>
    %cst_10 = arith.constant dense<0.000000e+00> : vector<128xf32>
    %23 = vector.multi_reduction <add>, %22, %cst_10 [0] : vector<256x128xf32> to vector<128xf32>
    %24 = vector.shape_cast %23 : vector<128xf32> to vector<1x128xf32>
    %25 = vector.shape_cast %24 : vector<1x128xf32> to vector<1x1x128xf32>
    %c0_11 = arith.constant 0 : index
    %c0_12 = arith.constant 0 : index
    %c0_13 = arith.constant 0 : index
    %26 = vector.load %arg4[%c0_11, %c0_12, %c0_13] : memref<1x1x128xf32, #tpu.memory_space<vmem>>, vector<1x1x128xf32>
    tpu.vector_store %arg4[%c0_11, %c0_12, %c0_13], %25 {strides = array<i32>} : memref<1x1x128xf32, #tpu.memory_space<vmem>>, vector<1x1x128xf32>,
    %27 = arith.mulf %22, %22 : vector<256x128xf32>
    %cst_14 = arith.constant dense<0.000000e+00> : vector<128xf32>
    %28 = vector.multi_reduction <add>, %27, %cst_14 [0] : vector<256x128xf32> to vector<128xf32>
    %29 = vector.shape_cast %28 : vector<128xf32> to vector<1x128xf32>
    %30 = vector.shape_cast %29 : vector<1x128xf32> to vector<1x1x128xf32>
    %c0_15 = arith.constant 0 : index
    %c0_16 = arith.constant 0 : index
    %c0_17 = arith.constant 0 : index
    %31 = vector.load %arg5[%c0_15, %c0_16, %c0_17] : memref<1x1x128xf32, #tpu.memory_space<vmem>>, vector<1x1x128xf32>
    tpu.vector_store %arg5[%c0_15, %c0_16, %c0_17], %30 {strides = array<i32>} : memref<1x1x128xf32, #tpu.memory_space<vmem>>, vector<1x1x128xf32>,
    return
  }
  func.func @transform_0(%arg0: i32, %arg1: i32) -> (i32, i32, i32, i32) {
    %c0_i32 = arith.constant 0 : i32
    %c0_i32_0 = arith.constant 0 : i32
    %c0_i32_1 = arith.constant 0 : i32
    %c0_i32_2 = arith.constant 0 : i32
    return %arg0, %c0_i32, %c0_i32_0, %c0_i32_1 : i32, i32, i32, i32
  }
  func.func @transform_1(%arg0: i32, %arg1: i32) -> (i32, i32) {
    %c0_i32 = arith.constant 0 : i32
    %c0_i32_0 = arith.constant 0 : i32
    %c0_i32_1 = arith.constant 0 : i32
    return %c0_i32, %c0_i32_0 : i32, i32
  }
  func.func @transform_2(%arg0: i32, %arg1: i32) -> (i32, i32, i32) {
    %c0_i32 = arith.constant 0 : i32
    %c0_i32_0 = arith.constant 0 : i32
    return %arg0, %arg1, %c0_i32 : i32, i32, i32
  }
  func.func @transform_3(%arg0: i32, %arg1: i32) -> (i32, i32, i32) {
    %c0_i32 = arith.constant 0 : i32
    %c0_i32_0 = arith.constant 0 : i32
    return %arg0, %arg1, %c0_i32 : i32, i32, i32
  }
}

module attributes {stable_mosaic.version = 11 : i64} {
  func.func @_conv_stats_kernel(%arg0: i32, %arg1: i32, %arg2: memref<1x18x18x4xbf16, #tpu.memory_space<vmem>>, %arg3: memref<9x4x128xbf16, #tpu.memory_space<vmem>>, %arg4: memref<1x1x128xf32, #tpu.memory_space<vmem>>, %arg5: memref<1x1x128xf32, #tpu.memory_space<vmem>>) attributes {dimension_semantics = [#tpu.dimension_semantics<parallel>, #tpu.dimension_semantics<parallel>], iteration_bounds = array<i64: 2, 1>, scalar_prefetch = 0 : i64, scratch_operands = 0 : i64, tpu.core_type = #tpu.core_type<tc>, window_params = [{transform_indices = @transform_0, window_bounds = array<i64: 1, 18, 18, 4>}, {pipeline_mode = #tpu.pipeline_mode<synchronous>, transform_indices = @transform_1, window_bounds = array<i64: 9, 4, 128>}, {transform_indices = @transform_2, window_bounds = array<i64: 1, 1, 128>}, {transform_indices = @transform_3, window_bounds = array<i64: 1, 1, 128>}]} {
    %c16_i32 = arith.constant 16 : i32
    %0 = arith.muli %arg1, %c16_i32 : i32
    %c0 = arith.constant 0 : index
    %1 = arith.index_cast %0 : i32 to index
    %c0_0 = arith.constant 0 : index
    %c0_1 = arith.constant 0 : index
    %2 = vector.load %arg2[%c0, %1, %c0_0, %c0_1] : memref<1x18x18x4xbf16, #tpu.memory_space<vmem>>, vector<1x18x18x4xbf16>
    %3 = arith.extf %2 : vector<1x18x18x4xbf16> to vector<1x18x18x4xf32>
    %cst = arith.constant 0.000000e+00 : f32
    %4 = vector.broadcast %cst : f32 to vector<256x128xf32>
    %5 = vector.extract_strided_slice %3 {offsets = [0, 0, 0, 0], sizes = [1, 16, 16, 4], strides = [1, 1, 1, 1]} : vector<1x18x18x4xf32> to vector<1x16x16x4xf32>
    %6 = vector.shape_cast %5 : vector<1x16x16x4xf32> to vector<256x4xf32>
    %c0_2 = arith.constant 0 : index
    %c0_3 = arith.constant 0 : index
    %c0_4 = arith.constant 0 : index
    %7 = vector.load %arg3[%c0_2, %c0_3, %c0_4] : memref<9x4x128xbf16, #tpu.memory_space<vmem>>, vector<1x4x128xbf16>
    %8 = vector.shape_cast %7 : vector<1x4x128xbf16> to vector<4x128xbf16>
    %9 = arith.truncf %6 : vector<256x4xf32> to vector<256x4xbf16>
    %cst_5 = arith.constant dense<0.000000e+00> : vector<256x128xf32>
    %10 = tpu.matmul %9, %8, %cst_5 {dimension_numbers = #tpu.dot_dimension_numbers<[1], [0], [0], [1], [0, 0, 1, 1], [], []>} : vector<256x4xbf16>, vector<4x128xbf16>, vector<256x128xf32> -> vector<256x128xf32>
    %11 = arith.addf %4, %10 : vector<256x128xf32>
    %12 = vector.extract_strided_slice %3 {offsets = [0, 0, 1, 0], sizes = [1, 16, 16, 4], strides = [1, 1, 1, 1]} : vector<1x18x18x4xf32> to vector<1x16x16x4xf32>
    %13 = vector.shape_cast %12 : vector<1x16x16x4xf32> to vector<256x4xf32>
    %c1 = arith.constant 1 : index
    %c0_6 = arith.constant 0 : index
    %c0_7 = arith.constant 0 : index
    %14 = vector.load %arg3[%c1, %c0_6, %c0_7] : memref<9x4x128xbf16, #tpu.memory_space<vmem>>, vector<1x4x128xbf16>
    %15 = vector.shape_cast %14 : vector<1x4x128xbf16> to vector<4x128xbf16>
    %16 = arith.truncf %13 : vector<256x4xf32> to vector<256x4xbf16>
    %cst_8 = arith.constant dense<0.000000e+00> : vector<256x128xf32>
    %17 = tpu.matmul %16, %15, %cst_8 {dimension_numbers = #tpu.dot_dimension_numbers<[1], [0], [0], [1], [0, 0, 1, 1], [], []>} : vector<256x4xbf16>, vector<4x128xbf16>, vector<256x128xf32> -> vector<256x128xf32>
    %18 = arith.addf %11, %17 : vector<256x128xf32>
    %19 = vector.extract_strided_slice %3 {offsets = [0, 0, 2, 0], sizes = [1, 16, 16, 4], strides = [1, 1, 1, 1]} : vector<1x18x18x4xf32> to vector<1x16x16x4xf32>
    %20 = vector.shape_cast %19 : vector<1x16x16x4xf32> to vector<256x4xf32>
    %c2 = arith.constant 2 : index
    %c0_9 = arith.constant 0 : index
    %c0_10 = arith.constant 0 : index
    %21 = vector.load %arg3[%c2, %c0_9, %c0_10] : memref<9x4x128xbf16, #tpu.memory_space<vmem>>, vector<1x4x128xbf16>
    %22 = vector.shape_cast %21 : vector<1x4x128xbf16> to vector<4x128xbf16>
    %23 = arith.truncf %20 : vector<256x4xf32> to vector<256x4xbf16>
    %cst_11 = arith.constant dense<0.000000e+00> : vector<256x128xf32>
    %24 = tpu.matmul %23, %22, %cst_11 {dimension_numbers = #tpu.dot_dimension_numbers<[1], [0], [0], [1], [0, 0, 1, 1], [], []>} : vector<256x4xbf16>, vector<4x128xbf16>, vector<256x128xf32> -> vector<256x128xf32>
    %25 = arith.addf %18, %24 : vector<256x128xf32>
    %26 = vector.extract_strided_slice %3 {offsets = [0, 1, 0, 0], sizes = [1, 16, 16, 4], strides = [1, 1, 1, 1]} : vector<1x18x18x4xf32> to vector<1x16x16x4xf32>
    %27 = vector.shape_cast %26 : vector<1x16x16x4xf32> to vector<256x4xf32>
    %c3 = arith.constant 3 : index
    %c0_12 = arith.constant 0 : index
    %c0_13 = arith.constant 0 : index
    %28 = vector.load %arg3[%c3, %c0_12, %c0_13] : memref<9x4x128xbf16, #tpu.memory_space<vmem>>, vector<1x4x128xbf16>
    %29 = vector.shape_cast %28 : vector<1x4x128xbf16> to vector<4x128xbf16>
    %30 = arith.truncf %27 : vector<256x4xf32> to vector<256x4xbf16>
    %cst_14 = arith.constant dense<0.000000e+00> : vector<256x128xf32>
    %31 = tpu.matmul %30, %29, %cst_14 {dimension_numbers = #tpu.dot_dimension_numbers<[1], [0], [0], [1], [0, 0, 1, 1], [], []>} : vector<256x4xbf16>, vector<4x128xbf16>, vector<256x128xf32> -> vector<256x128xf32>
    %32 = arith.addf %25, %31 : vector<256x128xf32>
    %33 = vector.extract_strided_slice %3 {offsets = [0, 1, 1, 0], sizes = [1, 16, 16, 4], strides = [1, 1, 1, 1]} : vector<1x18x18x4xf32> to vector<1x16x16x4xf32>
    %34 = vector.shape_cast %33 : vector<1x16x16x4xf32> to vector<256x4xf32>
    %c4 = arith.constant 4 : index
    %c0_15 = arith.constant 0 : index
    %c0_16 = arith.constant 0 : index
    %35 = vector.load %arg3[%c4, %c0_15, %c0_16] : memref<9x4x128xbf16, #tpu.memory_space<vmem>>, vector<1x4x128xbf16>
    %36 = vector.shape_cast %35 : vector<1x4x128xbf16> to vector<4x128xbf16>
    %37 = arith.truncf %34 : vector<256x4xf32> to vector<256x4xbf16>
    %cst_17 = arith.constant dense<0.000000e+00> : vector<256x128xf32>
    %38 = tpu.matmul %37, %36, %cst_17 {dimension_numbers = #tpu.dot_dimension_numbers<[1], [0], [0], [1], [0, 0, 1, 1], [], []>} : vector<256x4xbf16>, vector<4x128xbf16>, vector<256x128xf32> -> vector<256x128xf32>
    %39 = arith.addf %32, %38 : vector<256x128xf32>
    %40 = vector.extract_strided_slice %3 {offsets = [0, 1, 2, 0], sizes = [1, 16, 16, 4], strides = [1, 1, 1, 1]} : vector<1x18x18x4xf32> to vector<1x16x16x4xf32>
    %41 = vector.shape_cast %40 : vector<1x16x16x4xf32> to vector<256x4xf32>
    %c5 = arith.constant 5 : index
    %c0_18 = arith.constant 0 : index
    %c0_19 = arith.constant 0 : index
    %42 = vector.load %arg3[%c5, %c0_18, %c0_19] : memref<9x4x128xbf16, #tpu.memory_space<vmem>>, vector<1x4x128xbf16>
    %43 = vector.shape_cast %42 : vector<1x4x128xbf16> to vector<4x128xbf16>
    %44 = arith.truncf %41 : vector<256x4xf32> to vector<256x4xbf16>
    %cst_20 = arith.constant dense<0.000000e+00> : vector<256x128xf32>
    %45 = tpu.matmul %44, %43, %cst_20 {dimension_numbers = #tpu.dot_dimension_numbers<[1], [0], [0], [1], [0, 0, 1, 1], [], []>} : vector<256x4xbf16>, vector<4x128xbf16>, vector<256x128xf32> -> vector<256x128xf32>
    %46 = arith.addf %39, %45 : vector<256x128xf32>
    %47 = vector.extract_strided_slice %3 {offsets = [0, 2, 0, 0], sizes = [1, 16, 16, 4], strides = [1, 1, 1, 1]} : vector<1x18x18x4xf32> to vector<1x16x16x4xf32>
    %48 = vector.shape_cast %47 : vector<1x16x16x4xf32> to vector<256x4xf32>
    %c6 = arith.constant 6 : index
    %c0_21 = arith.constant 0 : index
    %c0_22 = arith.constant 0 : index
    %49 = vector.load %arg3[%c6, %c0_21, %c0_22] : memref<9x4x128xbf16, #tpu.memory_space<vmem>>, vector<1x4x128xbf16>
    %50 = vector.shape_cast %49 : vector<1x4x128xbf16> to vector<4x128xbf16>
    %51 = arith.truncf %48 : vector<256x4xf32> to vector<256x4xbf16>
    %cst_23 = arith.constant dense<0.000000e+00> : vector<256x128xf32>
    %52 = tpu.matmul %51, %50, %cst_23 {dimension_numbers = #tpu.dot_dimension_numbers<[1], [0], [0], [1], [0, 0, 1, 1], [], []>} : vector<256x4xbf16>, vector<4x128xbf16>, vector<256x128xf32> -> vector<256x128xf32>
    %53 = arith.addf %46, %52 : vector<256x128xf32>
    %54 = vector.extract_strided_slice %3 {offsets = [0, 2, 1, 0], sizes = [1, 16, 16, 4], strides = [1, 1, 1, 1]} : vector<1x18x18x4xf32> to vector<1x16x16x4xf32>
    %55 = vector.shape_cast %54 : vector<1x16x16x4xf32> to vector<256x4xf32>
    %c7 = arith.constant 7 : index
    %c0_24 = arith.constant 0 : index
    %c0_25 = arith.constant 0 : index
    %56 = vector.load %arg3[%c7, %c0_24, %c0_25] : memref<9x4x128xbf16, #tpu.memory_space<vmem>>, vector<1x4x128xbf16>
    %57 = vector.shape_cast %56 : vector<1x4x128xbf16> to vector<4x128xbf16>
    %58 = arith.truncf %55 : vector<256x4xf32> to vector<256x4xbf16>
    %cst_26 = arith.constant dense<0.000000e+00> : vector<256x128xf32>
    %59 = tpu.matmul %58, %57, %cst_26 {dimension_numbers = #tpu.dot_dimension_numbers<[1], [0], [0], [1], [0, 0, 1, 1], [], []>} : vector<256x4xbf16>, vector<4x128xbf16>, vector<256x128xf32> -> vector<256x128xf32>
    %60 = arith.addf %53, %59 : vector<256x128xf32>
    %61 = vector.extract_strided_slice %3 {offsets = [0, 2, 2, 0], sizes = [1, 16, 16, 4], strides = [1, 1, 1, 1]} : vector<1x18x18x4xf32> to vector<1x16x16x4xf32>
    %62 = vector.shape_cast %61 : vector<1x16x16x4xf32> to vector<256x4xf32>
    %c8 = arith.constant 8 : index
    %c0_27 = arith.constant 0 : index
    %c0_28 = arith.constant 0 : index
    %63 = vector.load %arg3[%c8, %c0_27, %c0_28] : memref<9x4x128xbf16, #tpu.memory_space<vmem>>, vector<1x4x128xbf16>
    %64 = vector.shape_cast %63 : vector<1x4x128xbf16> to vector<4x128xbf16>
    %65 = arith.truncf %62 : vector<256x4xf32> to vector<256x4xbf16>
    %cst_29 = arith.constant dense<0.000000e+00> : vector<256x128xf32>
    %66 = tpu.matmul %65, %64, %cst_29 {dimension_numbers = #tpu.dot_dimension_numbers<[1], [0], [0], [1], [0, 0, 1, 1], [], []>} : vector<256x4xbf16>, vector<4x128xbf16>, vector<256x128xf32> -> vector<256x128xf32>
    %67 = arith.addf %60, %66 : vector<256x128xf32>
    %cst_30 = arith.constant dense<0.000000e+00> : vector<128xf32>
    %68 = vector.multi_reduction <add>, %67, %cst_30 [0] : vector<256x128xf32> to vector<128xf32>
    %69 = vector.shape_cast %68 : vector<128xf32> to vector<1x128xf32>
    %70 = vector.shape_cast %69 : vector<1x128xf32> to vector<1x1x128xf32>
    %c0_31 = arith.constant 0 : index
    %c0_32 = arith.constant 0 : index
    %c0_33 = arith.constant 0 : index
    %71 = vector.load %arg4[%c0_31, %c0_32, %c0_33] : memref<1x1x128xf32, #tpu.memory_space<vmem>>, vector<1x1x128xf32>
    tpu.vector_store %arg4[%c0_31, %c0_32, %c0_33], %70 {strides = array<i32>} : memref<1x1x128xf32, #tpu.memory_space<vmem>>, vector<1x1x128xf32>,
    %72 = arith.mulf %67, %67 : vector<256x128xf32>
    %cst_34 = arith.constant dense<0.000000e+00> : vector<128xf32>
    %73 = vector.multi_reduction <add>, %72, %cst_34 [0] : vector<256x128xf32> to vector<128xf32>
    %74 = vector.shape_cast %73 : vector<128xf32> to vector<1x128xf32>
    %75 = vector.shape_cast %74 : vector<1x128xf32> to vector<1x1x128xf32>
    %c0_35 = arith.constant 0 : index
    %c0_36 = arith.constant 0 : index
    %c0_37 = arith.constant 0 : index
    %76 = vector.load %arg5[%c0_35, %c0_36, %c0_37] : memref<1x1x128xf32, #tpu.memory_space<vmem>>, vector<1x1x128xf32>
    tpu.vector_store %arg5[%c0_35, %c0_36, %c0_37], %75 {strides = array<i32>} : memref<1x1x128xf32, #tpu.memory_space<vmem>>, vector<1x1x128xf32>,
    return
  }
  func.func @transform_0(%arg0: i32, %arg1: i32) -> (i32, i32, i32, i32) {
    %c0_i32 = arith.constant 0 : i32
    %c0_i32_0 = arith.constant 0 : i32
    %c0_i32_1 = arith.constant 0 : i32
    %c0_i32_2 = arith.constant 0 : i32
    return %arg0, %c0_i32, %c0_i32_0, %c0_i32_1 : i32, i32, i32, i32
  }
  func.func @transform_1(%arg0: i32, %arg1: i32) -> (i32, i32, i32) {
    %c0_i32 = arith.constant 0 : i32
    %c0_i32_0 = arith.constant 0 : i32
    %c0_i32_1 = arith.constant 0 : i32
    %c0_i32_2 = arith.constant 0 : i32
    return %c0_i32, %c0_i32_0, %c0_i32_1 : i32, i32, i32
  }
  func.func @transform_2(%arg0: i32, %arg1: i32) -> (i32, i32, i32) {
    %c0_i32 = arith.constant 0 : i32
    %c0_i32_0 = arith.constant 0 : i32
    return %arg0, %arg1, %c0_i32 : i32, i32, i32
  }
  func.func @transform_3(%arg0: i32, %arg1: i32) -> (i32, i32, i32) {
    %c0_i32 = arith.constant 0 : i32
    %c0_i32_0 = arith.constant 0 : i32
    return %arg0, %arg1, %c0_i32 : i32, i32, i32
  }
}

</mosaic_0001>

<bundles_post_ra>
// kernel: tpu_custom_call.1
= control target key start
LH: loop header
LB: loop body
LE: loop exit
PB: predicated region body
PF: predicated region fallthrough
CT: control target
= control target key end

     0   :  { %9 = vsyncpa [#allocation3], 0  ;;  %s4011_s0 = inlined_call_operand.vmem [shape: bf16[2,18,18,4], index: 0, kind: input, shape index: {}]   ;;  %s4012_s1 = inlined_call_operand.vmem [shape: bf16[36,128], index: 1, kind: input, shape index: {}]   ;;  %s4013_s2 = inlined_call_operand.hbm [shape: f32[2,1,128], index: 2, kind: output, shape index: {0}]   ;;  %s4014_s3 = inlined_call_operand.hbm [shape: f32[2,1,128], index: 3, kind: output, shape index: {1}]  }
   0x1   :  { %11 = vsyncpa [#allocation3 + $0x1], 0 }
   0x2   :  { %12 = vsyncpa [#allocation5], 0 }
   0x3   :  { %14 = vsyncpa [#allocation5 + $0x1], 0  ;;  %s3044_s12 = smov 0   ;;  %s3046_s13 = smov 0  }
   0x4   :  { %s3048_s14 = smov 0   ;;  %s3050_s15 = smov 0  }
   0x5   :  { %s3052_s16 = smov 0   ;;  %s3054_s17 = smov 0  }
   0x6 LB: > { %s2438_s18 = sadd.s32 4294967295, %s3012_s17   ;;  %s2439_s19 = sadd.s32 4294967294, %s3012_s17   ;;  %s3012_s17 = sphi %s3054_s17, %s20_s17   ;;  %s3008_s16 = sphi %s3052_s16, %s4021_s16   ;;  %s3004_s15 = sphi %s3050_s15, %s4020_s15   ;;  %s3000_s14 = sphi %s3048_s14, %s4019_s14   ;;  %s2996_s13 = sphi %s3046_s13, %s4018_s13   ;;  %s2992_s12 = sphi %s3044_s12, %s4017_s12  }
   0x7   : > { %s32_s20 = sadd.s32 1, %s3008_s16  ;;  %s88_s21 = sadd.s32 1, %s3000_s14 }
   0x8   : > { %p34_p0 = scmp.ge.s32.totalorder %s32_s20, 2  ;;  %p98_p1 = scmp.ne.s32.totalorder %s3000_s14, %s2996_s13 }
   0x9   : > { %p99_p2 = scmp.eq.s32.totalorder %s2438_s18, 1  ;;  %p104_p3 = scmp.ne.s32.totalorder %s2996_s13, %s2992_s12 }
   0xa   : > { %s4023_s20 = smov (%p34_p0, %s32_s20), 0  ;;  %p105_p5 = scmp.eq.s32.totalorder %s2439_s19, 1 }
   0xb   : > { %p3084_p4 = por %p99_p2, %p98_p1  ;;  %s83_s23 = ssub.s32 %s3008_s16, %s4023_s20 }
   0xc   : > { %p2442_p6 = scmp.ge.s32.totalorder %s3012_s17, 1  ;;  %p86_p7 = scmp.eq.s32.totalorder %s83_s23, 0 }
   0xd   : > { %p3091_p8 = por %p105_p5, %p104_p3  ;;  %p162_p9 = scmp.lt.s32.totalorder %s3012_s17, 3 }
   0xe   : > { %s3097_s25 = scalar_select %p86_p7, %s3000_s14, %s88_s21  }
   0xf   : > { %p163_p10 = pnand %p2442_p6, %p162_p9 }
  0x10   : > { %p189_p11 = scmp.lt.s32.totalorder (!%p163_p10), %s3004_s15, 1  ;;  %vm704_vm0 = vcmask (!%p163_p10), 1046528   ;;  %s3014_s4 = smov (!%p163_p10), 12   ;;  %vm479_vm1 = vsmask.f32 (!%p163_p10), 7424  ;;  %vm2030_vm2 = vcmask (!%p163_p10), 1041408  }
  0x11   : > { %166 = sbr.rel (%p163_p10) target bundleno = 671 (0x29f), region = 28  ;;  %s3015_s5 = smov (!%p163_p10), 20   ;;  %vm1713_vm3 = vcmask (!%p163_p10), 31744   ;;  %vm1746_vm4 = vcmask (!%p163_p10), 64512   ;;  %vm1779_vm5 = vcmask (!%p163_p10), 97280   ;;  %vm1812_vm6 = vcmask (!%p163_p10), 130048  }
  0x12   : > { %s3016_s6 = smov (!%p163_p10), 8   ;;  %s3017_s7 = smov (!%p163_p10), 4   ;;  %vm1845_vm7 = vcmask (!%p163_p10), 162816   ;;  %vm1878_vm8 = vcmask (!%p163_p10), 195584   ;;  %vm1911_vm9 = vcmask (!%p163_p10), 228352   ;;  %vm1944_vm10 = vcmask (!%p163_p10), 261120  }
  0x13   : > { %s3018_s8 = smov (!%p163_p10), 16   ;;  %s3019_s9 = smov (!%p163_p10), 24   ;;  %vm1997_vm11 = vcmask (!%p163_p10), 293888  }
  0x14   : > { %s3020_s10 = smov (!%p163_p10), 28   ;;  %s3021_s11 = smov (!%p163_p10), 32  }
  0x15   : > { %s3922_s28 = sand.u32 (!%p163_p10), 1, %s2996_s13   ;;  %s2655_s29 = sshll.u32 (!%p163_p10), %s3004_s15, 4 }
  0x16   : > { %s2304_s18 = scalar_lea.sflag (!%p163_p10), [#allocation3], %s3922_s28  ;;  %s3022_s21 = smov (!%p163_p10), [#allocation2]  }
  0x17   : > { %s2906_s23 = sshll.u32 (!%p163_p10), %s3022_s21, 4  ;;  %s2907_s23 = int_to_ptr.vmem [resolvable:$false] %s2906_s23 }
  0x18   : > { %s190_s26 = scalar_select %p189_p11, %s3004_s15, 1 }
  0x1a   : > { %s2724_s27 = smul.u32 216, %s190_s26  ;;  %s2908_s26 = scalar_lea.vmem %s2907_s23, 32 }
  0x1c   : > { %s3104_s30 = scalar_lea.vmem %s4011_s0, %s2724_s27 }
  0x1d   : > { %v2793_v0 = vld [vmem:[%s3104_s30 + $0x18] sm:$0xff]   ;;  %v2794_v1 = vld [vmem:[%s3104_s30 + $0xc] sm:$0xff]   ;;  %v2795_v2 = vld [vmem:[%s3104_s30 + $0x14] ss:$0 sps:$4 sm:$0x11]  }
  0x1e   : > { %867 = vrot.lane.b32.xlu1 %v2793_v0, %s3014_s4  ;;  %v2796_v3 = vld [vmem:[%s3104_s30] sm:$0xff]   ;;  %865 = vrot.lane.b32.xlu0 %v2794_v1, %s3014_s4  ;;  %v1169_v4 = vrot.slane %v2794_v1, 1  ;;  %v2798_v5 = vld [vmem:[%s3104_s30 + $0xc] sm:$0xff]   ;;  %v1170_v6 = vrot.slane %v2795_v2, 1  ;;  %v1172_v16 = vrot.slane %v2793_v0, 1  ;;  %v958_v25 = vshrl.u32 %v2793_v0, 16 }
  0x1f   : > { %v2797_v7 = vld [vmem:[%s3104_s30 + $0x8] ss:$0 sps:$4 sm:$0x11]   ;;  %v705_v8 = vrot.slane %v2796_v3, 1  ;;  %v708_v9 = vrot.slane %v2798_v5, 1  ;;  %v481_v13 = vshrl.u32 %v2796_v3, 16 }
  0x20   : > { %v1171_v10 = vsel %vm704_vm0, %v1169_v4, %v1170_v6  ;;  %v706_v11 = vrot.slane %v2797_v7, 1  ;;  %v2799_v12 = vld [vmem:[%s3104_s30 + $0x14] ss:$0 sps:$4 sm:$0x11]   ;;  %v483_v14 = vshll.u32 %v2796_v3, 16  ;;  %v488_v15 = vshll.u32 %v2797_v7, 16 }
  0x21   : > { %v709_v18 = vrot.slane %v2799_v12, 1  ;;  %v2800_v19 = vld [vmem:[%s3104_s30 + $0x20] ss:$0 sps:$4 sm:$0x11]   ;;  %v493_v20 = vshrl.u32 %v2798_v5, 16  ;;  %v495_v21 = vshll.u32 %v2798_v5, 16 }
  0x22   : > { %1217 = vrot.lane.b32.xlu0 %v1171_v10, %s3015_s5  ;;  %v707_v17 = vsel %vm704_vm0, %v705_v8, %v706_v11  ;;  %v485_v22 = vrot.slane %v483_v14, 1  ;;  %v490_v23 = vrot.slane %v488_v15, 1  ;;  %v500_v24 = vshll.u32 %v2799_v12, 16  ;;  %v3122_v30 = vld [vmem:[%s3104_s30 + $0x24] sm:$0xff]   ;;  %v3125_v35 = vld [vmem:[%s3104_s30 + $0x18] sm:$0xff]  }
  0x23   : > { %753 = vrot.lane.b32.xlu1 %v707_v17, %s3016_s6  ;;  %v710_v26 = vsel %vm704_vm0, %v708_v9, %v709_v18  ;;  %v1173_v27 = vrot.slane %v2800_v19, 1  ;;  %v497_v28 = vrot.slane %v495_v21, 1  ;;  %v960_v29 = vshll.u32 %v2793_v0, 16  ;;  %v3130_v42 = vld [vmem:[%s3104_s30 + $0x2c] ss:$0 sps:$4 sm:$0x11]  }
  0x24   : > { %v486_v31 = vor.u32 %v485_v22, %v481_v13  ;;  %v502_v32 = vrot.slane %v500_v24, 1  ;;  %v965_v33 = vshll.u32 %v2800_v19, 16  ;;  %v946_v34 = vshrl.u32 %v2794_v1, 16  ;;  %v2804_v49 = vld [vmem:[%s3104_s30 + $0x20] ss:$0 sps:$4 sm:$0x11]  }
  0x25   : > { %v498_v36 = vor.u32 %v497_v28, %v493_v20  ;;  %v962_v37 = vrot.slane %v960_v29, 1  ;;  %v948_v38 = vshll.u32 %v2794_v1, 16  ;;  %v953_v41 = vshll.u32 %v2795_v2, 16  ;;  %v3142_v55 = vld [vmem:[%s3104_s30 + $0x18] sm:$0xff]   ;;  %v2807_v0 = vld [vmem:[%s3104_s30 + $0x24] sm:$0xff]   ;;  %v2809_v21 = vld [vmem:[%s3104_s30 + $0x30] sm:$0xff]  }
  0x26   : > { %v491_v39 = vsel %vm479_vm1, %v486_v31, %v490_v23  ;;  %v967_v40 = vrot.slane %v965_v33, 1  ;;  %v1174_v43 = vsel %vm704_vm0, %v1172_v16, %v1173_v27  ;;  %v1424_v46 = vshll.u32 %v3122_v30, 16  ;;  %v3145_v56 = vld [vmem:[%s3104_s30 + $0x20] ss:$0 sps:$4 sm:$0x11]  }
  0x27   : > { %755 = vrot.lane.b32.xlu1 %v710_v26, %s3016_s6  ;;  %672 = vrot.lane.b32.xlu0 %v491_v39, %s3017_s7  ;;  %v963_v44 = vor.u32 %v962_v37, %v958_v25  ;;  %v950_v45 = vrot.slane %v948_v38, 1  ;;  %v503_v47 = vsel %vm479_vm1, %v498_v36, %v502_v32  ;;  %v955_v48 = vrot.slane %v953_v41, 1  ;;  %v2808_v3 = vld [vmem:[%s3104_s30 + $0x2c] ss:$0 sps:$4 sm:$0x11]   ;;  %v2810_v25 = vld [vmem:[%s3104_s30 + $0x24] sm:$0xff]  }
  0x28   : > { %v1429_v51 = vshll.u32 %v3130_v42, 16  ;;  %v1412_v52 = vshll.u32 %v3125_v35, 16  ;;  %v1422_v53 = vshrl.u32 %v3122_v30, 16  ;;  %v1426_v54 = vrot.slane %v1424_v46, 1  ;;  %v3188_v46 = vld [vmem:[%s3104_s30 + $0x3c] sm:$0xff]  }
  0x29   : > { %v951_v50 = vor.u32 %v950_v45, %v946_v34  ;;  %v968_v57 = vsel %vm479_vm1, %v963_v44, %v967_v40  ;;  %v1410_v58 = vshrl.u32 %v3125_v35, 16  ;;  %v1417_v61 = vshll.u32 %v2804_v49, 16  ;;  %v2811_v29 = vld [vmem:[%s3104_s30 + $0x38] ss:$0 sps:$4 sm:$0x11]  }
  0x2a   : > { %v1414_v60 = vrot.slane %v1412_v52, 1  ;;  %v507_v62 = vshll.u32 %v3142_v55, 16  ;;  %v1431_v63 = vrot.slane %v1429_v51, 1  ;;  %v1427_v1 = vor.u32 %v1426_v54, %v1422_v53  ;;  %v2812_v34 = vld [vmem:[%s3104_s30 + $0x2c] ss:$0 sps:$4 sm:$0x11]  }
  0x2b   : > { %1219 = vrot.lane.b32.xlu1 %v1174_v43, %s3015_s5  ;;  %674 = vrot.lane.b32.xlu0 %v503_v47, %s3017_s7  ;;  %v956_v59 = vsel %vm479_vm1, %v951_v50, %v955_v48  ;;  %v512_v2 = vshll.u32 %v3145_v56, 16  ;;  %v505_v4 = vshrl.u32 %v3142_v55, 16  ;;  %v519_v6 = vshll.u32 %v2807_v0, 16  ;;  %v3192_v50 = vld [vmem:[%s3104_s30 + $0x44] ss:$0 sps:$4 sm:$0x11]  }
  0x2c   : > { %v509_v5 = vrot.slane %v507_v62, 1  ;;  %v1415_v7 = vor.u32 %v1414_v60, %v1410_v58  ;;  %v1419_v8 = vrot.slane %v1417_v61, 1  ;;  %v1432_v9 = vsel %vm479_vm1, %v1427_v1, %v1431_v63  ;;  %v3196_v54 = vld [vmem:[%s3104_s30 + $0x30] sm:$0xff]   ;;  %v2818_v63 = vld [vmem:[%s3104_s30 + $0x38] ss:$0 sps:$4 sm:$0x11]  }
  0x2d   : > { %v514_v10 = vrot.slane %v512_v2, 1  ;;  %v517_v12 = vshrl.u32 %v2807_v0, 16  ;;  %v521_v13 = vrot.slane %v519_v6, 1  ;;  %v524_v14 = vshll.u32 %v2808_v3, 16 }
  0x2e   : > { %v510_v11 = vor.u32 %v509_v5, %v505_v4  ;;  %v1420_v15 = vsel %vm479_vm1, %v1415_v7, %v1419_v8  ;;  %v1633_v16 = vrot.slane %v3125_v35, 1  ;;  %v1634_v17 = vrot.slane %v2804_v49, 1  ;;  %v2814_v49 = vld [vmem:[%s3104_s30 + $0x30] sm:$0xff]  }
  0x2f   : > { %1139 = vrot.lane.b32.xlu1 %v968_v57, %s3018_s8  ;;  %1137 = vrot.lane.b32.xlu0 %v956_v59, %s3018_s8  ;;  %v522_v19 = vor.u32 %v521_v13, %v517_v12  ;;  %v526_v20 = vrot.slane %v524_v14, 1  ;;  %v1636_v23 = vrot.slane %v3122_v30, 1  ;;  %v1637_v24 = vrot.slane %v3130_v42, 1  ;;  %v2816_v57 = vld [vmem:[%s3104_s30 + $0x38] ss:$0 sps:$4 sm:$0x11]  }
  0x30   : > { %v515_v18 = vsel %vm479_vm1, %v510_v11, %v514_v10  ;;  %v1635_v22 = vsel %vm704_vm0, %v1633_v16, %v1634_v17  ;;  %v714_v26 = vrot.slane %v2807_v0, 1  ;;  %v715_v27 = vrot.slane %v2808_v3, 1  ;;  %v2819_v3 = vld [vmem:[%s3104_s30 + $0x3c] sm:$0xff]   ;;  %v2820_v13 = vld [vmem:[%s3104_s30 + $0x44] ss:$0 sps:$4 sm:$0x11]  }
  0x31   : > { %v527_v28 = vsel %vm479_vm1, %v522_v19, %v526_v20  ;;  %v984_v31 = vshll.u32 %v2809_v21, 16  ;;  %v1638_v32 = vsel %vm704_vm0, %v1636_v23, %v1637_v24  ;;  %v711_v33 = vrot.slane %v3142_v55, 1 }
  0x32   : > { %v982_v36 = vshrl.u32 %v2809_v21, 16  ;;  %v716_v37 = vsel %vm704_vm0, %v714_v26, %v715_v27  ;;  %v989_v39 = vshll.u32 %v2811_v29, 16  ;;  %v970_v41 = vshrl.u32 %v2810_v25, 16 }
  0x33   : > { %1331 = vrot.lane.b32.xlu1 %v3122_v30, %s3019_s9  ;;  %1329 = vrot.lane.b32.xlu0 %v3125_v35, %s3019_s9  ;;  %v712_v30 = vrot.slane %v3145_v56, 1  ;;  %v972_v35 = vshll.u32 %v2810_v25, 16  ;;  %v986_v38 = vrot.slane %v984_v31, 1  ;;  %v977_v43 = vshll.u32 %v2812_v34, 16 }
  0x34   : > { %v991_v45 = vrot.slane %v989_v39, 1  ;;  %v1178_v51 = vrot.slane %v2809_v21, 1  ;;  %v1179_v52 = vrot.slane %v2811_v29, 1  ;;  %v1175_v53 = vrot.slane %v2810_v25, 1  ;;  %v3225_v29 = vld [vmem:[%s3104_s30 + $0x48] sm:$0xff]  }
  0x35   : > { %v713_v40 = vsel %vm704_vm0, %v711_v33, %v712_v30  ;;  %v974_v42 = vrot.slane %v972_v35, 1  ;;  %v987_v44 = vor.u32 %v986_v38, %v982_v36  ;;  %v979_v48 = vrot.slane %v977_v43, 1  ;;  %v3231_v30 = vld [vmem:[%s3104_s30 + $0x3c] sm:$0xff]   ;;  %v2823_v35 = vld [vmem:[%s3104_s30 + $0x50] ss:$0 sps:$4 sm:$0x11]  }
  0x36   : > { %v1448_v56 = vshll.u32 %v3188_v46, 16  ;;  %v1176_v59 = vrot.slane %v2812_v34, 1  ;;  %v1436_v60 = vshll.u32 %v2814_v49, 16  ;;  %v1453_v61 = vshll.u32 %v3192_v50, 16 }
  0x37   : > { %1603 = vrot.lane.b32.xlu1 %v1432_v9, %s3020_s10  ;;  %1601 = vrot.lane.b32.xlu0 %v1420_v15, %s3020_s10  ;;  %v975_v47 = vor.u32 %v974_v42, %v970_v41  ;;  %v992_v55 = vsel %vm479_vm1, %v987_v44, %v991_v45  ;;  %v1446_v62 = vshrl.u32 %v3188_v46, 16  ;;  %v531_v0 = vshll.u32 %v3196_v54, 16 }
  0x38   : > { %v1180_v1 = vsel %vm704_vm0, %v1178_v51, %v1179_v52  ;;  %v1450_v2 = vrot.slane %v1448_v56, 1  ;;  %v1177_v4 = vsel %vm704_vm0, %v1175_v53, %v1176_v59  ;;  %v1434_v5 = vshrl.u32 %v2814_v49, 16  ;;  %v2845_v52 = vld [vmem:[%s4012_s1] sm:$0xff]   ;;  %v3257_v56 = vld [vmem:[%s3104_s30 + $0x48] sm:$0xff]  }
  0x39   : > { %v980_v58 = vsel %vm479_vm1, %v975_v47, %v979_v48  ;;  %v1438_v6 = vrot.slane %v1436_v60, 1  ;;  %v1441_v7 = vshll.u32 %v2816_v57, 16  ;;  %v1455_v8 = vrot.slane %v1453_v61, 1  ;;  %2678 = vmatprep.subr.bf16.mxu0 %v2845_v52  ;;  %v2848_v59 = vld [vmem:[%s4012_s1 + $0x8] sm:$0xff]   ;;  %2716 = vmatprep.subr.bf16.mxu1 %v2845_v52 }
  0x3a   : > { %v529_v9 = vshrl.u32 %v3196_v54, 16  ;;  %v533_v10 = vrot.slane %v531_v0, 1  ;;  %v536_v11 = vshll.u32 %v2818_v63, 16  ;;  %v1451_v12 = vor.u32 %v1450_v2, %v1446_v62  ;;  %2679 = vmatpush3.bf16.msra.mxu0 %v2845_v52  ;;  %v3263_v60 = vld [vmem:[%s3104_s30 + $0x5c] ss:$0 sps:$4 sm:$0x11]   ;;  %2719 = vmatpush3.bf16.msra.mxu1 %v2845_v52 }
  0x3b   : > { %676 = vrot.lane.b32.xlu1 %v515_v18, %s3017_s7  ;;  %1681 = vrot.lane.b32.xlu0 %v1635_v22, %s3021_s11  ;;  %v543_v14 = vshll.u32 %v2819_v3, 16  ;;  %v1439_v15 = vor.u32 %v1438_v6, %v1434_v5  ;;  %v1443_v16 = vrot.slane %v1441_v7, 1  ;;  %v541_v18 = vshrl.u32 %v2819_v3, 16  ;;  %v3270_v0 = vld [vmem:[%s3104_s30 + $0x48] sm:$0xff]  }
  0x3c   : > { %v538_v17 = vrot.slane %v536_v11, 1  ;;  %v1456_v19 = vsel %vm479_vm1, %v1451_v12, %v1455_v8  ;;  %v534_v20 = vor.u32 %v533_v10, %v529_v9  ;;  %v548_v22 = vshll.u32 %v2820_v13, 16  ;;  %2680 = vmatprep.subr.bf16.mxu0 %v2848_v59  ;;  %2717 = vmatprep.subr.bf16.mxu1 %v2848_v59  ;;  %v2828_v6 = vld [vmem:[%s3104_s30 + $0x50] ss:$0 sps:$4 sm:$0x11]  }
  0x3d   : > { %v1444_v23 = vsel %vm479_vm1, %v1439_v15, %v1443_v16  ;;  %v1639_v24 = vrot.slane %v2814_v49, 1  ;;  %v1643_v33 = vrot.slane %v3192_v50, 1  ;;  %v720_v34 = vrot.slane %v2819_v3, 1  ;;  %v2851_v7 = vld [vmem:[%s4012_s1 + $0x10] ss:$0 sps:$4 sm:$0x33]  }
  0x3e   : > { %v539_v26 = vsel %vm479_vm1, %v534_v20, %v538_v17  ;;  %v717_v38 = vrot.slane %v3196_v54, 1  ;;  %v1008_v39 = vshll.u32 %v3225_v29, 16  ;;  %v718_v42 = vrot.slane %v2818_v63, 1  ;;  %2681 = vmatpush3.bf16.msra.mxu0 %v2848_v59  ;;  %2720 = vmatpush3.bf16.msra.mxu1 %v2848_v59  ;;  %v3286_v10 = vld [vmem:[%s3104_s30 + $0x50] ss:$0 sps:$4 sm:$0x11]  }
  0x3f   : > { %678 = vrot.lane.b32.xlu1 %v527_v28, %s3017_s7  ;;  %1683 = vrot.lane.b32.xlu0 %v1638_v32, %s3021_s11  ;;  %v550_v28 = vrot.slane %v548_v22, 1  ;;  %v1642_v32 = vrot.slane %v3188_v46, 1  ;;  %v996_v43 = vshll.u32 %v3231_v30, 16  ;;  %v1006_v44 = vshrl.u32 %v3225_v29, 16  ;;  %v2831_v16 = vld [vmem:[%s3104_s30 + $0x54] sm:$0xff]  }
  0x40   : > { %v1013_v47 = vshll.u32 %v2823_v35, 16  ;;  %v719_v48 = vsel %vm704_vm0, %v717_v38, %v718_v42  ;;  %v1184_v61 = vrot.slane %v3225_v29, 1  ;;  %v1185_v62 = vrot.slane %v2823_v35, 1  ;;  %2722 = vmatprep.subr.msk.bf16.mxu0 %vm2030_vm2, %v2851_v7  ;;  %2723 = vmatprep.subr.msk.bf16.mxu1 %vm2030_vm2, %v2851_v7 }
  0x41   : > { %v1644_v41 = vsel %vm704_vm0, %v1642_v32, %v1643_v33  ;;  %v998_v50 = vrot.slane %v996_v43, 1  ;;  %v1181_v63 = vrot.slane %v3231_v30, 1  ;;  %v1477_v9 = vshll.u32 %v3263_v60, 16 }
  0x42   : > { %v1015_v54 = vrot.slane %v1013_v47, 1  ;;  %v555_v11 = vshll.u32 %v3270_v0, 16  ;;  %v1186_v12 = vsel %vm704_vm0, %v1184_v61, %v1185_v62 }
  0x43   : > { %759 = vrot.lane.b32.xlu1 %v716_v37, %s3016_s6  ;;  %757 = vrot.lane.b32.xlu0 %v713_v40, %s3016_s6  ;;  %v721_v37 = vrot.slane %v2820_v13, 1  ;;  %v2824_v40 = vld [vmem:[%s3104_s30 + $0x44] ss:$0 sps:$4 sm:$0x11]   ;;  %v1479_v20 = vrot.slane %v1477_v9, 1 }
  0x44   : > { %v1001_v51 = vshll.u32 %v2824_v40, 16  ;;  %v1182_v2 = vrot.slane %v2824_v40, 1  ;;  %v557_v22 = vrot.slane %v555_v11, 1 }
  0x45   : > { %v722_v45 = vsel %vm704_vm0, %v720_v34, %v721_v37  ;;  %v1646_v37 = vrot.slane %v2828_v6, 1 }
  0x46   : > { %v1183_v17 = vsel %vm704_vm0, %v1181_v63, %v1182_v2 }
  0x47   : > { %871 = vrot.lane.b32.xlu1 %v2809_v21, %s3014_s4  ;;  %869 = vrot.lane.b32.xlu0 %v2810_v25, %s3014_s4  ;;  %v545_v21 = vrot.slane %v543_v14, 1  ;;  %v1640_v25 = vrot.slane %v2816_v57, 1  ;;  %v1458_v14 = vshrl.u32 %v3257_v56, 16 }
  0x49   : > { %v546_v27 = vor.u32 %v545_v21, %v541_v18  ;;  %v1641_v31 = vsel %vm704_vm0, %v1639_v24, %v1640_v25  ;;  %v1465_v18 = vshll.u32 %v2828_v6, 16  ;;  %v553_v21 = vshrl.u32 %v3270_v0, 16  ;;  %v2832_v25 = vld [vmem:[%s3104_s30 + $0x5c] ss:$0 sps:$4 sm:$0x11]  }
  0x4a   : > { %v572_v34 = vshll.u32 %v2832_v25, 16  ;;  %v727_v47 = vrot.slane %v2832_v25, 1  ;;  %v3333_v6 = vld [vmem:[%s3104_s30 + $0x74] ss:$0 sps:$4 sm:$0x11]  }
  0x4b   : > { %1143 = vrot.lane.b32.xlu1 %v992_v55, %s3018_s8  ;;  %1141 = vrot.lane.b32.xlu0 %v980_v58, %s3018_s8  ;;  %v551_v36 = vsel %vm479_vm1, %v546_v27, %v550_v28  ;;  %v3254_v55 = vld [vmem:[%s3104_s30 + $0x54] sm:$0xff]   ;;  %v1003_v58 = vrot.slane %v1001_v51, 1  ;;  %v1467_v28 = vrot.slane %v1465_v18, 1  ;;  %v558_v33 = vor.u32 %v557_v22, %v553_v21  ;;  %v2835_v51 = vld [vmem:[%s3104_s30 + $0x68] ss:$0 sps:$4 sm:$0x11]  }
  0x4c   : > { %v1472_v3 = vshll.u32 %v3254_v55, 16  ;;  %v1470_v8 = vshrl.u32 %v3254_v55, 16  ;;  %v574_v40 = vrot.slane %v572_v34, 1  ;;  %v1648_v43 = vrot.slane %v3254_v55, 1 }
  0x4d   : > { %v1037_v59 = vshll.u32 %v2835_v51, 16  ;;  %v1191_v11 = vrot.slane %v2835_v51, 1  ;;  %v3351_v22 = vld [vmem:[%s3104_s30 + $0x68] ss:$0 sps:$4 sm:$0x11]  }
  0x4e   : > { %v1474_v13 = vrot.slane %v1472_v3, 1  ;;  %v584_v34 = vshll.u32 %v3351_v22, 16 }
  0x4f   : > { %1223 = vrot.lane.b32.xlu1 %v1180_v1, %s3015_s5  ;;  %1221 = vrot.lane.b32.xlu0 %v1177_v4, %s3015_s5  ;;  %v1460_v4 = vshll.u32 %v3257_v56, 16  ;;  %v1039_v2 = vrot.slane %v1037_v59, 1 }
  0x50   : > { %v1475_v24 = vor.u32 %v1474_v13, %v1470_v8 }
  0x51   : > { %v1462_v15 = vrot.slane %v1460_v4, 1 }
  0x52   : > { %v1480_v32 = vsel %vm479_vm1, %v1475_v24, %v1479_v20 }
  0x53   : > { %1335 = vrot.lane.b32.xlu1 %v3188_v46, %s3019_s9  ;;  %1333 = vrot.lane.b32.xlu0 %v2814_v49, %s3019_s9  ;;  %v1010_v46 = vrot.slane %v1008_v39, 1  ;;  %v994_v49 = vshrl.u32 %v3231_v30, 16  ;;  %v1463_v27 = vor.u32 %v1462_v15, %v1458_v14  ;;  %v2840_v15 = vld [vmem:[%s3104_s30 + $0x68] ss:$0 sps:$4 sm:$0x11]  }
  0x55   : > { %v1011_v53 = vor.u32 %v1010_v46, %v1006_v44  ;;  %v999_v57 = vor.u32 %v998_v50, %v994_v49  ;;  %v1468_v35 = vsel %vm479_vm1, %v1463_v27, %v1467_v28  ;;  %v1649_v44 = vrot.slane %v3263_v60, 1 }
  0x56   : > { %v726_v46 = vrot.slane %v2831_v16, 1  ;;  %v724_v49 = vrot.slane %v3286_v10, 1  ;;  %v1489_v27 = vshll.u32 %v2840_v15, 16 }
  0x57   : > { %1607 = vrot.lane.b32.xlu1 %v1456_v19, %s3020_s10  ;;  %1605 = vrot.lane.b32.xlu0 %v1444_v23, %s3020_s10  ;;  %v1016_v1 = vsel %vm479_vm1, %v1011_v53, %v1015_v54  ;;  %v1004_v5 = vsel %vm479_vm1, %v999_v57, %v1003_v58  ;;  %v2032_v19 = vsel %vm2030_vm2, %v2851_v7, 0  ;;  %v560_v23 = vshll.u32 %v3286_v10, 16  ;;  %v2836_v54 = vld [vmem:[%s3104_s30 + $0x5c] ss:$0 sps:$4 sm:$0x11]   ;;  %v3336_v7 = vld [vmem:[%s3104_s30 + $0x60] sm:$0xff]  }
  0x58   : > { %2683 = vmatpush3.bf16.msra.mxu0 %v2032_v19  ;;  %2721 = vmatpush3.bf16.msra.mxu1 %v2032_v19  ;;  %v1650_v53 = vsel %vm704_vm0, %v1648_v43, %v1649_v44  ;;  %v1025_v63 = vshll.u32 %v2836_v54, 16  ;;  %v1188_v13 = vrot.slane %v2836_v54, 1  ;;  %v579_v18 = vshll.u32 %v3336_v7, 16 }
  0x5a   : > { %v1027_v4 = vrot.slane %v1025_v63, 1 }
  0x5b   : > { %680 = vrot.lane.b32.xlu1 %v539_v26, %s3017_s7  ;;  %1685 = vrot.lane.b32.xlu0 %v1641_v31, %s3021_s11  ;;  %v567_v26 = vshll.u32 %v2831_v16, 16  ;;  %v565_v31 = vshrl.u32 %v2831_v16, 16 }
  0x5f   : > { %682 = vrot.lane.b32.xlu1 %v551_v36, %s3017_s7  ;;  %1687 = vrot.lane.b32.xlu0 %v1644_v41, %s3021_s11  ;;  %v1645_v36 = vrot.slane %v3257_v56, 1  ;;  %v2833_v41 = vld [vmem:[%s3104_s30 + $0x60] sm:$0xff]  }
  0x60   : > { %v1032_v52 = vshll.u32 %v2833_v41, 16  ;;  %v1030_v57 = vshrl.u32 %v2833_v41, 16  ;;  %v1190_v8 = vrot.slane %v2833_v41, 1 }
  0x61   : > { %v1647_v42 = vsel %vm704_vm0, %v1645_v36, %v1646_v37 }
  0x62   : > { %v1034_v58 = vrot.slane %v1032_v52, 1  ;;  %v1192_v21 = vsel %vm704_vm0, %v1190_v8, %v1191_v11 }
  0x63   : > { %763 = vrot.lane.b32.xlu1 %v722_v45, %s3016_s6  ;;  %761 = vrot.lane.b32.xlu0 %v719_v48, %s3016_s6  ;;  %v2834_v45 = vld [vmem:[%s3104_s30 + $0x54] sm:$0xff]   ;;  %v723_v48 = vrot.slane %v3270_v0, 1  ;;  %v3328_v0 = vld [vmem:[%s3104_s30 + $0x6c] sm:$0xff]  }
  0x64   : > { %v1018_v61 = vshrl.u32 %v2834_v45, 16  ;;  %v1496_v9 = vshll.u32 %v3328_v0, 16  ;;  %v1494_v19 = vshrl.u32 %v3328_v0, 16 }
  0x65   : > { %v725_v60 = vsel %vm704_vm0, %v723_v48, %v724_v49  ;;  %v1652_v49 = vrot.slane %v2840_v15, 1 }
  0x66   : > { %v1498_v20 = vrot.slane %v1496_v9, 1 }
  0x67   : > { %875 = vrot.lane.b32.xlu1 %v3225_v29, %s3014_s4  ;;  %873 = vrot.lane.b32.xlu0 %v3231_v30, %s3014_s4  ;;  %v562_v29 = vrot.slane %v560_v23, 1  ;;  %v569_v30 = vrot.slane %v567_v26, 1  ;;  %v3354_v23 = vld [vmem:[%s3104_s30 + $0x6c] sm:$0xff]  }
  0x68   : > { %v591_v36 = vshll.u32 %v3354_v23, 16  ;;  %v589_v43 = vshrl.u32 %v3354_v23, 16 }
  0x69   : > { %v563_v38 = vsel %vm479_vm1, %v558_v33, %v562_v29  ;;  %v570_v39 = vor.u32 %v569_v30, %v565_v31  ;;  %v577_v29 = vshrl.u32 %v3336_v7, 16  ;;  %v581_v31 = vrot.slane %v579_v18, 1 }
  0x6a   : > { %v1499_v30 = vor.u32 %v1498_v20, %v1494_v19  ;;  %v593_v44 = vrot.slane %v591_v36, 1  ;;  %v3416_v20 = vld [vmem:[%s3104_s30 + $0x84] sm:$0xff]   ;;  %v3431_v36 = vld [vmem:[%s3104_s30 + $0x8c] ss:$0 sps:$4 sm:$0x11]  }
  0x6b   : > { %1147 = vrot.lane.b32.xlu1 %v1016_v1, %s3018_s8  ;;  %1145 = vrot.lane.b32.xlu0 %v1004_v5, %s3018_s8  ;;  %v575_v50 = vsel %vm479_vm1, %v570_v39, %v574_v40  ;;  %v1035_v1 = vor.u32 %v1034_v58, %v1030_v57  ;;  %v2838_v5 = vld [vmem:[%s3104_s30 + $0x60] sm:$0xff]   ;;  %v582_v40 = vor.u32 %v581_v31, %v577_v29  ;;  %v1655_v57 = vrot.slane %v3333_v6, 1  ;;  %v3385_v58 = vld [vmem:[%s3104_s30 + $0x6c] sm:$0xff]  }
  0x6c   : > { %v1484_v16 = vshll.u32 %v2838_v5, 16  ;;  %v1482_v25 = vshrl.u32 %v2838_v5, 16  ;;  %v1651_v48 = vrot.slane %v2838_v5, 1  ;;  %v594_v51 = vor.u32 %v593_v44, %v589_v43  ;;  %v3423_v29 = vld [vmem:[%s3104_s30 + $0x78] sm:$0xff]  }
  0x6d   : > { %v1040_v10 = vsel %vm479_vm1, %v1035_v1, %v1039_v2 }
  0x6e   : > { %v1486_v26 = vrot.slane %v1484_v16, 1 }
  0x6f   : > { %1227 = vrot.lane.b32.xlu1 %v1186_v12, %s3015_s5  ;;  %1225 = vrot.lane.b32.xlu0 %v1183_v17, %s3015_s5  ;;  %v1187_v12 = vrot.slane %v2834_v45, 1  ;;  %v1501_v17 = vshll.u32 %v3333_v6, 16  ;;  %v1044_v6 = vshll.u32 %v3385_v58, 16 }
  0x70   : > { %v1487_v37 = vor.u32 %v1486_v26, %v1482_v25 }
  0x71   : > { %v1189_v24 = vsel %vm704_vm0, %v1187_v12, %v1188_v13  ;;  %v1503_v28 = vrot.slane %v1501_v17, 1  ;;  %v1046_v15 = vrot.slane %v1044_v6, 1  ;;  %v2892_v17 = vld [vmem:[%s3104_s30] sm:$0xff]  }
  0x73   : > { %1339 = vrot.lane.b32.xlu1 %v3254_v55, %s3019_s9  ;;  %1337 = vrot.lane.b32.xlu0 %v3257_v56, %s3019_s9  ;;  %v1020_v55 = vshll.u32 %v2834_v45, 16  ;;  %v728_v56 = vsel %vm704_vm0, %v726_v46, %v727_v47  ;;  %v1504_v39 = vsel %vm479_vm1, %v1499_v30, %v1503_v28 }
  0x75   : > { %v1022_v62 = vrot.slane %v1020_v55, 1  ;;  %v1653_v55 = vsel %vm704_vm0, %v1651_v48, %v1652_v49  ;;  %v1508_v48 = vshll.u32 %v3423_v29, 16 }
  0x77   : > { %1611 = vrot.lane.b32.xlu1 %v1480_v32, %s3020_s10  ;;  %1609 = vrot.lane.b32.xlu0 %v1468_v35, %s3020_s10  ;;  %v1023_v3 = vor.u32 %v1022_v62, %v1018_v61  ;;  %v2844_v35 = vld [vmem:[%s3104_s30 + $0x74] ss:$0 sps:$4 sm:$0x11]   ;;  %v3390_v61 = vld [vmem:[%s3104_s30 + $0x80] ss:$0 sps:$4 sm:$0x11]  }
  0x78   : > { %v733_v63 = vrot.slane %v2844_v35, 1  ;;  %v1061_v11 = vshll.u32 %v3390_v61, 16 }
  0x79   : > { %v1028_v14 = vsel %vm479_vm1, %v1023_v3, %v1027_v4  ;;  %v729_v3 = vrot.slane %v3336_v7, 1  ;;  %v730_v4 = vrot.slane %v3351_v22, 1 }
  0x7b   : > { %684 = vrot.lane.b32.xlu1 %v563_v38, %s3017_s7  ;;  %1689 = vrot.lane.b32.xlu0 %v1647_v42, %s3021_s11  ;;  %v1491_v38 = vrot.slane %v1489_v27, 1  ;;  %v586_v42 = vrot.slane %v584_v34, 1  ;;  %v731_v13 = vsel %vm704_vm0, %v729_v3, %v730_v4  ;;  %v1197_v34 = vrot.slane %v3390_v61, 1 }
  0x7d   : > { %v1492_v47 = vsel %vm479_vm1, %v1487_v37, %v1491_v38  ;;  %v1520_v37 = vshll.u32 %v3416_v20, 16  ;;  %v3435_v38 = vld [vmem:[%s3104_s30 + $0x78] sm:$0xff]  }
  0x7f   : > { %686 = vrot.lane.b32.xlu1 %v575_v50, %s3017_s7  ;;  %1691 = vrot.lane.b32.xlu0 %v1650_v53, %s3021_s11  ;;  %v587_v50 = vsel %vm479_vm1, %v582_v40, %v586_v42  ;;  %v3379_v53 = vld [vmem:[%s3104_s30 + $0x78] sm:$0xff]   ;;  %v1193_v42 = vrot.slane %v3385_v58, 1 }
  0x80   : > { %v1056_v1 = vshll.u32 %v3379_v53, 16  ;;  %v1054_v9 = vshrl.u32 %v3379_v53, 16  ;;  %v1196_v30 = vrot.slane %v3379_v53, 1 }
  0x82   : > { %v1058_v7 = vrot.slane %v1056_v1, 1 }
  0x83   : > { %767 = vrot.lane.b32.xlu1 %v728_v56, %s3016_s6  ;;  %765 = vrot.lane.b32.xlu0 %v725_v60, %s3016_s6  ;;  %v1654_v56 = vrot.slane %v3328_v0, 1  ;;  %v732_v60 = vrot.slane %v3354_v23, 1 }
  0x84   : > { %v1059_v23 = vor.u32 %v1058_v7, %v1054_v9 }
  0x87   : > { %879 = vrot.lane.b32.xlu1 %v2833_v41, %s3014_s4  ;;  %877 = vrot.lane.b32.xlu0 %v2834_v45, %s3014_s4  ;;  %v596_v45 = vshll.u32 %v2844_v35, 16 }
  0x89   : > { %v598_v52 = vrot.slane %v596_v45, 1 }
  0x8b   : > { %1151 = vrot.lane.b32.xlu1 %v1040_v10, %s3018_s8  ;;  %1149 = vrot.lane.b32.xlu0 %v1028_v14, %s3018_s8  ;;  %v599_v62 = vsel %vm479_vm1, %v594_v51, %v598_v52  ;;  %v734_v10 = vsel %vm704_vm0, %v732_v60, %v733_v63  ;;  %v1042_v14 = vshrl.u32 %v3385_v58, 16  ;;  %v1518_v51 = vshrl.u32 %v3416_v20, 16 }
  0x8c   : > { %v1522_v52 = vrot.slane %v1520_v37, 1 }
  0x8d   : > { %v1047_v27 = vor.u32 %v1046_v15, %v1042_v14 }
  0x8e   : > { %v1523_v4 = vor.u32 %v1522_v52, %v1518_v51 }
  0x8f   : > { %1231 = vrot.lane.b32.xlu1 %v1192_v21, %s3015_s5  ;;  %1229 = vrot.lane.b32.xlu0 %v1189_v24, %s3015_s5  ;;  %v2893_v21 = vld [vmem:[%s3104_s30 + $0xc] sm:$0xff]   ;;  %v1063_v24 = vrot.slane %v1061_v11, 1 }
  0x90   : > { %v3359_v32 = vpop.permute.xlu1 %867  ;;  %v3361_v33 = vpop.permute.xlu0 %865 }
  0x91   : > { %v1064_v40 = vsel %vm479_vm1, %v1059_v23, %v1063_v24 }
  0x93   : > { %1343 = vrot.lane.b32.xlu1 %v3328_v0, %s3019_s9  ;;  %1341 = vrot.lane.b32.xlu0 %v2838_v5, %s3019_s9  ;;  %v1656_v0 = vsel %vm704_vm0, %v1654_v56, %v1655_v57  ;;  %v3401_v5 = vld [vmem:[%s3104_s30 + $0x74] ss:$0 sps:$4 sm:$0x11]   ;;  %v1506_v56 = vshrl.u32 %v3423_v29, 16 }
  0x94   : > { %v3371_v41 = vpop.permute.xlu0 %1217  ;;  %v1049_v16 = vshll.u32 %v3401_v5, 16  ;;  %v1194_v43 = vrot.slane %v3401_v5, 1  ;;  %v3463_v57 = vld [vmem:[%s3104_s30 + $0x80] ss:$0 sps:$4 sm:$0x11]  }
  0x95   : > { %v754_v46 = vpop.permute.xlu1 %753  ;;  %v608_v9 = vshll.u32 %v3463_v57, 16 }
  0x96   : > { %v1051_v28 = vrot.slane %v1049_v16, 1 }
  0x97   : > { %1615 = vrot.lane.b32.xlu1 %v1504_v39, %s3020_s10  ;;  %1613 = vrot.lane.b32.xlu0 %v1492_v47, %s3020_s10  ;;  %v3447_v47 = vld [vmem:[%s3104_s30 + $0x80] ss:$0 sps:$4 sm:$0x11]  }
  0x99   : > { %v756_v54 = vpop.permute.xlu1 %755  ;;  %v673_v59 = vpop.permute.xlu0 %672 }
  0x9a   : > { %v1715_v18 = vsel %vm1713_vm3, %v2892_v17, %v673_v59 }
  0x9b   : > { %688 = vrot.lane.b32.xlu1 %v587_v50, %s3017_s7  ;;  %1693 = vrot.lane.b32.xlu0 %v1653_v55, %s3021_s11  ;;  %v1748_v25 = vsel %vm1746_vm4, %v1715_v18, %v754_v46  ;;  %v1052_v46 = vsel %vm479_vm1, %v1047_v27, %v1051_v28  ;;  %v1198_v50 = vsel %vm704_vm0, %v1196_v30, %v1197_v34  ;;  %v1658_v27 = vrot.slane %v3447_v47, 1 }
  0x9c   : > { %v1781_v39 = vsel %vm1779_vm5, %v1748_v25, %v3361_v33 }
  0x9d   : > { %v3395_v2 = vpop.permute.xlu1 %1219  ;;  %v675_v8 = vpop.permute.xlu0 %674 }
  0x9e   : > { %v1717_v22 = vsel %vm1713_vm3, %v2893_v21, %v675_v8 }
  0x9f   : > { %690 = vrot.lane.b32.xlu1 %v599_v62, %s3017_s7  ;;  %1695 = vrot.lane.b32.xlu0 %v1656_v0, %s3021_s11  ;;  %v1750_v35 = vsel %vm1746_vm4, %v1717_v22, %v756_v54  ;;  %v603_v54 = vshll.u32 %v3435_v38, 16  ;;  %v1510_v62 = vrot.slane %v1508_v48, 1  ;;  %v601_v0 = vshrl.u32 %v3435_v38, 16 }
  0xa0   : > { %v1783_v33 = vsel %vm1779_vm5, %v1750_v35, %v3359_v32  ;;  %v1195_v32 = vsel %vm704_vm0, %v1193_v42, %v1194_v43  ;;  %v3505_v35 = vld [vmem:[%s3104_s30 + $0x90] sm:$0xff]   ;;  %v2861_v42 = vld [vmem:[%s3104_s30 + $0x84] sm:$0xff]  }
  0xa1   : > { %v1140_v12 = vpop.permute.xlu1 %1139  ;;  %v1138_v19 = vpop.permute.xlu0 %1137  ;;  %v605_v6 = vrot.slane %v603_v54, 1  ;;  %v1080_v48 = vshll.u32 %v3505_v35, 16  ;;  %v1068_v51 = vshll.u32 %v2861_v42, 16  ;;  %v1078_v54 = vshrl.u32 %v3505_v35, 16 }
  0xa2   : > { %v1814_v44 = vsel %vm1812_vm6, %v1781_v39, %v1138_v19  ;;  %v1816_v59 = vsel %vm1812_vm6, %v1783_v33, %v1140_v12  ;;  %v610_v19 = vrot.slane %v608_v9, 1  ;;  %v1202_v9 = vrot.slane %v3505_v35, 1 }
  0xa3   : > { %771 = vrot.lane.b32.xlu1 %v734_v10, %s3016_s6  ;;  %769 = vrot.lane.b32.xlu0 %v731_v13, %s3016_s6  ;;  %v1847_v55 = vsel %vm1845_vm7, %v1814_v44, %v3371_v41  ;;  %v1513_v41 = vshll.u32 %v3447_v47, 16  ;;  %v1849_v8 = vsel %vm1845_vm7, %v1816_v59, %v3395_v2  ;;  %v2859_v10 = vld [vmem:[%s3104_s30 + $0x8c] ss:$0 sps:$4 sm:$0x11]   ;;  %v1511_v13 = vor.u32 %v1510_v62, %v1506_v56 }
  0xa4   : > { %v606_v18 = vor.u32 %v605_v6, %v601_v0  ;;  %v620_v23 = vshll.u32 %v2859_v10, 16  ;;  %v2862_v47 = vld [vmem:[%s3104_s30 + $0x98] ss:$0 sps:$4 sm:$0x11]   ;;  %v3538_v6 = vld [vmem:[%s3104_s30 + $0x90] sm:$0xff]  }
  0xa5   : > { %v1332_v26 = vpop.permute.xlu1 %1331  ;;  %v1330_v31 = vpop.permute.xlu0 %1329  ;;  %v1515_v14 = vrot.slane %v1513_v41, 1 }
  0xa6   : > { %v1880_v60 = vsel %vm1878_vm8, %v1847_v55, %v1330_v31  ;;  %v1882_v11 = vsel %vm1878_vm8, %v1849_v8, %v1332_v26  ;;  %v1657_v26 = vrot.slane %v3423_v29, 1  ;;  %v611_v31 = vsel %vm479_vm1, %v606_v18, %v610_v19 }
  0xa7   : > { %883 = vrot.lane.b32.xlu1 %v3379_v53, %s3014_s4  ;;  %881 = vrot.lane.b32.xlu0 %v3385_v58, %s3014_s4  ;;  %v1525_v53 = vshll.u32 %v3431_v36, 16  ;;  %v3466_v58 = vld [vmem:[%s3104_s30 + $0x84] sm:$0xff]   ;;  %v1516_v25 = vsel %vm479_vm1, %v1511_v13, %v1515_v14  ;;  %v622_v34 = vrot.slane %v620_v23, 1  ;;  %v1082_v55 = vrot.slane %v1080_v48, 1 }
  0xa8   : > { %v615_v7 = vshll.u32 %v3466_v58, 16  ;;  %v613_v21 = vshrl.u32 %v3466_v58, 16  ;;  %v1659_v39 = vsel %vm704_vm0, %v1657_v26, %v1658_v27  ;;  %v3544_v13 = vld [vmem:[%s3104_s30 + $0xa4] ss:$0 sps:$4 sm:$0x11]   ;;  %v1532_v23 = vshll.u32 %v3538_v6, 16 }
  0xa9   : > { %v1604_v45 = vpop.permute.xlu1 %1603  ;;  %v1602_v49 = vpop.permute.xlu0 %1601  ;;  %v1527_v5 = vrot.slane %v1525_v53, 1 }
  0xaa   : > { %v1913_v63 = vsel %vm1911_vm9, %v1880_v60, %v1602_v49  ;;  %v1915_v15 = vsel %vm1911_vm9, %v1882_v11, %v1604_v45  ;;  %v617_v22 = vrot.slane %v615_v7, 1  ;;  %v738_v45 = vrot.slane %v3466_v58, 1 }
  0xab   : > { %1155 = vrot.lane.b32.xlu1 %v1064_v40, %s3018_s8  ;;  %1153 = vrot.lane.b32.xlu0 %v1052_v46, %s3018_s8  ;;  %v1528_v17 = vsel %vm479_vm1, %v1523_v4, %v1527_v5  ;;  %v1661_v40 = vrot.slane %v3431_v36, 1  ;;  %v739_v46 = vrot.slane %v2859_v10, 1  ;;  %v735_v36 = vrot.slane %v3435_v38, 1 }
  0xac   : > { %v618_v30 = vor.u32 %v617_v22, %v613_v21  ;;  %v736_v49 = vrot.slane %v3463_v57, 1  ;;  %v1066_v57 = vshrl.u32 %v2861_v42, 16  ;;  %v1070_v60 = vrot.slane %v1068_v51, 1  ;;  %v3558_v22 = vld [vmem:[%s3104_s30 + $0x98] ss:$0 sps:$4 sm:$0x11]  }
  0xad   : > { %v3470_v61 = vpop.permute.xlu1 %676  ;;  %v1682_v1 = vpop.permute.xlu0 %1681  ;;  %v740_v53 = vsel %vm704_vm0, %v738_v45, %v739_v46  ;;  %v1203_v10 = vrot.slane %v2862_v47, 1  ;;  %v1199_v7 = vrot.slane %v2861_v42, 1  ;;  %v1537_v48 = vshll.u32 %v3558_v22, 16 }
  0xae   : > { %v1946_v3 = vsel %vm1944_vm10, %v1913_v63, %v1682_v1  ;;  %v623_v44 = vsel %vm479_vm1, %v618_v30, %v622_v34  ;;  %v737_v59 = vsel %vm704_vm0, %v735_v36, %v736_v49  ;;  %v3534_v63 = vld [vmem:[%s3104_s30 + $0x9c] sm:$0xff]   ;;  %v1083_v1 = vor.u32 %v1082_v55, %v1078_v54 }
  0xaf   : > { %1235 = vrot.lane.b32.xlu1 %v1198_v50, %s3015_s5  ;;  %1233 = vrot.lane.b32.xlu0 %v1195_v32, %s3015_s5  ;;  %v2863_v50 = vld [vmem:[%s3104_s30 + $0x8c] ss:$0 sps:$4 sm:$0x11]   ;;  %v1085_v32 = vshll.u32 %v2862_v47, 16  ;;  %v1071_v4 = vor.u32 %v1070_v60, %v1066_v57  ;;  %v1544_v14 = vshll.u32 %v3534_v63, 16  ;;  %v1204_v26 = vsel %vm704_vm0, %v1202_v9, %v1203_v10 }
  0xb0   : > { %2684 = vmatprep.mubr.msk.bf16.mxu0 %vm1997_vm11, %v1946_v3  ;;  %v1073_v62 = vshll.u32 %v2863_v50, 16  ;;  %v1200_v11 = vrot.slane %v2863_v50, 1  ;;  %v1549_v34 = vshll.u32 %v3544_v13, 16 }
  0xb1   : > { %v3485_v12 = vpop.permute.xlu1 %678  ;;  %v1684_v16 = vpop.permute.xlu0 %1683  ;;  %v1087_v0 = vrot.slane %v1085_v32, 1  ;;  %v1546_v30 = vrot.slane %v1544_v14, 1  ;;  %v2871_v32 = vld [vmem:[%s3104_s30 + $0xa4] ss:$0 sps:$4 sm:$0x11]   ;;  %v1664_v14 = vrot.slane %v3558_v22, 1 }
  0xb2   : > { %v1948_v2 = vsel %vm1944_vm10, %v1915_v15, %v1684_v16  ;;  %v1075_v5 = vrot.slane %v1073_v62, 1  ;;  %v2894_v15 = vld [vmem:[%s3104_s30 + $0x18] sm:$0xff]   ;;  %v1201_v27 = vsel %vm704_vm0, %v1199_v7, %v1200_v11  ;;  %v1539_v62 = vrot.slane %v1537_v48, 1 }
  0xb3   : > { %1347 = vrot.lane.b32.xlu1 %v3416_v20, %s3019_s9  ;;  %1345 = vrot.lane.b32.xlu0 %v3423_v29, %s3019_s9  ;;  %v1660_v29 = vrot.slane %v3416_v20, 1  ;;  %v1719_v16 = vsel %vm1713_vm3, %v2894_v15, %v3470_v61  ;;  %v644_v9 = vshll.u32 %v2871_v32, 16  ;;  %v1663_v11 = vrot.slane %v3538_v6, 1 }
  0xb4   : > { %2685 = vmatmul.mubr.msk.bf16.vlgmr.msra.gmra.mrb[0].mxu0 %vm1997_vm11, %v1948_v2  ;;  %v1088_v2 = vsel %vm479_vm1, %v1083_v1, %v1087_v0  ;;  %v1076_v21 = vsel %vm479_vm1, %v1071_v4, %v1075_v5  ;;  %v1667_v22 = vrot.slane %v3544_v13, 1 }
  0xb5   : > { %v3496_v24 = vpop.permute.xlu1 %759  ;;  %v758_v28 = vpop.permute.xlu0 %757  ;;  %v1662_v20 = vsel %vm704_vm0, %v1660_v29, %v1661_v40  ;;  %v1530_v40 = vshrl.u32 %v3538_v6, 16 }
  0xb6   : > { %v1752_v18 = vsel %vm1746_vm4, %v1719_v16, %v758_v28  ;;  %v1542_v28 = vshrl.u32 %v3534_v63, 16 }
  0xb7   : > { %1619 = vrot.lane.b32.xlu1 %v1528_v17, %s3020_s10  ;;  %1617 = vrot.lane.b32.xlu0 %v1516_v25, %s3020_s10  ;;  %v3553_v17 = vld [vmem:[%s3104_s30 + $0x90] sm:$0xff]  }
  0xb8   : > { %v625_v50 = vshrl.u32 %v3553_v17, 16  ;;  %v741_v13 = vrot.slane %v3553_v17, 1 }
  0xb9   : > { %v3507_v37 = vpop.permute.xlu1 %871  ;;  %v870_v43 = vpop.permute.xlu0 %869 }
  0xba   : > { %v1785_v25 = vsel %vm1779_vm5, %v1752_v18, %v870_v43  ;;  %v627_v43 = vshll.u32 %v3553_v17, 16  ;;  %v646_v18 = vrot.slane %v644_v9, 1 }
  0xbb   : > { %692 = vrot.lane.b32.xlu1 %v611_v31, %s3017_s7  ;;  %1697 = vrot.lane.b32.xlu0 %v1659_v39, %s3021_s11 }
  0xbd   : > { %v3519_v33 = vpop.permute.xlu1 %1143  ;;  %v1142_v52 = vpop.permute.xlu0 %1141 }
  0xbe   : > { %v1818_v31 = vsel %vm1812_vm6, %v1785_v25, %v1142_v52  ;;  %v1547_v52 = vor.u32 %v1546_v30, %v1542_v28  ;;  %v3631_v25 = vld [vmem:[%s3104_s30 + $0x9c] sm:$0xff]   ;;  %v2874_v28 = vld [vmem:[%s3104_s30 + $0xb0] ss:$0 sps:$4 sm:$0x11]  }
  0xbf   : > { %694 = vrot.lane.b32.xlu1 %v623_v44, %s3017_s7  ;;  %1699 = vrot.lane.b32.xlu0 %v1662_v20, %s3021_s11  ;;  %v3579_v44 = vld [vmem:[%s3104_s30 + $0x9c] sm:$0xff]  }
  0xc0   : > { %v637_v4 = vshrl.u32 %v3579_v44, 16 }
  0xc1   : > { %v3529_v56 = vpop.permute.xlu1 %1223  ;;  %v1222_v41 = vpop.permute.xlu0 %1221 }
  0xc2   : > { %v1851_v29 = vsel %vm1845_vm7, %v1818_v31, %v1222_v41  ;;  %v745_v31 = vrot.slane %v2871_v32, 1 }
  0xc3   : > { %775 = vrot.lane.b32.xlu1 %v740_v53, %s3016_s6  ;;  %773 = vrot.lane.b32.xlu0 %v737_v59, %s3016_s6  ;;  %v1551_v53 = vrot.slane %v1549_v34, 1  ;;  %v639_v59 = vshll.u32 %v3579_v44, 16 }
  0xc5   : > { %v1336_v3 = vpop.permute.xlu1 %1335  ;;  %v1334_v8 = vpop.permute.xlu0 %1333  ;;  %v1552_v0 = vsel %vm479_vm1, %v1547_v52, %v1551_v53 }
  0xc6   : > { %v1884_v46 = vsel %vm1878_vm8, %v1851_v29, %v1334_v8  ;;  %v641_v8 = vrot.slane %v639_v59, 1  ;;  %v1092_v29 = vshll.u32 %v3631_v25, 16 }
  0xc7   : > { %887 = vrot.lane.b32.xlu1 %v3505_v35, %s3014_s4  ;;  %885 = vrot.lane.b32.xlu0 %v2861_v42, %s3014_s4  ;;  %v2895_v35 = vld [vmem:[%s3104_s30 + $0x24] sm:$0xff]   ;;  %v3575_v42 = vld [vmem:[%s3104_s30 + $0x98] ss:$0 sps:$4 sm:$0x11]  }
  0xc8   : > { %v1721_v39 = vsel %vm1713_vm3, %v2895_v35, %v3485_v12  ;;  %v1534_v12 = vrot.slane %v1532_v23, 1  ;;  %v632_v55 = vshll.u32 %v3575_v42, 16  ;;  %v1665_v23 = vsel %vm704_vm0, %v1663_v11, %v1664_v14 }
  0xc9   : > { %v1608_v19 = vpop.permute.xlu1 %1607  ;;  %v1606_v61 = vpop.permute.xlu0 %1605  ;;  %v1754_v45 = vsel %vm1746_vm4, %v1721_v39, %v3496_v24  ;;  %v742_v35 = vrot.slane %v3575_v42, 1  ;;  %v2875_v39 = vld [vmem:[%s3104_s30 + $0xa4] ss:$0 sps:$4 sm:$0x11]  }
  0xca   : > { %v1787_v20 = vsel %vm1779_vm5, %v1754_v45, %v3507_v37  ;;  %v1917_v36 = vsel %vm1911_vm9, %v1884_v46, %v1606_v61  ;;  %v629_v37 = vrot.slane %v627_v43, 1  ;;  %v1535_v60 = vor.u32 %v1534_v12, %v1530_v40 }
  0xcb   : > { %1159 = vrot.lane.b32.xlu1 %v1088_v2, %s3018_s8  ;;  %1157 = vrot.lane.b32.xlu0 %v1076_v21, %s3018_s8  ;;  %v1820_v51 = vsel %vm1812_vm6, %v1787_v20, %v3519_v33  ;;  %v634_v5 = vrot.slane %v632_v55, 1  ;;  %v642_v2 = vor.u32 %v641_v8, %v637_v4  ;;  %v1109_v12 = vshll.u32 %v2874_v28, 16  ;;  %v3660_v55 = vld [vmem:[%s3104_s30 + $0xa8] sm:$0xff]  }
  0xcc   : > { %v1853_v54 = vsel %vm1845_vm7, %v1820_v51, %v3529_v56  ;;  %v1540_v7 = vsel %vm479_vm1, %v1535_v60, %v1539_v62  ;;  %v743_v42 = vsel %vm704_vm0, %v741_v13, %v742_v35  ;;  %v1090_v20 = vshrl.u32 %v3631_v25, 16  ;;  %v3656_v51 = vld [vmem:[%s3104_s30 + $0xb4] sm:$0xff]  }
  0xcd   : > { %v3584_v47 = vpop.permute.xlu1 %680  ;;  %v1686_v49 = vpop.permute.xlu0 %1685  ;;  %v1886_v33 = vsel %vm1878_vm8, %v1853_v54, %v1336_v3  ;;  %v630_v3 = vor.u32 %v629_v37, %v625_v50  ;;  %v1111_v52 = vrot.slane %v1109_v12, 1  ;;  %v1205_v60 = vrot.slane %v3631_v25, 1 }
  0xce   : > { %v1950_v24 = vsel %vm1944_vm10, %v1917_v36, %v1686_v49  ;;  %v1919_v41 = vsel %vm1911_vm9, %v1886_v33, %v1608_v19  ;;  %v3623_v19 = vld [vmem:[%s3104_s30 + $0xa8] sm:$0xff]   ;;  %v1094_v36 = vrot.slane %v1092_v29, 1  ;;  %v1097_v49 = vshll.u32 %v2875_v39, 16 }
  0xcf   : > { %1239 = vrot.lane.b32.xlu1 %v1204_v26, %s3015_s5  ;;  %1237 = vrot.lane.b32.xlu0 %v1201_v27, %s3015_s5  ;;  %v635_v16 = vsel %vm479_vm1, %v630_v3, %v634_v5  ;;  %v647_v26 = vsel %vm479_vm1, %v642_v2, %v646_v18  ;;  %v744_v27 = vrot.slane %v3579_v44, 1  ;;  %v1104_v30 = vshll.u32 %v3623_v19, 16  ;;  %v3677_v3 = vld [vmem:[%s3104_s30 + $0xa8] sm:$0xff]  }
  0xd0   : > { %2688 = vmatprep.mubr.msk.bf16.mxu0 %vm1997_vm11, %v1950_v24  ;;  %v1102_v45 = vshrl.u32 %v3623_v19, 16  ;;  %v1095_v54 = vor.u32 %v1094_v36, %v1090_v20  ;;  %v1099_v37 = vrot.slane %v1097_v49, 1  ;;  %v1208_v59 = vrot.slane %v3623_v19, 1  ;;  %v2883_v20 = vld [vmem:[%s3104_s30 + $0xbc] ss:$0 sps:$4 sm:$0x11]  }
  0xd1   : > { %v3603_v57 = vpop.permute.xlu1 %682  ;;  %v1688_v1 = vpop.permute.xlu0 %1687  ;;  %v746_v43 = vsel %vm704_vm0, %v744_v27, %v745_v31  ;;  %v1106_v46 = vrot.slane %v1104_v30, 1  ;;  %v1209_v33 = vrot.slane %v2874_v28, 1  ;;  %v1206_v62 = vrot.slane %v2875_v39, 1  ;;  %v3703_v31 = vld [vmem:[%s3104_s30 + $0xb4] sm:$0xff]  }
  0xd2   : > { %v1952_v56 = vsel %vm1944_vm10, %v1919_v41, %v1688_v1  ;;  %v3667_v41 = vld [vmem:[%s3104_s30 + $0xbc] ss:$0 sps:$4 sm:$0x11]   ;;  %v1568_v1 = vshll.u32 %v3656_v51, 16  ;;  %v1100_v9 = vsel %vm479_vm1, %v1095_v54, %v1099_v37  ;;  %v1556_v11 = vshll.u32 %v3660_v55, 16 }
  0xd3   : > { %1351 = vrot.lane.b32.xlu1 %v3534_v63, %s3019_s9  ;;  %1349 = vrot.lane.b32.xlu0 %v3538_v6, %s3019_s9  ;;  %v1666_v6 = vrot.slane %v3534_v63, 1  ;;  %v1107_v24 = vor.u32 %v1106_v46, %v1102_v45  ;;  %v1566_v2 = vshrl.u32 %v3656_v51, 16  ;;  %v651_v27 = vshll.u32 %v3677_v3, 16 }
  0xd4   : > { %2689 = vmatmul.mubr.msk.bf16.gmra.mrb[4].mxu0 %vm1997_vm11, %v1952_v56  ;;  %v2896_v56 = vld [vmem:[%s3104_s30 + $0x30] sm:$0xff]   ;;  %v663_v36 = vshll.u32 %v3703_v31, 16 }
  0xd5   : > { %v3614_v10 = vpop.permute.xlu1 %763  ;;  %v762_v15 = vpop.permute.xlu0 %761  ;;  %v1668_v63 = vsel %vm704_vm0, %v1666_v6, %v1667_v22  ;;  %v1112_v4 = vsel %vm479_vm1, %v1107_v24, %v1111_v52  ;;  %v2897_v6 = vld [vmem:[%s3104_s30 + $0x3c] sm:$0xff]  }
  0xd6   : > { %v1725_v22 = vsel %vm1713_vm3, %v2897_v6, %v3603_v57  ;;  %v1558_v57 = vrot.slane %v1556_v11, 1  ;;  %v3747_v11 = vld [vmem:[%s3104_s30 + $0xc0] sm:$0xff]  }
  0xd7   : > { %1623 = vrot.lane.b32.xlu1 %v1552_v0, %s3020_s10  ;;  %1621 = vrot.lane.b32.xlu0 %v1540_v7, %s3020_s10  ;;  %v1723_v0 = vsel %vm1713_vm3, %v2896_v56, %v3584_v47  ;;  %v3682_v7 = vld [vmem:[%s3104_s30 + $0xb0] ss:$0 sps:$4 sm:$0x11]   ;;  %v1758_v28 = vsel %vm1746_vm4, %v1725_v22, %v3614_v10  ;;  %v1669_v56 = vrot.slane %v3660_v55, 1  ;;  %v1128_v6 = vshll.u32 %v3747_v11, 16 }
  0xd8   : > { %v1756_v5 = vsel %vm1746_vm4, %v1723_v0, %v762_v15  ;;  %v1207_v15 = vsel %vm704_vm0, %v1205_v60, %v1206_v62  ;;  %v1561_v13 = vshll.u32 %v3682_v7, 16  ;;  %v668_v60 = vshll.u32 %v2883_v20, 16 }
  0xd9   : > { %v3625_v21 = vpop.permute.xlu1 %875  ;;  %v874_v61 = vpop.permute.xlu0 %873  ;;  %v1670_v0 = vrot.slane %v3682_v7, 1  ;;  %v1673_v7 = vrot.slane %v3667_v41, 1 }
  0xda   : > { %v1789_v47 = vsel %vm1779_vm5, %v1756_v5, %v874_v61  ;;  %v1554_v61 = vshrl.u32 %v3660_v55, 16  ;;  %v1791_v35 = vsel %vm1779_vm5, %v1758_v28, %v3625_v21  ;;  %v653_v21 = vrot.slane %v651_v27, 1 }
  0xdb   : > { %696 = vrot.lane.b32.xlu1 %v635_v16, %s3017_s7  ;;  %1701 = vrot.lane.b32.xlu0 %v1665_v23, %s3021_s11  ;;  %v1210_v16 = vsel %vm704_vm0, %v1208_v59, %v1209_v33  ;;  %v1573_v23 = vshll.u32 %v3667_v41, 16  ;;  %v1563_v24 = vrot.slane %v1561_v13, 1  ;;  %v665_v33 = vrot.slane %v663_v36, 1  ;;  %v3778_v36 = vld [vmem:[%s3104_s30 + $0xc0] sm:$0xff]  }
  0xdc   : > { %v747_v41 = vrot.slane %v3677_v3, 1  ;;  %v1130_v13 = vrot.slane %v1128_v6, 1 }
  0xdd   : > { %v3639_v34 = vpop.permute.xlu1 %1147  ;;  %v1146_v40 = vpop.permute.xlu0 %1145  ;;  %v1575_v46 = vrot.slane %v1573_v23, 1  ;;  %v2886_v23 = vld [vmem:[%s3104_s30 + $0xc8] ss:$0 sps:$4 sm:$0x11]  }
  0xde   : > { %v1822_v18 = vsel %vm1812_vm6, %v1789_v47, %v1146_v40  ;;  %v649_v40 = vshrl.u32 %v3677_v3, 16 }
  0xdf   : > { %698 = vrot.lane.b32.xlu1 %v647_v26, %s3017_s7  ;;  %1703 = vrot.lane.b32.xlu0 %v1668_v63, %s3021_s11  ;;  %v3699_v26 = vld [vmem:[%s3104_s30 + $0xb0] ss:$0 sps:$4 sm:$0x11]  }
  0xe1   : > { %v3650_v48 = vpop.permute.xlu1 %1227  ;;  %v1226_v50 = vpop.permute.xlu0 %1225 }
  0xe3   : > { %779 = vrot.lane.b32.xlu1 %v746_v43, %s3016_s6  ;;  %777 = vrot.lane.b32.xlu0 %v743_v42, %s3016_s6  ;;  %v1824_v43 = vsel %vm1812_vm6, %v1791_v35, %v3639_v34  ;;  %v656_v42 = vshll.u32 %v3699_v26, 16  ;;  %v1133_v35 = vshll.u32 %v2886_v23, 16 }
  0xe4   : > { %v1857_v12 = vsel %vm1845_vm7, %v1824_v43, %v3650_v48 }
  0xe5   : > { %v1340_v53 = vpop.permute.xlu1 %1339  ;;  %v1338_v32 = vpop.permute.xlu0 %1337  ;;  %v658_v59 = vrot.slane %v656_v42, 1 }
  0xe6   : > { %v1890_v34 = vsel %vm1878_vm8, %v1857_v12, %v1340_v53  ;;  %v654_v53 = vor.u32 %v653_v21, %v649_v40  ;;  %v3775_v12 = vld [vmem:[%s3104_s30 + $0xcc] sm:$0xff]  }
  0xe7   : > { %891 = vrot.lane.b32.xlu1 %v3623_v19, %s3014_s4  ;;  %889 = vrot.lane.b32.xlu0 %v3631_v25, %s3014_s4  ;;  %v1570_v19 = vrot.slane %v1568_v1, 1  ;;  %v1855_v25 = vsel %vm1845_vm7, %v1822_v18, %v1226_v50  ;;  %v1559_v50 = vor.u32 %v1558_v57, %v1554_v61  ;;  %v2887_v61 = vld [vmem:[%s3104_s30 + $0xbc] ss:$0 sps:$4 sm:$0x11]   ;;  %v1126_v57 = vshrl.u32 %v3747_v11, 16 }
  0xe8   : > { %v1888_v30 = vsel %vm1878_vm8, %v1855_v25, %v1338_v32  ;;  %v661_v32 = vshrl.u32 %v3703_v31, 16  ;;  %v659_v5 = vsel %vm479_vm1, %v654_v53, %v658_v59  ;;  %v748_v25 = vrot.slane %v3699_v26, 1 }
  0xe9   : > { %v1612_v8 = vpop.permute.xlu1 %1611  ;;  %v1610_v14 = vpop.permute.xlu0 %1609  ;;  %v1571_v45 = vor.u32 %v1570_v19, %v1566_v2  ;;  %v1564_v1 = vsel %vm479_vm1, %v1559_v50, %v1563_v24  ;;  %v751_v19 = vrot.slane %v2883_v20, 1  ;;  %v1121_v43 = vshll.u32 %v2887_v61, 16 }
  0xea   : > { %v1921_v39 = vsel %vm1911_vm9, %v1888_v30, %v1610_v14  ;;  %v1923_v52 = vsel %vm1911_vm9, %v1890_v34, %v1612_v8  ;;  %v666_v8 = vor.u32 %v665_v33, %v661_v32  ;;  %v1671_v14 = vsel %vm704_vm0, %v1669_v56, %v1670_v0  ;;  %v2891_v56 = vld [vmem:[%s3104_s30 + $0xc8] ss:$0 sps:$4 sm:$0x11]  }
  0xeb   : > { %1163 = vrot.lane.b32.xlu1 %v1112_v4, %s3018_s8  ;;  %1161 = vrot.lane.b32.xlu0 %v1100_v9, %s3018_s8  ;;  %v1576_v37 = vsel %vm479_vm1, %v1571_v45, %v1575_v46  ;;  %v670_v9 = vrot.slane %v668_v60, 1  ;;  %v1131_v45 = vor.u32 %v1130_v13, %v1126_v57  ;;  %v1135_v46 = vrot.slane %v1133_v35, 1 }
  0xec   : > { %v1123_v20 = vrot.slane %v1121_v43, 1  ;;  %v1214_v50 = vrot.slane %v3747_v11, 1  ;;  %v1215_v24 = vrot.slane %v2886_v23, 1  ;;  %v1592_v59 = vshll.u32 %v3775_v12, 16 }
  0xed   : > { %v3708_v63 = vpop.permute.xlu1 %684  ;;  %v1690_v29 = vpop.permute.xlu0 %1689  ;;  %v671_v18 = vsel %vm479_vm1, %v666_v8, %v670_v9  ;;  %v1136_v53 = vsel %vm479_vm1, %v1131_v45, %v1135_v46  ;;  %v1580_v0 = vshll.u32 %v3778_v36, 16  ;;  %v1675_v46 = vrot.slane %v3778_v36, 1 }
  0xee   : > { %v1954_v10 = vsel %vm1944_vm10, %v1921_v39, %v1690_v29  ;;  %v749_v29 = vsel %vm704_vm0, %v747_v41, %v748_v25 }
  0xef   : > { %1243 = vrot.lane.b32.xlu1 %v1210_v16, %s3015_s5  ;;  %1241 = vrot.lane.b32.xlu0 %v1207_v15, %s3015_s5  ;;  %v2885_v16 = vld [vmem:[%s3104_s30 + $0xb4] sm:$0xff]   ;;  %v750_v15 = vrot.slane %v3703_v31, 1  ;;  %v1582_v6 = vrot.slane %v1580_v0, 1  ;;  %v2901_v0 = vld [vmem:[%s3104_s30 + $0x6c] sm:$0xff]  }
  0xf0   : > { %2692 = vmatprep.mubr.msk.bf16.mxu0 %vm1997_vm11, %v1954_v10  ;;  %v1116_v27 = vshll.u32 %v2885_v16, 16  ;;  %v1114_v40 = vshrl.u32 %v2885_v16, 16 }
  0xf1   : > { %v3727_v49 = vpop.permute.xlu1 %686  ;;  %v1692_v54 = vpop.permute.xlu0 %1691  ;;  %v752_v30 = vsel %vm704_vm0, %v750_v15, %v751_v19 }
  0xf2   : > { %v1956_v48 = vsel %vm1944_vm10, %v1923_v52, %v1692_v54  ;;  %v1118_v26 = vrot.slane %v1116_v27, 1  ;;  %v1211_v52 = vrot.slane %v2885_v16, 1  ;;  %v1212_v54 = vrot.slane %v2887_v61, 1 }
  0xf3   : > { %1355 = vrot.lane.b32.xlu1 %v3656_v51, %s3019_s9  ;;  %1353 = vrot.lane.b32.xlu0 %v3660_v55, %s3019_s9  ;;  %v1672_v55 = vrot.slane %v3656_v51, 1 }
  0xf4   : > { %2693 = vmatmul.mubr.msk.bf16.gmra.mrb[8].mxu0 %vm1997_vm11, %v1956_v48  ;;  %v1119_v42 = vor.u32 %v1118_v26, %v1114_v40  ;;  %v3784_v48 = vld [vmem:[%s3104_s30 + $0xd4] ss:$0 sps:$4 sm:$0x11]   ;;  %v1678_v26 = vrot.slane %v3775_v12, 1 }
  0xf5   : > { %v3738_v62 = vpop.permute.xlu1 %767  ;;  %v766_v4 = vpop.permute.xlu0 %765  ;;  %v1674_v51 = vsel %vm704_vm0, %v1672_v55, %v1673_v7  ;;  %v2899_v55 = vld [vmem:[%s3104_s30 + $0x54] sm:$0xff]   ;;  %v1679_v43 = vrot.slane %v3784_v48, 1 }
  0xf6   : > { %v1729_v7 = vsel %vm1713_vm3, %v2899_v55, %v3727_v49 }
  0xf7   : > { %1627 = vrot.lane.b32.xlu1 %v1576_v37, %s3020_s10  ;;  %1625 = vrot.lane.b32.xlu0 %v1564_v1, %s3020_s10  ;;  %v2898_v37 = vld [vmem:[%s3104_s30 + $0x48] sm:$0xff]   ;;  %v1124_v1 = vsel %vm479_vm1, %v1119_v42, %v1123_v20  ;;  %v1762_v15 = vsel %vm1746_vm4, %v1729_v7, %v3738_v62  ;;  %v1680_v20 = vsel %vm704_vm0, %v1678_v26, %v1679_v43 }
  0xf8   : > { %v1727_v32 = vsel %vm1713_vm3, %v2898_v37, %v3708_v63  ;;  %v1216_v63 = vsel %vm704_vm0, %v1214_v50, %v1215_v24 }
  0xf9   : > { %v3749_v47 = vpop.permute.xlu1 %879  ;;  %v878_v2 = vpop.permute.xlu0 %877  ;;  %v1760_v33 = vsel %vm1746_vm4, %v1727_v32, %v766_v4  ;;  %v1597_v4 = vshll.u32 %v3784_v48, 16  ;;  %v2900_v32 = vld [vmem:[%s3104_s30 + $0x60] sm:$0xff]   ;;  %s182_s30 = scalar_lea.vmem [#allocation2], %s3922_s28 }
  0xfa   : > { %v1795_v41 = vsel %vm1779_vm5, %v1762_v15, %v3749_v47 }
  0xfb   : > { %700 = vrot.lane.b32.xlu1 %v659_v5, %s3017_s7  ;;  %1705 = vrot.lane.b32.xlu0 %v1671_v14, %s3021_s11  ;;  %v1793_v5 = vsel %vm1779_vm5, %v1760_v33, %v878_v2  ;;  %v1590_v14 = vshrl.u32 %v3775_v12, 16  ;;  %v1594_v2 = vrot.slane %v1592_v59, 1 }
  0xfd   : > { %v3761_v22 = vpop.permute.xlu1 %1151  ;;  %v1150_v28 = vpop.permute.xlu0 %1149 }
  0xfe   : > { %v1826_v9 = vsel %vm1812_vm6, %v1793_v5, %v1150_v28  ;;  %v1828_v61 = vsel %vm1812_vm6, %v1795_v41, %v3761_v22  ;;  %v1595_v28 = vor.u32 %v1594_v2, %v1590_v14 }
  0xff   : > { %702 = vrot.lane.b32.xlu1 %v671_v18, %s3017_s7  ;;  %1707 = vrot.lane.b32.xlu0 %v1674_v51, %s3021_s11  ;;  %v1578_v18 = vshrl.u32 %v3778_v36, 16  ;;  %v1585_v51 = vshll.u32 %v2891_v56, 16 }
 0x101   : > { %v1232_v39 = vpop.permute.xlu1 %1231  ;;  %v1230_v10 = vpop.permute.xlu0 %1229  ;;  %v1583_v13 = vor.u32 %v1582_v6, %v1578_v18  ;;  %v1587_v35 = vrot.slane %v1585_v51, 1 }
 0x102   : > { %v1861_v62 = vsel %vm1845_vm7, %v1828_v61, %v1232_v39 }
 0x103   : > { %783 = vrot.lane.b32.xlu1 %v752_v30, %s3016_s6  ;;  %781 = vrot.lane.b32.xlu0 %v749_v29, %s3016_s6  ;;  %v1599_v30 = vrot.slane %v1597_v4, 1  ;;  %v1588_v45 = vsel %vm479_vm1, %v1583_v13, %v1587_v35 }
 0x105   : > { %v1344_v21 = vpop.permute.xlu1 %1343  ;;  %v1342_v34 = vpop.permute.xlu0 %1341  ;;  %v1600_v39 = vsel %vm479_vm1, %v1595_v28, %v1599_v30 }
 0x106   : > { %v1894_v47 = vsel %vm1878_vm8, %v1861_v62, %v1344_v21  ;;  %v1676_v21 = vrot.slane %v2891_v56, 1 }
 0x107   : > { %895 = vrot.lane.b32.xlu1 %v3747_v11, %s3014_s4  ;;  %893 = vrot.lane.b32.xlu0 %v2885_v16, %s3014_s4  ;;  %v1213_v11 = vsel %vm704_vm0, %v1211_v52, %v1212_v54  ;;  %v1859_v16 = vsel %vm1845_vm7, %v1826_v9, %v1230_v10  ;;  %s2321_s4 = sshll.u32 %s182_s30, 4  ;;  %s3934_s4 = int_to_ptr.vmem [resolvable:$true] %s2321_s4 }
 0x108   : > { %v1892_v19 = vsel %vm1878_vm8, %v1859_v16, %v1342_v34  ;;  %v1677_v50 = vsel %vm704_vm0, %v1675_v46, %v1676_v21  ;;  %s2902_s19 = scalar_lea.vmem %s3934_s4, 16  ;;  %p2909_p1 = scmp.lt.s32.totalorder %s3934_s4, %s2907_s23 }
 0x109   : > { %v1616_v60 = vpop.permute.xlu1 %1615  ;;  %v1614_v8 = vpop.permute.xlu0 %1613  ;;  %p2903_p12 = scmp.ne.s32.totalorder %s3934_s4, %s2902_s19  ;;  %p2910_p2 = scmp.lt.s32.totalorder %s2908_s26, %s2902_s19 }
 0x10a   : > { %v1925_v49 = vsel %vm1911_vm9, %v1892_v19, %v1614_v8  ;;  %v1927_v29 = vsel %vm1911_vm9, %v1894_v47, %v1616_v60 }
 0x10b   : > { %1167 = vrot.lane.b32.xlu1 %v1136_v53, %s3018_s8  ;;  %1165 = vrot.lane.b32.xlu0 %v1124_v1, %s3018_s8  ;;  %p2904_p13 = pnand %p2903_p12, %p3084_p4  ;;  %p2911_p3 = por %p2910_p2, %p2909_p1 }
 0x10d   : > { %v689_v23 = vpop.permute.xlu1 %688  ;;  %v1694_v25 = vpop.permute.xlu0 %1693  ;;  %p2905_p0 = pneg %p2904_p13 }
 0x10e   : > { %v1958_v27 = vsel %vm1944_vm10, %v1925_v49, %v1694_v25  ;;  %v1731_v53 = vsel %vm1713_vm3, %v2900_v32, %v689_v23 }
 0x10f   : > { %1247 = vrot.lane.b32.xlu1 %v1216_v63, %s3015_s5  ;;  %1245 = vrot.lane.b32.xlu0 %v1213_v11, %s3015_s5  ;;  %s188_s5 = scalar_lea.vmem [#allocation4], %s3922_s28  ;;  %p2912_p5 = pnand %p2911_p3, %p2905_p0 }
 0x110   : > { %2696 = vmatprep.mubr.msk.bf16.mxu0 %vm1997_vm11, %v1958_v27  ;;  %s2335_s6 = sshll.u32 %s188_s5, 4  ;;  %s3941_s6 = int_to_ptr.vmem [resolvable:$true] %s2335_s6 }
 0x111   : > { %v691_v57 = vpop.permute.xlu1 %690  ;;  %v1696_v22 = vpop.permute.xlu0 %1695 }
 0x112   : > { %v1960_v40 = vsel %vm1944_vm10, %v1927_v29, %v1696_v22  ;;  %v1733_v5 = vsel %vm1713_vm3, %v2901_v0, %v691_v57 }
 0x113   : > { %1359 = vrot.lane.b32.xlu1 %v3775_v12, %s3019_s9  ;;  %1357 = vrot.lane.b32.xlu0 %v3778_v36, %s3019_s9  ;;  %s3932_s9 = scalar_lea.hbm %s4013_s2, %s2655_s29 }
 0x114   : > { %2697 = vmatmul.mubr.msk.bf16.gmra.mrb[12].mxu0 %vm1997_vm11, %v1960_v40 }
 0x115   : > { %v772_v10 = vpop.permute.xlu1 %771  ;;  %v770_v42 = vpop.permute.xlu0 %769 }
 0x116   : > { %v1764_v59 = vsel %vm1746_vm4, %v1731_v53, %v770_v42  ;;  %v1766_v63 = vsel %vm1746_vm4, %v1733_v5, %v772_v10 }
 0x117   : > { %1631 = vrot.lane.b32.xlu1 %v1600_v39, %s3020_s10  ;;  %1629 = vrot.lane.b32.xlu0 %v1588_v45, %s3020_s10 }
 0x119   : > { %v884_v34 = vpop.permute.xlu1 %883  ;;  %v882_v12 = vpop.permute.xlu0 %881 }
 0x11a   : > { %v1797_v60 = vsel %vm1779_vm5, %v1764_v59, %v882_v12  ;;  %v1799_v14 = vsel %vm1779_vm5, %v1766_v63, %v884_v34 }
 0x11b   : > { %1711 = vrot.lane.b32.xlu1 %v1680_v20, %s3021_s11  ;;  %1709 = vrot.lane.b32.xlu0 %v1677_v50, %s3021_s11  ;;  %s3939_s11 = scalar_lea.hbm %s4014_s3, %s2655_s29 }
 0x11d   : > { %v1156_v24 = vpop.permute.xlu1 %1155  ;;  %v1154_v36 = vpop.permute.xlu0 %1153 }
 0x11e   : > { %v1830_v56 = vsel %vm1812_vm6, %v1797_v60, %v1154_v36  ;;  %v1832_v7 = vsel %vm1812_vm6, %v1799_v14, %v1156_v24 }
 0x121   : > { %v1236_v52 = vpop.permute.xlu1 %1235  ;;  %v1234_v54 = vpop.permute.xlu0 %1233 }
 0x122   : > { %v1863_v8 = vsel %vm1845_vm7, %v1830_v56, %v1234_v54  ;;  %v1865_v2 = vsel %vm1845_vm7, %v1832_v7, %v1236_v52 }
 0x125   : > { %v1348_v48 = vpop.permute.xlu1 %1347  ;;  %v1346_v37 = vpop.permute.xlu0 %1345 }
 0x126   : > { %v1896_v9 = vsel %vm1878_vm8, %v1863_v8, %v1346_v37  ;;  %v1898_v18 = vsel %vm1878_vm8, %v1865_v2, %v1348_v48 }
 0x129   : > { %v1620_v33 = vpop.permute.xlu1 %1619  ;;  %v1618_v1 = vpop.permute.xlu0 %1617 }
 0x12a   : > { %v1929_v4 = vsel %vm1911_vm9, %v1896_v9, %v1618_v1  ;;  %v1931_v19 = vsel %vm1911_vm9, %v1898_v18, %v1620_v33 }
 0x12d   : > { %v693_v11 = vpop.permute.xlu1 %692  ;;  %v1698_v55 = vpop.permute.xlu0 %1697 }
 0x12e   : > { %v1962_v16 = vsel %vm1944_vm10, %v1929_v4, %v1698_v55  ;;  %v1735_v57 = vsel %vm1713_vm3, %v3435_v38, %v693_v11 }
 0x12f   : > { %2700 = vmatprep.mubr.msk.bf16.mxu1 %vm1997_vm11, %v1962_v16 }
 0x131   : > { %v695_v15 = vpop.permute.xlu1 %694  ;;  %v1700_v23 = vpop.permute.xlu0 %1699 }
 0x132   : > { %v1964_v6 = vsel %vm1944_vm10, %v1931_v19, %v1700_v23  ;;  %v1737_v39 = vsel %vm1713_vm3, %v3466_v58, %v695_v15 }
 0x133   : > { %2701 = vmatmul.mubr.msk.bf16.vlgmr.msra.gmra.mrb[0].mxu1 %vm1997_vm11, %v1964_v6 }
 0x135   : > { %v776_v51 = vpop.permute.xlu1 %775  ;;  %v774_v41 = vpop.permute.xlu0 %773 }
 0x136   : > { %v1768_v13 = vsel %vm1746_vm4, %v1735_v57, %v774_v41  ;;  %v1770_v43 = vsel %vm1746_vm4, %v1737_v39, %v776_v51 }
 0x139   : > { %v888_v49 = vpop.permute.xlu1 %887  ;;  %v886_v25 = vpop.permute.xlu0 %885 }
 0x13a   : > { %v1801_v29 = vsel %vm1779_vm5, %v1768_v13, %v886_v25  ;;  %v1803_v38 = vsel %vm1779_vm5, %v1770_v43, %v888_v49 }
 0x13d   : > { %v1160_v61 = vpop.permute.xlu1 %1159  ;;  %v1158_v27 = vpop.permute.xlu0 %1157 }
 0x13e   : > { %v1834_v40 = vsel %vm1812_vm6, %v1801_v29, %v1158_v27  ;;  %v1836_v42 = vsel %vm1812_vm6, %v1803_v38, %v1160_v61 }
 0x141   : > { %v1240_v62 = vpop.permute.xlu1 %1239  ;;  %v1238_v28 = vpop.permute.xlu0 %1237 }
 0x142   : > { %v1867_v26 = vsel %vm1845_vm7, %v1834_v40, %v1238_v28  ;;  %v1869_v34 = vsel %vm1845_vm7, %v1836_v42, %v1240_v62 }
 0x145   : > { %v1352_v30 = vpop.permute.xlu1 %1351  ;;  %v1350_v47 = vpop.permute.xlu0 %1349 }
 0x146   : > { %v1900_v10 = vsel %vm1878_vm8, %v1867_v26, %v1350_v47  ;;  %v1902_v58 = vsel %vm1878_vm8, %v1869_v34, %v1352_v30 }
 0x149   : > { %v1624_v35 = vpop.permute.xlu1 %1623  ;;  %v1622_v22 = vpop.permute.xlu0 %1621 }
 0x14a   : > { %v1933_v46 = vsel %vm1911_vm9, %v1900_v10, %v1622_v22  ;;  %v1935_v12 = vsel %vm1911_vm9, %v1902_v58, %v1624_v35 }
 0x14d   : > { %v697_v45 = vpop.permute.xlu1 %696  ;;  %v1702_v21 = vpop.permute.xlu0 %1701 }
 0x14e   : > { %v1966_v20 = vsel %vm1944_vm10, %v1933_v46, %v1702_v21  ;;  %v1739_v56 = vsel %vm1713_vm3, %v3553_v17, %v697_v45 }
 0x14f   : > { %2704 = vmatprep.mubr.msk.bf16.mxu1 %vm1997_vm11, %v1966_v20 }
 0x151   : > { %v699_v50 = vpop.permute.xlu1 %698  ;;  %v1704_v24 = vpop.permute.xlu0 %1703 }
 0x152   : > { %v1968_v36 = vsel %vm1944_vm10, %v1935_v12, %v1704_v24  ;;  %v1741_v11 = vsel %vm1713_vm3, %v3579_v44, %v699_v50 }
 0x153   : > { %2705 = vmatmul.mubr.msk.bf16.gmra.mrb[4].mxu1 %vm1997_vm11, %v1968_v36 }
 0x155   : > { %v780_v52 = vpop.permute.xlu1 %779  ;;  %v778_v54 = vpop.permute.xlu0 %777 }
 0x156   : > { %v1772_v0 = vsel %vm1746_vm4, %v1739_v56, %v778_v54  ;;  %v1774_v4 = vsel %vm1746_vm4, %v1741_v11, %v780_v52 }
 0x159   : > { %v892_v48 = vpop.permute.xlu1 %891  ;;  %v890_v37 = vpop.permute.xlu0 %889 }
 0x15a   : > { %v1805_v8 = vsel %vm1779_vm5, %v1772_v0, %v890_v37  ;;  %v1807_v17 = vsel %vm1779_vm5, %v1774_v4, %v892_v48 }
 0x15d   : > { %v1164_v32 = vpop.permute.xlu1 %1163  ;;  %v1162_v53 = vpop.permute.xlu0 %1161 }
 0x15e   : > { %v1838_v9 = vsel %vm1812_vm6, %v1805_v8, %v1162_v53  ;;  %v1840_v18 = vsel %vm1812_vm6, %v1807_v17, %v1164_v32 }
 0x161   : > { %v1244_v59 = vpop.permute.xlu1 %1243  ;;  %v1242_v33 = vpop.permute.xlu0 %1241 }
 0x162   : > { %v1871_v14 = vsel %vm1845_vm7, %v1838_v9, %v1242_v33  ;;  %v1873_v19 = vsel %vm1845_vm7, %v1840_v18, %v1244_v59 }
 0x165   : > { %v1356_v60 = vpop.permute.xlu1 %1355  ;;  %v1354_v1 = vpop.permute.xlu0 %1353 }
 0x166   : > { %v1904_v55 = vsel %vm1878_vm8, %v1871_v14, %v1354_v1  ;;  %v1906_v44 = vsel %vm1878_vm8, %v1873_v19, %v1356_v60 }
 0x169   : > { %v1628_v5 = vpop.permute.xlu1 %1627  ;;  %v1626_v63 = vpop.permute.xlu0 %1625 }
 0x16a   : > { %v1937_v16 = vsel %vm1911_vm9, %v1904_v55, %v1626_v63  ;;  %v1939_v6 = vsel %vm1911_vm9, %v1906_v44, %v1628_v5 }
 0x16d   : > { %v701_v7 = vpop.permute.xlu1 %700  ;;  %v1706_v2 = vpop.permute.xlu0 %1705 }
 0x16e   : > { %v1970_v15 = vsel %vm1944_vm10, %v1937_v16, %v1706_v2  ;;  %v1743_v29 = vsel %vm1713_vm3, %v3677_v3, %v701_v7 }
 0x16f   : > { %2708 = vmatprep.mubr.msk.bf16.mxu1 %vm1997_vm11, %v1970_v15 }
 0x171   : > { %v703_v23 = vpop.permute.xlu1 %702  ;;  %v1708_v51 = vpop.permute.xlu0 %1707 }
 0x172   : > { %v1972_v41 = vsel %vm1944_vm10, %v1939_v6, %v1708_v51  ;;  %v1745_v13 = vsel %vm1713_vm3, %v3703_v31, %v703_v23 }
 0x173   : > { %2709 = vmatmul.mubr.msk.bf16.gmra.mrb[8].mxu1 %vm1997_vm11, %v1972_v41 }
 0x175   : > { %v784_v49 = vpop.permute.xlu1 %783  ;;  %v782_v25 = vpop.permute.xlu0 %781 }
 0x176   : > { %v1778_v22 = vsel %vm1746_vm4, %v1745_v13, %v784_v49  ;;  %v1776_v39 = vsel %vm1746_vm4, %v1743_v29, %v782_v25 }
 0x179   : > { %v896_v61 = vpop.permute.xlu1 %895  ;;  %v894_v27 = vpop.permute.xlu0 %893 }
 0x17a   : > { %v1811_v26 = vsel %vm1779_vm5, %v1778_v22, %v896_v61  ;;  %v1809_v10 = vsel %vm1779_vm5, %v1776_v39, %v894_v27 }
 0x17d   : > { %v1168_v62 = vpop.permute.xlu1 %1167  ;;  %v1166_v28 = vpop.permute.xlu0 %1165 }
 0x17e   : > { %v1844_v45 = vsel %vm1812_vm6, %v1811_v26, %v1168_v62  ;;  %v1842_v31 = vsel %vm1812_vm6, %v1809_v10, %v1166_v28 }
 0x181   : > { %v1248_v30 = vpop.permute.xlu1 %1247  ;;  %v1246_v47 = vpop.permute.xlu0 %1245 }
 0x182   : > { %v1877_v21 = vsel %vm1845_vm7, %v1844_v45, %v1248_v30  ;;  %v1875_v20 = vsel %vm1845_vm7, %v1842_v31, %v1246_v47 }
 0x185   : > { %v1360_v57 = vpop.permute.xlu1 %1359  ;;  %v1358_v35 = vpop.permute.xlu0 %1357 }
 0x186   : > { %v1910_v12 = vsel %vm1878_vm8, %v1877_v21, %v1360_v57  ;;  %v1908_v24 = vsel %vm1878_vm8, %v1875_v20, %v1358_v35 }
 0x187   : > { %v2686_v40 = vpop.f32.mrb[0].mxu0 }
 0x188   : > { %v2068_v43 = vpop.f32.mrb[1].mxu0  ;;  %v2235_v36 = vmul.f32 %v2686_v40, %v2686_v40 }
 0x189   : > { %v2687_v38 = vpop.f32.mrb[2].mxu0  ;;  %v1632_v46 = vpop.permute.xlu1 %1631  ;;  %v2233_v34 = vmul.f32 %v2068_v43, %v2068_v43 }
 0x18a   : > { %v2071_v42 = vpop.f32.mrb[3].mxu0  ;;  %v1630_v3 = vpop.permute.xlu0 %1629  ;;  %v1943_v52 = vsel %vm1911_vm9, %v1910_v12, %v1632_v46  ;;  %v2236_v33 = vmul.f32 %v2687_v38, %v2687_v38 }
 0x18b   : > { %v2195_v58 = vadd.f32 %v2071_v42, %v2068_v43  ;;  %v2234_v50 = vmul.f32 %v2071_v42, %v2071_v42  ;;  %v1941_v32 = vsel %vm1911_vm9, %v1908_v24, %v1630_v3 }
 0x18d   : > { %v2196_v54 = vadd.f32 %v2686_v40, %v2195_v58  ;;  %v2265_v48 = vadd.f32 %v2234_v50, %v2233_v34  ;;  %v1712_v37 = vpop.permute.xlu1 %1711 }
 0x18e   : > { %v1976_v53 = vsel %vm1944_vm10, %v1943_v52, %v1712_v37  ;;  %v1710_v59 = vpop.permute.xlu0 %1709 }
 0x18f   : > { %v2266_v60 = vadd.f32 %v2265_v48, %v2235_v36  ;;  %v1974_v1 = vsel %vm1944_vm10, %v1941_v32, %v1710_v59  ;;  %v2197_v56 = vadd.f32 %v2687_v38, %v2196_v54 }
 0x190   : > { %2712 = vmatprep.mubr.msk.bf16.mxu1 %vm1997_vm11, %v1974_v1 }
 0x191   : > { %2713 = vmatmul.mubr.msk.bf16.gmra.mrb[12].mxu1 %vm1997_vm11, %v1976_v53  ;;  %v2267_v0 = vadd.f32 %v2266_v60, %v2236_v33 }
 0x1a7   : > { %v2690_v5 = vpop.f32.mrb[4].mxu0 }
 0x1a8   : > { %v2084_v8 = vpop.f32.mrb[5].mxu0  ;;  %v2239_v17 = vmul.f32 %v2690_v5, %v2690_v5 }
 0x1a9   : > { %v2198_v63 = vadd.f32 %v2197_v56, %v2084_v8  ;;  %v2237_v9 = vmul.f32 %v2084_v8, %v2084_v8  ;;  %v2691_v11 = vpop.f32.mrb[6].mxu0 }
 0x1aa   : > { %v2087_v14 = vpop.f32.mrb[7].mxu0  ;;  %v2240_v18 = vmul.f32 %v2691_v11, %v2691_v11 }
 0x1ab   : > { %v2268_v4 = vadd.f32 %v2267_v0, %v2237_v9  ;;  %v2199_v55 = vadd.f32 %v2198_v63, %v2087_v14  ;;  %v2238_v7 = vmul.f32 %v2087_v14, %v2087_v14 }
 0x1ad   : > { %v2200_v16 = vadd.f32 %v2690_v5, %v2199_v55  ;;  %v2269_v2 = vadd.f32 %v2268_v4, %v2238_v7 }
 0x1af   : > { %v2270_v15 = vadd.f32 %v2269_v2, %v2239_v17  ;;  %v2201_v19 = vadd.f32 %v2691_v11, %v2200_v16 }
 0x1b1   : > { %v2271_v44 = vadd.f32 %v2270_v15, %v2240_v18 }
 0x1c7   : > { %v2694_v23 = vpop.f32.mrb[8].mxu0 }
 0x1c8   : > { %v2100_v6 = vpop.f32.mrb[9].mxu0  ;;  %v2243_v28 = vmul.f32 %v2694_v23, %v2694_v23 }
 0x1c9   : > { %v2202_v51 = vadd.f32 %v2201_v19, %v2100_v6  ;;  %v2241_v41 = vmul.f32 %v2100_v6, %v2100_v6  ;;  %v2695_v49 = vpop.f32.mrb[10].mxu0 }
 0x1ca   : > { %v2103_v25 = vpop.f32.mrb[11].mxu0  ;;  %v2244_v57 = vmul.f32 %v2695_v49, %v2695_v49 }
 0x1cb   : > { %v2272_v61 = vadd.f32 %v2271_v44, %v2241_v41  ;;  %v2203_v27 = vadd.f32 %v2202_v51, %v2103_v25  ;;  %v2242_v62 = vmul.f32 %v2103_v25, %v2103_v25 }
 0x1cd   : > { %v2204_v30 = vadd.f32 %v2694_v23, %v2203_v27  ;;  %v2273_v47 = vadd.f32 %v2272_v61, %v2242_v62 }
 0x1cf   : > { %v2274_v13 = vadd.f32 %v2273_v47, %v2243_v28  ;;  %v2205_v35 = vadd.f32 %v2695_v49, %v2204_v30 }
 0x1d1   : > { %v2275_v29 = vadd.f32 %v2274_v13, %v2244_v57 }
 0x1e7   : > { %v2698_v22 = vpop.f32.mrb[12].mxu0 }
 0x1e8   : > { %v2116_v40 = vpop.f32.mrb[13].mxu0  ;;  %v2247_v31 = vmul.f32 %v2698_v22, %v2698_v22 }
 0x1e9   : > { %v2206_v39 = vadd.f32 %v2205_v35, %v2116_v40  ;;  %v2245_v26 = vmul.f32 %v2116_v40, %v2116_v40  ;;  %v2699_v43 = vpop.f32.mrb[14].mxu0 }
 0x1ea   : > { %v2119_v10 = vpop.f32.mrb[15].mxu0  ;;  %v2248_v3 = vmul.f32 %v2699_v43, %v2699_v43 }
 0x1eb   : > { %v2276_v45 = vadd.f32 %v2275_v29, %v2245_v26  ;;  %v2207_v38 = vadd.f32 %v2206_v39, %v2119_v10  ;;  %v2246_v46 = vmul.f32 %v2119_v10, %v2119_v10 }
 0x1ed   : > { %v2208_v21 = vadd.f32 %v2698_v22, %v2207_v38  ;;  %v2277_v42 = vadd.f32 %v2276_v45, %v2246_v46 }
 0x1ef   : > { %v2278_v20 = vadd.f32 %v2277_v42, %v2247_v31  ;;  %v2209_v34 = vadd.f32 %v2699_v43, %v2208_v21 }
 0x1f1   : > { %v2279_v58 = vadd.f32 %v2278_v20, %v2248_v3 }
 0x206   : > { %v2702_v50 = vpop.f32.mrb[0].mxu1 }
 0x207   : > { %v2132_v12 = vpop.f32.mrb[1].mxu1  ;;  %v2251_v53 = vmul.f32 %v2702_v50, %v2702_v50 }
 0x208   : > { %v2210_v24 = vadd.f32 %v2209_v34, %v2132_v12  ;;  %v2249_v36 = vmul.f32 %v2132_v12, %v2132_v12  ;;  %v2703_v52 = vpop.f32.mrb[2].mxu1 }
 0x209   : > { %v2135_v54 = vpop.f32.mrb[3].mxu1  ;;  %v2252_v60 = vmul.f32 %v2703_v52, %v2703_v52 }
 0x20a   : > { %v2280_v48 = vadd.f32 %v2279_v58, %v2249_v36  ;;  %v2211_v37 = vadd.f32 %v2210_v24, %v2135_v54  ;;  %v2250_v32 = vmul.f32 %v2135_v54, %v2135_v54 }
 0x20c   : > { %v2212_v59 = vadd.f32 %v2702_v50, %v2211_v37  ;;  %v2281_v33 = vadd.f32 %v2280_v48, %v2250_v32 }
 0x20e   : > { %v2282_v1 = vadd.f32 %v2281_v33, %v2251_v53  ;;  %v2213_v56 = vadd.f32 %v2703_v52, %v2212_v59 }
 0x210   : > { %v2283_v0 = vadd.f32 %v2282_v1, %v2252_v60 }
 0x226   : > { %v2706_v5 = vpop.f32.mrb[4].mxu1 }
 0x227   : > { %v2148_v8 = vpop.f32.mrb[5].mxu1  ;;  %v2255_v17 = vmul.f32 %v2706_v5, %v2706_v5 }
 0x228   : > { %v2214_v63 = vadd.f32 %v2213_v56, %v2148_v8  ;;  %v2253_v9 = vmul.f32 %v2148_v8, %v2148_v8  ;;  %v2707_v11 = vpop.f32.mrb[6].mxu1 }
 0x229   : > { %v2151_v14 = vpop.f32.mrb[7].mxu1  ;;  %v2256_v18 = vmul.f32 %v2707_v11, %v2707_v11 }
 0x22a   : > { %v2284_v4 = vadd.f32 %v2283_v0, %v2253_v9  ;;  %v2215_v55 = vadd.f32 %v2214_v63, %v2151_v14  ;;  %v2254_v7 = vmul.f32 %v2151_v14, %v2151_v14 }
 0x22c   : > { %v2216_v16 = vadd.f32 %v2706_v5, %v2215_v55  ;;  %v2285_v2 = vadd.f32 %v2284_v4, %v2254_v7 }
 0x22e   : > { %v2286_v15 = vadd.f32 %v2285_v2, %v2255_v17  ;;  %v2217_v19 = vadd.f32 %v2707_v11, %v2216_v16 }
 0x230   : > { %v2287_v44 = vadd.f32 %v2286_v15, %v2256_v18 }
 0x246   : > { %v2710_v23 = vpop.f32.mrb[8].mxu1 }
 0x247   : > { %v2164_v6 = vpop.f32.mrb[9].mxu1  ;;  %v2259_v28 = vmul.f32 %v2710_v23, %v2710_v23 }
 0x248   : > { %v2218_v51 = vadd.f32 %v2217_v19, %v2164_v6  ;;  %v2257_v41 = vmul.f32 %v2164_v6, %v2164_v6  ;;  %v2711_v49 = vpop.f32.mrb[10].mxu1 }
 0x249   : > { %v2167_v25 = vpop.f32.mrb[11].mxu1  ;;  %v2260_v57 = vmul.f32 %v2711_v49, %v2711_v49 }
 0x24a   : > { %v2288_v61 = vadd.f32 %v2287_v44, %v2257_v41  ;;  %v2219_v27 = vadd.f32 %v2218_v51, %v2167_v25  ;;  %v2258_v62 = vmul.f32 %v2167_v25, %v2167_v25 }
 0x24c   : > { %v2220_v30 = vadd.f32 %v2710_v23, %v2219_v27  ;;  %v2289_v47 = vadd.f32 %v2288_v61, %v2258_v62 }
 0x24e   : > { %v2290_v13 = vadd.f32 %v2289_v47, %v2259_v28  ;;  %v2221_v35 = vadd.f32 %v2711_v49, %v2220_v30 }
 0x250   : > { %v2291_v29 = vadd.f32 %v2290_v13, %v2260_v57 }
 0x264   : > { %v2714_v22 = vpop.f32.mrb[12].mxu1 }
 0x265   : > { %v2180_v40 = vpop.f32.mrb[13].mxu1  ;;  %v2263_v31 = vmul.f32 %v2714_v22, %v2714_v22 }
 0x266   : > { %v2222_v39 = vadd.f32 %v2221_v35, %v2180_v40  ;;  %v2261_v26 = vmul.f32 %v2180_v40, %v2180_v40  ;;  %v2715_v43 = vpop.f32.mrb[14].mxu1 }
 0x267   : > { %v2183_v10 = vpop.f32.mrb[15].mxu1  ;;  %v2264_v3 = vmul.f32 %v2715_v43, %v2715_v43 }
 0x268   : > { %v2292_v45 = vadd.f32 %v2291_v29, %v2261_v26  ;;  %v2223_v38 = vadd.f32 %v2222_v39, %v2183_v10  ;;  %v2262_v46 = vmul.f32 %v2183_v10, %v2183_v10 }
 0x26a   : > { %v2224_v21 = vadd.f32 %v2714_v22, %v2223_v38  ;;  %v2293_v42 = vadd.f32 %v2292_v45, %v2262_v46 }
 0x26c   : > { %v2225_v20 = vadd.f32 %v2715_v43, %v2224_v21  ;;  %v2294_v34 = vadd.f32 %v2293_v42, %v2263_v31 }
 0x26e   : > { %v2226_v58 = vrot.slane %v2225_v20, 4  ;;  %v2295_v50 = vadd.f32 %v2294_v34, %v2264_v3 }
 0x270   : > { %v2227_v12 = vadd.f32 %v2226_v58, %v2225_v20  ;;  %v2296_v24 = vrot.slane %v2295_v50, 4 }
 0x272   : > { %v2228_v36 = vrot.slane %v2227_v12, 2  ;;  %v2297_v52 = vadd.f32 %v2296_v24, %v2295_v50 }
 0x274   : > { %v2229_v54 = vadd.f32 %v2228_v36, %v2227_v12  ;;  %v2298_v48 = vrot.slane %v2297_v52, 2 }
 0x276   : > { %v2230_v37 = vrot.slane %v2229_v54, 1  ;;  %v2299_v32 = vadd.f32 %v2298_v48, %v2297_v52 }
 0x278   : > { %v2231_v53 = vadd.f32 %v2230_v37, %v2229_v54  ;;  %v2300_v59 = vrot.slane %v2299_v32, 1 }
 0x27a   : > { %2232 = vst [vmem:[%s182_s30] sm:$0x1] %v2231_v53  ;;  %v2301_v33 = vadd.f32 %v2300_v59, %v2299_v32 }
 0x27b   : > { %2915 = shalt.err (!%p2912_p5)
}
 0x27c   : > { %s2916_s27 = scalar_lea.hbm %s3932_s9, 16  ;;  %s2920_s7 = scalar_lea.hbm %s4013_s2, 32 }
 0x27d   : > { %p2917_p6 = scmp.ne.s32.totalorder %s3932_s9, %s2916_s27  ;;  %p2921_p10 = scmp.lt.u32.totalorder %s3932_s9, %s4013_s2 }
 0x27e   : > { %p2922_p11 = scmp.lt.u32.totalorder %s2920_s7, %s2916_s27  ;;  %p2924_p13 = scmp.lt.u32.totalorder %s2916_s27, %s3932_s9 }
 0x27f   : > { %p2918_p7 = pnand %p2917_p6, %p3084_p4 }
 0x280   : > { %p2923_p12 = por %p2922_p11, %p2921_p10 }
 0x281   : > { %p2919_p9 = pneg %p2918_p7 }
 0x282   : > { %p2925_p0 = por %p2924_p13, %p2923_p12 }
 0x284   : > { %p2926_p1 = pnand %p2925_p0, %p2919_p9 }
 0x286   : > { %2929 = shalt.err (!%p2926_p1)
}
 0x287   : > { %2725 = dma.vmem_to_hbm [thread:$0]  (%p3084_p4), %s3934_s4, 16, %s3932_s9, %s2304_s18   ;;  %2302 = vst [vmem:[%s188_s5] sm:$0x1] %v2301_v33 }
 0x288   : > { %s2308_s10 = scalar_lea.sflag [#allocation5], %s3922_s28  ;;  %s2930_s19 = scalar_lea.vmem %s3941_s6, 16 }
 0x289   : > { %p2931_p2 = scmp.ne.s32.totalorder %s3941_s6, %s2930_s19  ;;  %s3023_s21 = smov [#allocation4]  }
 0x28a   : > { %s2934_s23 = sshll.u32 %s3023_s21, 4  ;;  %s2935_s23 = int_to_ptr.vmem [resolvable:$false] %s2934_s23 }
 0x28b   : > { %p2932_p3 = pnand %p2931_p2, %p3084_p4  ;;  %s2936_s26 = scalar_lea.vmem %s2935_s23, 32 }
 0x28c   : > { %p2937_p6 = scmp.lt.s32.totalorder %s3941_s6, %s2935_s23  ;;  %p2938_p7 = scmp.lt.s32.totalorder %s2936_s26, %s2930_s19 }
 0x28d   : > { %p2933_p5 = pneg %p2932_p3 }
 0x28e   : > { %p2939_p9 = por %p2938_p7, %p2937_p6 }
 0x290   : > { %p2940_p10 = pnand %p2939_p9, %p2933_p5 }
 0x292   : > { %2943 = shalt.err (!%p2940_p10)
}
 0x293   : > { %s2944_s28 = scalar_lea.hbm %s3939_s11, 16  ;;  %s2948_s9 = scalar_lea.hbm %s4014_s3, 32 }
 0x294   : > { %p2945_p11 = scmp.ne.s32.totalorder %s3939_s11, %s2944_s28  ;;  %p2949_p0 = scmp.lt.u32.totalorder %s3939_s11, %s4014_s3 }
 0x295   : > { %p2950_p1 = scmp.lt.u32.totalorder %s2948_s9, %s2944_s28  ;;  %p2952_p3 = scmp.lt.u32.totalorder %s2944_s28, %s3939_s11 }
 0x296   : > { %p2946_p12 = pnand %p2945_p11, %p3084_p4 }
 0x297   : > { %p2951_p2 = por %p2950_p1, %p2949_p0 }
 0x298   : > { %p2947_p13 = pneg %p2946_p12 }
 0x299   : > { %p2953_p5 = por %p2952_p3, %p2951_p2 }
 0x29b   : > { %p2954_p6 = pnand %p2953_p5, %p2947_p13 }
 0x29d   : > { %2957 = shalt.err (!%p2954_p6)
}
 0x29e   : > { %2726 = dma.vmem_to_hbm [thread:$0]  (%p3084_p4), %s3941_s6, 16, %s3939_s11, %s2308_s10  }
 0x29f PF: > { %p2736_p7 = scmp.ge.s32.totalorder %s3012_s17, 2  ;;  %s2347_s29 = sand.u32 1, %s2992_s12  }
 0x2a0   : > { %s2348_s30 = scalar_lea.sflag [#allocation3], %s2347_s29 }
 0x2a1   : > { %p2730_p9 = pnand %p2736_p7, %p3091_p8 }
 0x2a3   : > { %2983 = dma.done.wait (!%p2730_p9), %s2348_s30, 16  }
 0x2a4   : > { %2985 = vsyncadd (!%p2730_p9), %s2348_s30, 4294967280  ;;  %s2356_s7 = scalar_lea.sflag [#allocation5], %s2347_s29 }
 0x2a5   : > { %2987 = dma.done.wait (!%p2730_p9), %s2356_s7, 16  }
 0x2a6   : > { %2989 = vsyncadd (!%p2730_p9), %s2356_s7, 4294967280  ;;  %s20_s17 = sadd.s32 1, %s3012_s17   ;;  %s4017_s12 = smov %s2996_s13 }
 0x2a7   : > { %p17_p10 = scmp.ge.s32.totalorder %s20_s17, 4   ;;  %s4018_s13 = smov %s3000_s14 }
 0x2a8   : > { %s4019_s14 = smov %s3097_s25  ;;  %s4020_s15 = smov %s3008_s16 }
 0x2a9   : > { %s4021_s16 = smov %s4023_s20  ;;  %19 = sbr.rel (!%p17_p10) target bundleno = 6 (0x6), region = 83 }
 0x2b0   :  { %2360 = vsyncpa [#allocation3], 1 }
 0x2b1   :  { %2362 = vsyncpa [#allocation3 + $0x1], 1 }
 0x2b2   :  { %2363 = vsyncpa [#allocation5], 1 }
 0x2b3   :  { %2365 = vsyncpa [#allocation5 + $0x1], 1 }

// kernel: tpu_custom_call.1
= control target key start
LH: loop header
LB: loop body
LE: loop exit
PB: predicated region body
PF: predicated region fallthrough
CT: control target
= control target key end

     0   :  { %9 = vsyncpa [#allocation3], 0  ;;  %s4929_s0 = inlined_call_operand.vmem [shape: bf16[2,18,18,4], index: 0, kind: input, shape index: {}]   ;;  %s4930_s1 = inlined_call_operand.vmem [shape: bf16[9,4,128], index: 1, kind: input, shape index: {}]   ;;  %s4931_s2 = inlined_call_operand.hbm [shape: f32[2,1,128], index: 2, kind: output, shape index: {0}]   ;;  %s4932_s3 = inlined_call_operand.hbm [shape: f32[2,1,128], index: 3, kind: output, shape index: {1}]  }
   0x1   :  { %11 = vsyncpa [#allocation3 + $0x1], 0 }
   0x2   :  { %12 = vsyncpa [#allocation5], 0 }
   0x3   :  { %14 = vsyncpa [#allocation5 + $0x1], 0  ;;  %s3923_s12 = smov 0   ;;  %s3925_s13 = smov 0  }
   0x4   :  { %s3927_s14 = smov 0   ;;  %s3929_s15 = smov 0  }
   0x5   :  { %s3931_s16 = smov 0   ;;  %s3933_s17 = smov 0  }
   0x6 LB: > { %s2785_s18 = sadd.s32 4294967295, %s3899_s17   ;;  %s2786_s19 = sadd.s32 4294967294, %s3899_s17   ;;  %s3899_s17 = sphi %s3933_s17, %s20_s17   ;;  %s3895_s16 = sphi %s3931_s16, %s5018_s16   ;;  %s3891_s15 = sphi %s3929_s15, %s5017_s15   ;;  %s3887_s14 = sphi %s3927_s14, %s5016_s14   ;;  %s3883_s13 = sphi %s3925_s13, %s5015_s13   ;;  %s3879_s12 = sphi %s3923_s12, %s5014_s12  }
   0x7   : > { %s32_s20 = sadd.s32 1, %s3895_s16  ;;  %s88_s21 = sadd.s32 1, %s3887_s14 }
   0x8   : > { %p34_p0 = scmp.ge.s32.totalorder %s32_s20, 2  ;;  %p98_p1 = scmp.ne.s32.totalorder %s3887_s14, %s3883_s13 }
   0x9   : > { %p99_p2 = scmp.eq.s32.totalorder %s2785_s18, 1  ;;  %p104_p3 = scmp.ne.s32.totalorder %s3883_s13, %s3879_s12 }
   0xa   : > { %s5020_s20 = smov (%p34_p0, %s32_s20), 0  ;;  %p105_p5 = scmp.eq.s32.totalorder %s2786_s19, 1 }
   0xb   : > { %p3963_p4 = por %p99_p2, %p98_p1  ;;  %s83_s23 = ssub.s32 %s3895_s16, %s5020_s20 }
   0xc   : > { %p2789_p6 = scmp.ge.s32.totalorder %s3899_s17, 1  ;;  %p86_p7 = scmp.eq.s32.totalorder %s83_s23, 0 }
   0xd   : > { %p3970_p8 = por %p105_p5, %p104_p3  ;;  %p162_p9 = scmp.lt.s32.totalorder %s3899_s17, 3 }
   0xe   : > { %s3976_s25 = scalar_select %p86_p7, %s3887_s14, %s88_s21  }
   0xf   : > { %p163_p10 = pnand %p2789_p6, %p162_p9 }
  0x11   : > { %166 = sbr.rel (%p163_p10) target bundleno = 595 (0x253), region = 28 }
  0x18   : > { %v2807_v0 = vld [vmem:[%s4930_s1 + $0x2] sm:$0x3]  ;;  %vm552_vm0 = vcmask 1041408   ;;  %v3984_v1 = vld [vmem:[%s4930_s1 + $0x8] sm:$0x3]  ;;  %p189_p11 = scmp.lt.s32.totalorder %s3891_s15, 1 }
  0x19   : > { %3682 = vmatprep.subr.msk.bf16.mxu1 %vm552_vm0, %v2807_v0  ;;  %3686 = vmatprep.subr.msk.bf16.mxu0 %vm552_vm0, %v3984_v1  ;;  %v554_v2 = vsel %vm552_vm0, %v2807_v0, 0  ;;  %v3993_v3 = vsel %vm552_vm0, %v3984_v1, 0  ;;  %v307_v4 = vld [vmem:[%s4930_s1] sm:$0x3]  ;;  %v2892_v5 = vld [vmem:[%s4930_s1 + $0xa] sm:$0x3] }
  0x1a   : > { %4973 = vst [vmem:[#allocation8_spill] sm:$0xff] %v3993_v3  ;;  %3119 = vmatpush3.bf16.msra.mxu1 %v554_v2  ;;  %3255 = vmatpush3.bf16.msra.mxu0 %v3993_v3  ;;  %s190_s5 = scalar_select %p189_p11, %s3891_s15, 1  ;;  %vm372_vm1 = vcmask 1046528   ;;  %vm503_vm2 = vcmask 31744   ;;  %v766_v37 = vsel %vm552_vm0, %v307_v4, 0  ;;  %v1732_v43 = vsel %vm552_vm0, %v2892_v5, 0 }
  0x1b   : > { %3683 = vmatprep.subr.msk.bf16.mxu1 %vm552_vm0, %v307_v4  ;;  %3688 = vmatprep.subr.msk.bf16.mxu0 %vm552_vm0, %v2892_v5  ;;  %v4079_v44 = vld [vmem:[%s4930_s1 + $0x4] sm:$0x3]  ;;  %v4123_v2 = vld [vmem:[%s4930_s1 + $0xc] sm:$0x3]  ;;  %vm929_vm3 = vcmask 1045504   ;;  %s2961_s6 = sshll.u32 %s3891_s15, 4 }
  0x1c   : > { %s3692_s8 = smul.u32 216, %s190_s5  ;;  %s4840_s5 = sand.u32 1, %s3883_s13  }
  0x1d   : > { %s182_s7 = scalar_lea.vmem [#allocation2], %s4840_s5  ;;  %s188_s9 = scalar_lea.vmem [#allocation4], %s4840_s5 }
  0x1e   : > { %s4008_s11 = scalar_lea.vmem %s4929_s0, %s3692_s8  ;;  %s2676_s8 = sshll.u32 %s182_s7, 4  ;;  %s4852_s8 = int_to_ptr.vmem [resolvable:$true] %s2676_s8 }
  0x1f   : > { %v4011_v6 = vld [vmem:[%s4008_s11] sm:$0xff]   ;;  %v4014_v7 = vld [vmem:[%s4008_s11 + $0x8] sm:$0x1]  ;;  %v4017_v8 = vld [vmem:[%s4008_s11 + $0xc] sm:$0xff]   ;;  %s2690_s10 = sshll.u32 %s188_s9, 4  ;;  %s4850_s19 = scalar_lea.hbm %s4931_s2, %s2961_s6  ;;  %s4859_s10 = int_to_ptr.vmem [resolvable:$true] %s2690_s10 }
  0x20   : > { %v4935_v9 = vunpack.c.l.bf16 %v4011_v6  ;;  %v4934_v10 = vunpack.c.h.bf16 %v4011_v6  ;;  %v4933_v11 = vunpack.c.l.bf16 %v4014_v7  ;;  %v4023_v12 = vld [vmem:[%s4008_s11 + $0x14] sm:$0x1]  ;;  %v256_v13 = vunpack.c.l.bf16 %v4017_v8  ;;  %v4027_v14 = vld [vmem:[%s4008_s11 + $0x18] sm:$0xff]   ;;  %v4043_v23 = vld [vmem:[%s4008_s11 + $0x20] sm:$0x1]  ;;  %s4857_s23 = scalar_lea.hbm %s4932_s3, %s2961_s6  ;;  %s2659_s26 = scalar_lea.sflag [#allocation3], %s4840_s5 }
  0x21   : > { %v257_v15 = vunpack.c.h.bf16 %v4017_v8  ;;  %v258_v16 = vunpack.c.l.bf16 %v4023_v12  ;;  %v259_v20 = vunpack.c.l.bf16 %v4027_v14  ;;  %v4050_v27 = vld [vmem:[%s4008_s11 + $0x24] sm:$0xff]   ;;  %v260_v31 = vunpack.c.h.bf16 %v4027_v14  ;;  %v4059_v34 = vld [vmem:[%s4008_s11 + $0x2c] sm:$0x1]  ;;  %v4062_v35 = vld [vmem:[%s4008_s11 + $0x30] sm:$0xff]   ;;  %s3789_s27 = scalar_lea.vmem %s4852_s8, 16  ;;  %s3901_s28 = smov [#allocation2]  }
  0x22   : > { %v373_v17 = vrot.slane %v4935_v9, 1  ;;  %v374_v18 = vrot.slane %v4934_v10, 1  ;;  %v376_v19 = vrot.slane %v4933_v11, 1  ;;  %v378_v21 = vrot.slane %v256_v13, 1  ;;  %v4069_v40 = vld [vmem:[%s4008_s11 + $0x38] sm:$0x1]  ;;  %p3790_p12 = scmp.ne.s32.totalorder %s4852_s8, %s3789_s27 }
  0x23   : > { %v379_v22 = vrot.slane %v257_v15, 1  ;;  %v381_v26 = vrot.slane %v258_v16, 1  ;;  %v261_v32 = vunpack.c.l.bf16 %v4043_v23  ;;  %v383_v33 = vrot.slane %v259_v20, 1  ;;  %v4090_v49 = vld [vmem:[%s4008_s11 + $0x3c] sm:$0xff]   ;;  %v4097_v54 = vld [vmem:[%s4008_s11 + $0x44] sm:$0x1] }
  0x24   : > { %v375_v24 = vsel %vm372_vm1, %v373_v17, %v374_v18  ;;  %v377_v25 = vsel %vm372_vm1, %v374_v18, %v376_v19  ;;  %v262_v38 = vunpack.c.l.bf16 %v4050_v27  ;;  %v263_v39 = vunpack.c.h.bf16 %v4050_v27  ;;  %v4100_v55 = vld [vmem:[%s4008_s11 + $0x48] sm:$0xff]   ;;  %v4118_v0 = vld [vmem:[%s4008_s11 + $0x50] sm:$0x1]  ;;  %v4134_v19 = vld [vmem:[%s4008_s11 + $0x54] sm:$0xff]   ;;  %p3791_p13 = pnand %p3790_p12, %p3963_p4  ;;  %s3793_s29 = sshll.u32 %s3901_s28, 4  ;;  %s3794_s29 = int_to_ptr.vmem [resolvable:$false] %s3793_s29 }
  0x25   : > { %v487_v28 = vpack.c.bf16 %v377_v25, %v375_v24  ;;  %v380_v29 = vsel %vm372_vm1, %v378_v21, %v379_v22  ;;  %v382_v30 = vsel %vm372_vm1, %v379_v22, %v381_v26  ;;  %v384_v41 = vrot.slane %v260_v31, 1  ;;  %v4143_v26 = vld [vmem:[%s4008_s11 + $0x5c] sm:$0x1]  ;;  %s3795_s30 = scalar_lea.vmem %s3794_s29, 32  ;;  %p3796_p1 = scmp.lt.s32.totalorder %s4852_s8, %s3794_s29 }
  0x26   : > { %v488_v36 = vpack.c.bf16 %v382_v30, %v380_v29  ;;  %v386_v42 = vrot.slane %v261_v32, 1  ;;  %v264_v45 = vunpack.c.l.bf16 %v4059_v34  ;;  %v388_v46 = vrot.slane %v262_v38, 1  ;;  %p3792_p0 = pneg %p3791_p13  ;;  %p3797_p2 = scmp.lt.s32.totalorder %s3795_s30, %s3789_s27 }
  0x27   : > { %3120 = vmatprep.mubr.msk.bf16.mxu1 %vm503_vm2, %v487_v28  ;;  %v389_v47 = vrot.slane %v263_v39, 1  ;;  %v265_v48 = vunpack.c.l.bf16 %v4062_v35  ;;  %v385_v50 = vsel %vm372_vm1, %v383_v33, %v384_v41  ;;  %v266_v52 = vunpack.c.h.bf16 %v4062_v35 }
  0x28   : > { %3256 = vmatprep.mubr.msk.bf16.mxu0 %vm503_vm2, %v488_v36  ;;  %3121 = vmatmul.mubr.msk.bf16.vlgmr.msra.gmra.mrb[0].mxu1 %vm503_vm2, %v488_v36  ;;  %v387_v51 = vsel %vm372_vm1, %v384_v41, %v386_v42  ;;  %v267_v53 = vunpack.c.l.bf16 %v4069_v40  ;;  %v391_v58 = vrot.slane %v264_v45, 1  ;;  %v268_v62 = vunpack.c.l.bf16 %v4090_v49  ;;  %p3798_p3 = por %p3797_p2, %p3796_p1 }
  0x29   : > { %3153 = vmatpush3.bf16.msra.mxu1 %v766_v37  ;;  %v4102_v56 = vpack.c.bf16 %v387_v51, %v385_v50  ;;  %v390_v57 = vsel %vm372_vm1, %v388_v46, %v389_v47  ;;  %v393_v59 = vrot.slane %v265_v48, 1  ;;  %v394_v60 = vrot.slane %v266_v52, 1  ;;  %v4170_v51 = vld [vmem:[%s4008_s11 + $0x60] sm:$0xff]  }
  0x2a   : > { %3684 = vmatprep.subr.msk.bf16.mxu1 %vm552_vm0, %v4079_v44  ;;  %v396_v61 = vrot.slane %v267_v53, 1  ;;  %v269_v63 = vunpack.c.h.bf16 %v4090_v49  ;;  %v392_v4 = vsel %vm372_vm1, %v389_v47, %v391_v58  ;;  %v4951_v5 = vunpack.c.l.bf16 %v4097_v54  ;;  %v4177_v58 = vld [vmem:[%s4008_s11 + $0x68] sm:$0x1]  ;;  %p3799_p5 = pnand %p3798_p3, %p3792_p0 }
  0x2b   : > { %3257 = vmatmul.mubr.msk.bf16.vlgmr.msra.gmra.mrb[0].mxu0 %vm503_vm2, %v4102_v56  ;;  %3124 = vmatprep.mubr.msk.bf16.mxu1 %vm503_vm2, %v4102_v56  ;;  %v4950_v17 = vunpack.c.l.bf16 %v4100_v55  ;;  %v4945_v18 = vunpack.c.h.bf16 %v4100_v55  ;;  %v4136_v21 = vpack.c.bf16 %v392_v4, %v390_v57  ;;  %v395_v22 = vsel %vm372_vm1, %v393_v59, %v394_v60 }
  0x2c   : > { %3289 = vmatpush3.bf16.msra.mxu0 %v1732_v43  ;;  %v397_v24 = vsel %vm372_vm1, %v394_v60, %v396_v61  ;;  %v398_v25 = vrot.slane %v268_v62, 1  ;;  %v399_v29 = vrot.slane %v269_v63, 1  ;;  %v401_v30 = vrot.slane %v4951_v5, 1 }
  0x2d   : > { %v4145_v28 = vpack.c.bf16 %v397_v24, %v395_v22  ;;  %v4942_v33 = vunpack.c.l.bf16 %v4118_v0  ;;  %3689 = vmatprep.subr.msk.bf16.mxu0 %vm552_vm0, %v4123_v2  ;;  %3260 = vmatprep.mubr.msk.bf16.mxu0 %vm503_vm2, %v4136_v21  ;;  %v403_v36 = vrot.slane %v4950_v17, 1  ;;  %v404_v37 = vrot.slane %v4945_v18, 1 }
  0x2e   : > { %v4941_v41 = vunpack.c.l.bf16 %v4134_v19  ;;  %v4940_v42 = vunpack.c.h.bf16 %v4134_v19  ;;  %v400_v43 = vsel %vm372_vm1, %v398_v25, %v399_v29  ;;  %v402_v46 = vsel %vm372_vm1, %v399_v29, %v401_v30  ;;  %v4195_v30 = vld [vmem:[%s4008_s11 + $0x6c] sm:$0xff]  }
  0x2f   : > { %v406_v47 = vrot.slane %v4942_v33, 1  ;;  %v4936_v50 = vunpack.c.l.bf16 %v4143_v26  ;;  %v4174_v57 = vpack.c.bf16 %v402_v46, %v400_v43  ;;  %v4939_v4 = vunpack.c.l.bf16 %v4170_v51 }
  0x30   : > { %3125 = vmatmul.mubr.msk.bf16.gmra.mrb[4].mxu1 %vm503_vm2, %v4136_v21  ;;  %v408_v59 = vrot.slane %v4941_v41, 1  ;;  %v409_v60 = vrot.slane %v4940_v42, 1  ;;  %v405_v22 = vsel %vm372_vm1, %v403_v36, %v404_v37  ;;  %v4938_v25 = vunpack.c.h.bf16 %v4170_v51  ;;  %v4202_v36 = vld [vmem:[%s4008_s11 + $0x74] sm:$0x1] }
  0x31   : > { %3128 = vmatprep.mubr.msk.bf16.mxu1 %vm503_vm2, %v4145_v28  ;;  %v411_v61 = vrot.slane %v4936_v50, 1  ;;  %v407_v24 = vsel %vm372_vm1, %v404_v37, %v406_v47  ;;  %v4937_v29 = vunpack.c.l.bf16 %v4177_v58  ;;  %v935_v43 = vrot.slane %v256_v13, 2  ;;  %v4213_v50 = vld [vmem:[%s4008_s11 + $0x78] sm:$0xff]   ;;  %v4216_v13 = vld [vmem:[%s4008_s11 + $0x80] sm:$0x1] }
  0x32   : > { %v410_v46 = vsel %vm372_vm1, %v408_v59, %v409_v60  ;;  %v936_v37 = vrot.slane %v257_v15, 2  ;;  %v938_v47 = vrot.slane %v258_v16, 2  ;;  %v4208_v10 = vpack.c.bf16 %v407_v24, %v405_v22 }
  0x33   : > { %3261 = vmatmul.mubr.msk.bf16.gmra.mrb[4].mxu0 %vm503_vm2, %v4145_v28  ;;  %v412_v11 = vsel %vm372_vm1, %v409_v60, %v411_v61  ;;  %v413_v9 = vrot.slane %v4939_v4, 1  ;;  %v414_v59 = vrot.slane %v4938_v25, 1  ;;  %v416_v15 = vrot.slane %v4937_v29, 1 }
  0x34   : > { %3264 = vmatprep.mubr.msk.bf16.mxu0 %vm503_vm2, %v4174_v57  ;;  %v4944_v12 = vunpack.c.l.bf16 %v4195_v30  ;;  %v4943_v16 = vunpack.c.h.bf16 %v4195_v30  ;;  %v4228_v60 = vpack.c.bf16 %v412_v11, %v410_v46  ;;  %v4949_v61 = vunpack.c.l.bf16 %v4202_v36 }
  0x35   : > { %v940_v22 = vrot.slane %v259_v20, 2  ;;  %v4947_v24 = vunpack.c.l.bf16 %v4213_v50  ;;  %v4946_v29 = vunpack.c.h.bf16 %v4213_v50  ;;  %v4948_v25 = vunpack.c.l.bf16 %v4216_v13 }
  0x36   : > { %v941_v4 = vrot.slane %v260_v31, 2  ;;  %v943_v42 = vrot.slane %v261_v32, 2  ;;  %v937_v11 = vsel %vm929_vm3, %v935_v43, %v936_v37  ;;  %v939_v46 = vsel %vm929_vm3, %v936_v37, %v938_v47  ;;  %v4251_v31 = vld [vmem:[%s4008_s11 + $0x84] sm:$0xff]   ;;  %v4254_v32 = vld [vmem:[%s4008_s11 + $0x8c] sm:$0x1] }
  0x37   : > { %v415_v20 = vsel %vm372_vm1, %v413_v9, %v414_v59  ;;  %v417_v41 = vsel %vm372_vm1, %v414_v59, %v416_v15  ;;  %v418_v33 = vrot.slane %v4944_v12, 1  ;;  %v419_v23 = vrot.slane %v4943_v16, 1  ;;  %v4269_v15 = vld [vmem:[%s4008_s11 + $0x90] sm:$0xff]  }
  0x38   : > { %3129 = vmatmul.mubr.msk.bf16.gmra.mrb[8].mxu1 %vm503_vm2, %v4174_v57  ;;  %v421_v43 = vrot.slane %v4949_v61, 1  ;;  %v4260_v9 = vpack.c.bf16 %v939_v46, %v937_v11  ;;  %v423_v37 = vrot.slane %v4947_v24, 1  ;;  %v424_v47 = vrot.slane %v4946_v29, 1  ;;  %v4277_v46 = vld [vmem:[%s4008_s11 + $0x98] sm:$0x1] }
  0x39   : > { %3132 = vmatprep.mubr.msk.bf16.mxu1 %vm503_vm2, %v4208_v10  ;;  %v426_v59 = vrot.slane %v4948_v25, 1  ;;  %v4271_v16 = vpack.c.bf16 %v417_v41, %v415_v20  ;;  %v4957_v12 = vunpack.c.l.bf16 %v4251_v31  ;;  %v4956_v18 = vunpack.c.h.bf16 %v4251_v31 }
  0x3a   : > { %v4952_v11 = vunpack.c.l.bf16 %v4254_v32  ;;  %v420_v29 = vsel %vm372_vm1, %v418_v33, %v419_v23  ;;  %v942_v24 = vsel %vm929_vm3, %v940_v22, %v941_v4  ;;  %v944_v25 = vsel %vm929_vm3, %v941_v4, %v943_v42 }
  0x3b   : > { %3265 = vmatmul.mubr.msk.bf16.gmra.mrb[8].mxu0 %vm503_vm2, %v4208_v10  ;;  %v945_v41 = vrot.slane %v262_v38, 2  ;;  %v422_v20 = vsel %vm372_vm1, %v419_v23, %v421_v43  ;;  %v946_v61 = vrot.slane %v263_v39, 2  ;;  %v4955_v17 = vunpack.c.l.bf16 %v4269_v15 }
  0x3c   : > { %3268 = vmatprep.mubr.msk.bf16.mxu0 %vm503_vm2, %v4228_v60  ;;  %v4953_v5 = vunpack.c.h.bf16 %v4269_v15  ;;  %v425_v33 = vsel %vm372_vm1, %v423_v37, %v424_v47  ;;  %v427_v42 = vsel %vm372_vm1, %v424_v47, %v426_v59  ;;  %v948_v38 = vrot.slane %v264_v45, 2 }
  0x3d   : > { %v4954_v4 = vunpack.c.l.bf16 %v4277_v46  ;;  %v428_v22 = vrot.slane %v4957_v12, 1  ;;  %v429_v39 = vrot.slane %v4956_v18, 1  ;;  %v431_v23 = vrot.slane %v4952_v11, 1  ;;  %v4320_v11 = vld [vmem:[%s4008_s11 + $0x9c] sm:$0xff]  }
  0x3e   : > { %v4306_v43 = vpack.c.bf16 %v422_v20, %v420_v29  ;;  %v4308_v37 = vpack.c.bf16 %v944_v25, %v942_v24  ;;  %v4312_v34 = vpack.c.bf16 %v427_v42, %v425_v33  ;;  %v947_v45 = vsel %vm929_vm3, %v945_v41, %v946_v61  ;;  %v4330_v41 = vld [vmem:[%s4008_s11 + $0xa4] sm:$0x1] }
  0x3f   : > { %v433_v47 = vrot.slane %v4955_v17, 1  ;;  %v434_v59 = vrot.slane %v4953_v5, 1  ;;  %v949_v25 = vsel %vm929_vm3, %v946_v61, %v948_v38  ;;  %v950_v29 = vrot.slane %v265_v48, 2  ;;  %v4339_v38 = vld [vmem:[%s4008_s11 + $0xa8] sm:$0xff]   ;;  %v4342_v48 = vld [vmem:[%s4008_s11 + $0xb0] sm:$0x1] }
  0x40   : > { %3133 = vmatmul.mubr.msk.bf16.gmra.mrb[12].mxu1 %vm503_vm2, %v4228_v60  ;;  %v951_v24 = vrot.slane %v266_v52, 2  ;;  %v436_v20 = vrot.slane %v4954_v4, 1  ;;  %v430_v33 = vsel %vm372_vm1, %v428_v22, %v429_v39  ;;  %v432_v42 = vsel %vm372_vm1, %v429_v39, %v431_v23 }
  0x41   : > { %3136 = vmatprep.mubr.msk.bf16.mxu1 %vm503_vm2, %v4271_v16  ;;  %v953_v5 = vrot.slane %v267_v53, 2  ;;  %v955_v61 = vrot.slane %v268_v62, 2  ;;  %v956_v52 = vrot.slane %v269_v63, 2  ;;  %v4974_v22 = vunpack.c.l.bf16 %v4097_v54 }
  0x42   : > { %v4963_v39 = vunpack.c.l.bf16 %v4320_v11  ;;  %v4962_v40 = vunpack.c.h.bf16 %v4320_v11  ;;  %v1934_v53 = vsel %vm552_vm0, %v4123_v2, 0  ;;  %v4356_v62 = vpack.c.bf16 %v949_v25, %v947_v45 }
  0x43   : > { %3269 = vmatmul.mubr.msk.bf16.gmra.mrb[12].mxu0 %vm503_vm2, %v4271_v16  ;;  %v958_v4 = vrot.slane %v4974_v22, 2  ;;  %v435_v23 = vsel %vm372_vm1, %v433_v47, %v434_v59  ;;  %v4960_v17 = vunpack.c.l.bf16 %v4330_v41  ;;  %v437_v63 = vsel %vm372_vm1, %v434_v59, %v436_v20  ;;  %v4371_v47 = vld [vmem:[%s4930_s1 + $0xe] sm:$0x3] }
  0x44   : > { %3290 = vmatprep.mubr.msk.bf16.mxu0 %vm503_vm2, %v4260_v9  ;;  %v4958_v54 = vunpack.c.l.bf16 %v4339_v38  ;;  %v4959_v22 = vunpack.c.h.bf16 %v4339_v38  ;;  %v4961_v18 = vunpack.c.l.bf16 %v4342_v48  ;;  %v4364_v12 = vpack.c.bf16 %v432_v42, %v430_v33 }
  0x45   : > { %v952_v2 = vsel %vm929_vm3, %v950_v29, %v951_v24  ;;  %v954_v45 = vsel %vm929_vm3, %v951_v24, %v953_v5  ;;  %v957_v59 = vsel %vm929_vm3, %v955_v61, %v956_v52  ;;  %v959_v25 = vsel %vm929_vm3, %v956_v52, %v958_v4  ;;  %v4396_v52 = vld [vmem:[%s4008_s11 + $0xb4] sm:$0xff]  }
  0x46   : > { %4975 = vst [vmem:[#allocation9_spill] sm:$0xff] %v4364_v12  ;;  %v438_v20 = vrot.slane %v4963_v39, 1  ;;  %v439_v29 = vrot.slane %v4962_v40, 1  ;;  %v4383_v5 = vpack.c.bf16 %v437_v63, %v435_v23  ;;  %v441_v24 = vrot.slane %v4960_v17, 1 }
  0x47   : > { %v4387_v33 = vpack.c.bf16 %v954_v45, %v952_v2  ;;  %v443_v4 = vrot.slane %v4958_v54, 1  ;;  %v444_v42 = vrot.slane %v4959_v22, 1  ;;  %v446_v61 = vrot.slane %v4961_v18, 1 }
  0x48   : > { %3137 = vmatmul.mubr.msk.bf16.gmra.mrb[16].mxu1 %vm503_vm2, %v4306_v43  ;;  %v4403_v23 = vpack.c.bf16 %v959_v25, %v957_v59  ;;  %v4976_v63 = vunpack.c.l.bf16 %v4100_v55  ;;  %v4977_v45 = vunpack.c.h.bf16 %v4100_v55  ;;  %v4978_v22 = vunpack.c.l.bf16 %v4118_v0 }
  0x49   : > { %3140 = vmatprep.mubr.msk.bf16.mxu1 %vm503_vm2, %v4312_v34  ;;  %v440_v18 = vsel %vm372_vm1, %v438_v20, %v439_v29  ;;  %v4979_v40 = vunpack.c.l.bf16 %v4134_v19  ;;  %v4980_v59 = vunpack.c.h.bf16 %v4134_v19  ;;  %v4981_v3 = vunpack.c.l.bf16 %v4143_v26 }
  0x4a   : > { %v960_v2 = vrot.slane %v4976_v63, 2  ;;  %v961_v54 = vrot.slane %v4977_v45, 2  ;;  %v963_v17 = vrot.slane %v4978_v22, 2  ;;  %v442_v0 = vsel %vm372_vm1, %v439_v29, %v441_v24 }
  0x4b   : > { %3291 = vmatmul.mubr.msk.bf16.vlgmr.msra.gmra.mrb[0].mxu0 %vm503_vm2, %v4308_v37  ;;  %v965_v39 = vrot.slane %v4979_v40, 2  ;;  %v966_v25 = vrot.slane %v4980_v59, 2  ;;  %v968_v63 = vrot.slane %v4981_v3, 2  ;;  %v4968_v22 = vunpack.c.l.bf16 %v4396_v52 }
  0x4c   : > { %3323 = vmatpush3.bf16.msra.mxu0 %v1934_v53  ;;  %3294 = vmatprep.mubr.msk.bf16.mxu0 %vm503_vm2, %v4356_v62  ;;  %v4399_v53 = vld [vmem:[%s4008_s11 + $0xbc] sm:$0x1]  ;;  %v4967_v45 = vunpack.c.h.bf16 %v4396_v52  ;;  %v447_v40 = vsel %vm372_vm1, %v444_v42, %v446_v61  ;;  %v962_v59 = vsel %vm929_vm3, %v960_v2, %v961_v54  ;;  %v4431_v3 = vpack.c.bf16 %v442_v0, %v440_v18 }
  0x4d   : > { %3690 = vmatprep.subr.msk.bf16.mxu0 %vm552_vm0, %v4371_v47  ;;  %v964_v26 = vsel %vm929_vm3, %v961_v54, %v963_v17  ;;  %v967_v29 = vsel %vm929_vm3, %v965_v39, %v966_v25  ;;  %v969_v24 = vsel %vm929_vm3, %v966_v25, %v968_v63  ;;  %v4983_v18 = vunpack.c.l.bf16 %v4399_v53 }
  0x4e   : > { %v4448_v17 = vpack.c.bf16 %v964_v26, %v962_v59  ;;  %v4450_v39 = vpack.c.bf16 %v969_v24, %v967_v29  ;;  %v4984_v54 = vunpack.c.l.bf16 %v4170_v51  ;;  %v4985_v63 = vunpack.c.h.bf16 %v4170_v51 }
  0x4f   : > { %v451_v61 = vrot.slane %v4983_v18, 1  ;;  %v4987_v59 = vunpack.c.l.bf16 %v4195_v30  ;;  %v4988_v29 = vunpack.c.h.bf16 %v4195_v30 }
  0x50   : > { %3141 = vmatmul.mubr.msk.bf16.gmra.mrb[20].mxu1 %vm503_vm2, %v4364_v12  ;;  %v445_v12 = vsel %vm372_vm1, %v443_v4, %v444_v42  ;;  %v448_v4 = vrot.slane %v4968_v22, 1  ;;  %v449_v42 = vrot.slane %v4967_v45, 1  ;;  %v971_v0 = vrot.slane %v4985_v63, 2 }
  0x51   : > { %3144 = vmatprep.mubr.msk.bf16.mxu1 %vm503_vm2, %v4383_v5  ;;  %v4438_v20 = vpack.c.bf16 %v447_v40, %v445_v12  ;;  %v970_v12 = vrot.slane %v4984_v54, 2  ;;  %v4986_v40 = vunpack.c.l.bf16 %v4177_v58  ;;  %v975_v26 = vrot.slane %v4987_v59, 2 }
  0x52   : > { %v450_v2 = vsel %vm372_vm1, %v448_v4, %v449_v42  ;;  %v452_v25 = vsel %vm372_vm1, %v449_v42, %v451_v61  ;;  %v976_v24 = vrot.slane %v4988_v29, 2  ;;  %v4989_v54 = vunpack.c.l.bf16 %v4202_v36 }
  0x53   : > { %3295 = vmatmul.mubr.msk.bf16.gmra.mrb[4].mxu0 %vm503_vm2, %v4387_v33  ;;  %4982 = vst [vmem:[#allocation10_spill] sm:$0xff] %v4438_v20  ;;  %v973_v18 = vrot.slane %v4986_v40, 2  ;;  %v4990_v22 = vunpack.c.l.bf16 %v4011_v6  ;;  %v4991_v42 = vunpack.c.h.bf16 %v4011_v6  ;;  %v4992_v63 = vunpack.c.l.bf16 %v4014_v7 }
  0x54   : > { %3298 = vmatprep.mubr.msk.bf16.mxu0 %vm503_vm2, %v4403_v23  ;;  %v978_v45 = vrot.slane %v4989_v54, 2  ;;  %v4476_v58 = vpack.c.bf16 %v452_v25, %v450_v2  ;;  %v972_v36 = vsel %vm929_vm3, %v970_v12, %v971_v0  ;;  %v4993_v2 = vunpack.c.l.bf16 %v4213_v50 }
  0x55   : > { %v930_v4 = vrot.slane %v4990_v22, 2  ;;  %v931_v61 = vrot.slane %v4991_v42, 2  ;;  %v974_v40 = vsel %vm929_vm3, %v971_v0, %v973_v18  ;;  %v977_v22 = vsel %vm929_vm3, %v975_v26, %v976_v24 }
  0x56   : > { %v979_v59 = vsel %vm929_vm3, %v976_v24, %v978_v45  ;;  %v4489_v7 = vpack.c.bf16 %v974_v40, %v972_v36  ;;  %v980_v25 = vrot.slane %v4993_v2, 2  ;;  %v4994_v45 = vunpack.c.h.bf16 %v4213_v50 }
  0x57   : > { %v4485_v29 = vsel %vm929_vm3, %v930_v4, %v931_v61  ;;  %v4498_v12 = vpack.c.bf16 %v979_v59, %v977_v22  ;;  %v4995_v18 = vunpack.c.l.bf16 %v4216_v13  ;;  %v4996_v4 = vunpack.c.l.bf16 %v4251_v31 }
  0x58   : > { %3145 = vmatmul.mubr.msk.bf16.gmra.mrb[24].mxu1 %vm503_vm2, %v4431_v3  ;;  %v981_v0 = vrot.slane %v4994_v45, 2  ;;  %v1109_v40 = vsel %vm552_vm0, %v4079_v44, 0  ;;  %v4999_v44 = vunpack.c.l.bf16 %v4269_v15 }
  0x59   : > { %3148 = vmatprep.mubr.msk.bf16.mxu1 %vm503_vm2, %v4438_v20  ;;  %v933_v20 = vrot.slane %v4992_v63, 2  ;;  %v983_v26 = vrot.slane %v4995_v18, 2  ;;  %v985_v42 = vrot.slane %v4996_v4, 2  ;;  %v4998_v63 = vunpack.c.l.bf16 %v4254_v32  ;;  %v4525_v32 = vld [vmem:[%s4930_s1 + $0x6] sm:$0x3] }
  0x5a   : > { %v982_v13 = vsel %vm929_vm3, %v980_v25, %v981_v0  ;;  %v990_v45 = vrot.slane %v4999_v44, 2 }
  0x5b   : > { %3299 = vmatmul.mubr.msk.bf16.gmra.mrb[8].mxu0 %vm503_vm2, %v4448_v17  ;;  %v4494_v54 = vsel %vm929_vm3, %v931_v61, %v933_v20  ;;  %v4997_v20 = vunpack.c.h.bf16 %v4251_v31  ;;  %v984_v36 = vsel %vm929_vm3, %v981_v0, %v983_v26  ;;  %v5000_v0 = vunpack.c.h.bf16 %v4269_v15 }
  0x5c   : > { %3302 = vmatprep.mubr.msk.bf16.mxu0 %vm503_vm2, %v4450_v39  ;;  %v1044_v24 = vpack.c.bf16 %v4494_v54, %v4485_v29  ;;  %v4529_v2 = vpack.c.bf16 %v984_v36, %v982_v13  ;;  %v5001_v26 = vunpack.c.l.bf16 %v4277_v46  ;;  %v252_v54 = vld [vmem:[%s4008_s11 + $0xd4] sm:$0x1] }
  0x5d   : > { %v986_v61 = vrot.slane %v4997_v20, 2  ;;  %v991_v18 = vrot.slane %v5000_v0, 2  ;;  %v5006_v0 = vunpack.c.h.bf16 %v4339_v38 }
  0x5e   : > { %v993_v4 = vrot.slane %v5001_v26, 2 }
  0x5f   : > { %v987_v22 = vsel %vm929_vm3, %v985_v42, %v986_v61  ;;  %v5002_v42 = vunpack.c.l.bf16 %v4320_v11  ;;  %v992_v46 = vsel %vm929_vm3, %v990_v45, %v991_v18  ;;  %v1001_v26 = vrot.slane %v5006_v0, 2 }
  0x60   : > { %3149 = vmatmul.mubr.msk.bf16.gmra.mrb[28].mxu1 %vm503_vm2, %v4476_v58  ;;  %v994_v36 = vsel %vm929_vm3, %v991_v18, %v993_v4  ;;  %v5007_v18 = vunpack.c.l.bf16 %v4342_v48 }
  0x61   : > { %3154 = vmatprep.mubr.msk.bf16.mxu1 %vm503_vm2, %v4011_v6  ;;  %v988_v6 = vrot.slane %v4998_v63, 2  ;;  %v995_v20 = vrot.slane %v5002_v42, 2  ;;  %v5008_v42 = vunpack.c.l.bf16 %v4396_v52 }
  0x62   : > { %v1003_v4 = vrot.slane %v5007_v18, 2 }
  0x63   : > { %3303 = vmatmul.mubr.msk.bf16.gmra.mrb[12].mxu0 %vm503_vm2, %v4489_v7  ;;  %v989_v59 = vsel %vm929_vm3, %v986_v61, %v988_v6  ;;  %v5003_v61 = vunpack.c.h.bf16 %v4320_v11  ;;  %v5004_v6 = vunpack.c.l.bf16 %v4330_v41 }
  0x64   : > { %3306 = vmatprep.mubr.msk.bf16.mxu0 %vm503_vm2, %v4498_v12  ;;  %v4533_v25 = vpack.c.bf16 %v989_v59, %v987_v22  ;;  %v4559_v22 = vpack.c.bf16 %v994_v36, %v992_v46  ;;  %v5005_v59 = vunpack.c.l.bf16 %v4339_v38  ;;  %v4578_v46 = vld [vmem:[%s4008_s11 + $0xc0] sm:$0xff]   ;;  %v249_v36 = vld [vmem:[%s4008_s11 + $0xc8] sm:$0x1]  ;;  %v1004_v48 = vsel %vm929_vm3, %v1001_v26, %v1003_v4 }
  0x65   : > { %v996_v63 = vrot.slane %v5003_v61, 2  ;;  %v998_v13 = vrot.slane %v5004_v6, 2  ;;  %v5009_v61 = vunpack.c.h.bf16 %v4396_v52  ;;  %v5010_v6 = vunpack.c.l.bf16 %v4399_v53 }
  0x66   : > { %v1000_v44 = vrot.slane %v5005_v59, 2  ;;  %v302_v59 = vunpack.c.h.bf16 %v4578_v46  ;;  %v303_v0 = vunpack.c.l.bf16 %v249_v36 }
  0x67   : > { %v999_v41 = vsel %vm929_vm3, %v996_v63, %v998_v13  ;;  %v1008_v13 = vrot.slane %v5010_v6, 2 }
  0x68   : > { %3155 = vmatmul.mubr.msk.bf16.vlgmr.msra.gmra.mrb[0].mxu1 %vm503_vm2, %v4017_v8  ;;  %v1719_v4 = vrot.slane %v302_v59, 2  ;;  %v1512_v36 = vrot.slane %v303_v0, 1 }
  0x69   : > { %3187 = vmatpush3.bf16.msra.mxu1 %v1109_v40  ;;  %3158 = vmatprep.mubr.msk.bf16.mxu1 %vm503_vm2, %v4027_v14  ;;  %v997_v40 = vsel %vm929_vm3, %v995_v20, %v996_v63  ;;  %v1005_v20 = vrot.slane %v5008_v42, 2  ;;  %v1006_v63 = vrot.slane %v5009_v61, 2  ;;  %v1721_v61 = vrot.slane %v303_v0, 2 }
  0x6a   : > { %3685 = vmatprep.subr.msk.bf16.mxu1 %vm552_vm0, %v4525_v32  ;;  %v4567_v45 = vpack.c.bf16 %v999_v41, %v997_v40  ;;  %v1002_v40 = vsel %vm929_vm3, %v1000_v44, %v1001_v26  ;;  %v301_v41 = vunpack.c.l.bf16 %v4578_v46  ;;  %v306_v0 = vunpack.c.l.bf16 %v252_v54 }
  0x6b   : > { %3307 = vmatmul.mubr.msk.bf16.gmra.mrb[16].mxu0 %vm503_vm2, %v4529_v2  ;;  %v1007_v53 = vsel %vm929_vm3, %v1005_v20, %v1006_v63  ;;  %v1009_v18 = vsel %vm929_vm3, %v1006_v63, %v1008_v13  ;;  %v4593_v42 = vpack.c.bf16 %v1004_v48, %v1002_v40  ;;  %v1510_v20 = vrot.slane %v302_v59, 1  ;;  %v2944_v59 = vld [vmem:[%s4930_s1 + $0x10] sm:$0x3] }
  0x6c   : > { %3310 = vmatprep.mubr.msk.bf16.mxu0 %vm503_vm2, %v4533_v25  ;;  %v4597_v44 = vpack.c.bf16 %v1009_v18, %v1007_v53  ;;  %v1718_v26 = vrot.slane %v301_v41, 2  ;;  %v1509_v6 = vrot.slane %v301_v41, 1  ;;  %v1722_v13 = vsel %vm929_vm3, %v1719_v4, %v1721_v61 }
  0x6d   : > { %v1513_v48 = vsel %vm372_vm1, %v1510_v20, %v1512_v36  ;;  %v2146_v41 = vsel %vm552_vm0, %v4371_v47, 0  ;;  %v1311_v47 = vsel %vm552_vm0, %v4525_v32, 0 }
  0x6e   : > { %v1720_v63 = vsel %vm929_vm3, %v1718_v26, %v1719_v4  ;;  %v1511_v40 = vsel %vm372_vm1, %v1509_v6, %v1510_v20  ;;  %v2344_v26 = vrot.slane %v306_v0, 2  ;;  %v2355_v20 = vsel %vm552_vm0, %v2944_v59, 0 }
  0x6f   : > { %v4607_v53 = vpack.c.bf16 %v1513_v48, %v1511_v40  ;;  %v4611_v18 = vpack.c.bf16 %v1722_v13, %v1720_v63 }
  0x70   : > { %3159 = vmatmul.mubr.msk.bf16.gmra.mrb[4].mxu1 %vm503_vm2, %v4050_v27 }
  0x71   : > { %3162 = vmatprep.mubr.msk.bf16.mxu1 %vm503_vm2, %v4062_v35 }
  0x73   : > { %3311 = vmatmul.mubr.msk.bf16.gmra.mrb[20].mxu0 %vm503_vm2, %v4559_v22 }
  0x74   : > { %3314 = vmatprep.mubr.msk.bf16.mxu0 %vm503_vm2, %v4567_v45 }
  0x78   : > { %3163 = vmatmul.mubr.msk.bf16.gmra.mrb[8].mxu1 %vm503_vm2, %v4090_v49 }
  0x79   : > { %3166 = vmatprep.mubr.msk.bf16.mxu1 %vm503_vm2, %v4100_v55 }
  0x7b   : > { %3315 = vmatmul.mubr.msk.bf16.gmra.mrb[24].mxu0 %vm503_vm2, %v4593_v42 }
  0x7c   : > { %3318 = vmatprep.mubr.msk.bf16.mxu0 %vm503_vm2, %v4597_v44 }
  0x80   : > { %3167 = vmatmul.mubr.msk.bf16.gmra.mrb[12].mxu1 %vm503_vm2, %v4134_v19 }
  0x81   : > { %3170 = vmatprep.mubr.msk.bf16.mxu1 %vm503_vm2, %v4170_v51 }
  0x83   : > { %3319 = vmatmul.mubr.msk.bf16.gmra.mrb[28].mxu0 %vm503_vm2, %v4611_v18 }
  0x84   : > { %3324 = vmatprep.mubr.msk.bf16.mxu0 %vm503_vm2, %v4027_v14 }
  0x88   : > { %3171 = vmatmul.mubr.msk.bf16.gmra.mrb[16].mxu1 %vm503_vm2, %v4195_v30 }
  0x89   : > { %3174 = vmatprep.mubr.msk.bf16.mxu1 %vm503_vm2, %v4213_v50 }
  0x8b   : > { %3325 = vmatmul.mubr.msk.bf16.vlgmr.msra.gmra.mrb[0].mxu0 %vm503_vm2, %v4050_v27 }
  0x8c   : > { %3357 = vmatpush3.bf16.msra.mxu0 %v2146_v41  ;;  %3328 = vmatprep.mubr.msk.bf16.mxu0 %vm503_vm2, %v4062_v35 }
  0x8d   : > { %3691 = vmatprep.subr.msk.bf16.mxu0 %vm552_vm0, %v2944_v59 }
  0x90   : > { %3175 = vmatmul.mubr.msk.bf16.gmra.mrb[20].mxu1 %vm503_vm2, %v4251_v31 }
  0x91   : > { %3178 = vmatprep.mubr.msk.bf16.mxu1 %vm503_vm2, %v4269_v15 }
  0x93   : > { %3329 = vmatmul.mubr.msk.bf16.gmra.mrb[4].mxu0 %vm503_vm2, %v4090_v49 }
  0x94   : > { %3332 = vmatprep.mubr.msk.bf16.mxu0 %vm503_vm2, %v4100_v55 }
  0x98   : > { %3179 = vmatmul.mubr.msk.bf16.gmra.mrb[24].mxu1 %vm503_vm2, %v4320_v11 }
  0x99   : > { %3182 = vmatprep.mubr.msk.bf16.mxu1 %vm503_vm2, %v4339_v38 }
  0x9b   : > { %3333 = vmatmul.mubr.msk.bf16.gmra.mrb[8].mxu0 %vm503_vm2, %v4134_v19 }
  0x9c   : > { %3336 = vmatprep.mubr.msk.bf16.mxu0 %vm503_vm2, %v4170_v51 }
  0xa0   : > { %3183 = vmatmul.mubr.msk.bf16.gmra.mrb[28].mxu1 %vm503_vm2, %v4396_v52 }
  0xa1   : > { %3188 = vmatprep.mubr.msk.bf16.mxu1 %vm503_vm2, %v1044_v24 }
  0xa3   : > { %3337 = vmatmul.mubr.msk.bf16.gmra.mrb[12].mxu0 %vm503_vm2, %v4195_v30 }
  0xa4   : > { %3340 = vmatprep.mubr.msk.bf16.mxu0 %vm503_vm2, %v4213_v50 }
  0xa8   : > { %3189 = vmatmul.mubr.msk.bf16.vlgmr.msra.gmra.mrb[0].mxu1 %vm503_vm2, %v4260_v9 }
  0xa9   : > { %3221 = vmatpush3.bf16.msra.mxu1 %v1311_v47  ;;  %3192 = vmatprep.mubr.msk.bf16.mxu1 %vm503_vm2, %v4308_v37 }
  0xaa   : > { %3687 = vmatprep.subr.msk.bf16.mxu1 %vm552_vm0, %v3984_v1  ;;  %v250_v1 = vld [vmem:[%s4008_s11 + $0xcc] sm:$0xff]  }
  0xab   : > { %3341 = vmatmul.mubr.msk.bf16.gmra.mrb[16].mxu0 %vm503_vm2, %v4251_v31  ;;  %v304_v9 = vunpack.c.l.bf16 %v250_v1  ;;  %v305_v29 = vunpack.c.h.bf16 %v250_v1 }
  0xac   : > { %3344 = vmatprep.mubr.msk.bf16.mxu0 %vm503_vm2, %v4269_v15 }
  0xad   : > { %v2341_v24 = vrot.slane %v304_v9, 2  ;;  %v2342_v32 = vrot.slane %v305_v29, 2 }
  0xaf   : > { %v4692_v4 = vsel %vm929_vm3, %v2341_v24, %v2342_v32  ;;  %v4697_v61 = vsel %vm929_vm3, %v2342_v32, %v2344_v26 }
  0xb0   : > { %3193 = vmatmul.mubr.msk.bf16.gmra.mrb[4].mxu1 %vm503_vm2, %v4356_v62  ;;  %v2350_v6 = vpack.c.bf16 %v4697_v61, %v4692_v4 }
  0xb1   : > { %3196 = vmatprep.mubr.msk.bf16.mxu1 %vm503_vm2, %v4387_v33 }
  0xb3   : > { %3345 = vmatmul.mubr.msk.bf16.gmra.mrb[20].mxu0 %vm503_vm2, %v4320_v11 }
  0xb4   : > { %3348 = vmatprep.mubr.msk.bf16.mxu0 %vm503_vm2, %v4339_v38 }
  0xb8   : > { %3197 = vmatmul.mubr.msk.bf16.gmra.mrb[8].mxu1 %vm503_vm2, %v4403_v23 }
  0xb9   : > { %3200 = vmatprep.mubr.msk.bf16.mxu1 %vm503_vm2, %v4448_v17 }
  0xbb   : > { %3349 = vmatmul.mubr.msk.bf16.gmra.mrb[24].mxu0 %vm503_vm2, %v4396_v52 }
  0xbc   : > { %3352 = vmatprep.mubr.msk.bf16.mxu0 %vm503_vm2, %v4578_v46 }
  0xc0   : > { %3201 = vmatmul.mubr.msk.bf16.gmra.mrb[12].mxu1 %vm503_vm2, %v4450_v39 }
  0xc1   : > { %3204 = vmatprep.mubr.msk.bf16.mxu1 %vm503_vm2, %v4489_v7 }
  0xc3   : > { %3353 = vmatmul.mubr.msk.bf16.gmra.mrb[28].mxu0 %vm503_vm2, %v250_v1 }
  0xc4   : > { %3358 = vmatprep.mubr.msk.bf16.mxu0 %vm503_vm2, %v4102_v56  ;;  %v5012_v56 = vld [vmem:[#allocation9_spill] sm:$0xff] }
  0xc8   : > { %3205 = vmatmul.mubr.msk.bf16.gmra.mrb[16].mxu1 %vm503_vm2, %v4498_v12 }
  0xc9   : > { %3208 = vmatprep.mubr.msk.bf16.mxu1 %vm503_vm2, %v4529_v2 }
  0xcb   : > { %3359 = vmatmul.mubr.msk.bf16.vlgmr.msra.gmra.mrb[0].mxu0 %vm503_vm2, %v4136_v21  ;;  %v2135_v21 = vrot.slane %v306_v0, 1 }
  0xcc   : > { %3391 = vmatpush3.bf16.msra.mxu0 %v2355_v20  ;;  %3362 = vmatprep.mubr.msk.bf16.mxu0 %vm503_vm2, %v4145_v28 }
  0xd0   : > { %3209 = vmatmul.mubr.msk.bf16.gmra.mrb[20].mxu1 %vm503_vm2, %v4533_v25 }
  0xd1   : > { %3212 = vmatprep.mubr.msk.bf16.mxu1 %vm503_vm2, %v4559_v22 }
  0xd3   : > { %3363 = vmatmul.mubr.msk.bf16.gmra.mrb[4].mxu0 %vm503_vm2, %v4174_v57 }
  0xd4   : > { %3366 = vmatprep.mubr.msk.bf16.mxu0 %vm503_vm2, %v4208_v10  ;;  %v5011_v10 = vld [vmem:[#allocation8_spill] sm:$0xff] }
  0xd8   : > { %3213 = vmatmul.mubr.msk.bf16.gmra.mrb[24].mxu1 %vm503_vm2, %v4567_v45 }
  0xd9   : > { %3216 = vmatprep.mubr.msk.bf16.mxu1 %vm503_vm2, %v4593_v42 }
  0xdb   : > { %3367 = vmatmul.mubr.msk.bf16.gmra.mrb[8].mxu0 %vm503_vm2, %v4228_v60 }
  0xdc   : > { %3370 = vmatprep.mubr.msk.bf16.mxu0 %vm503_vm2, %v4271_v16 }
  0xe0   : > { %3217 = vmatmul.mubr.msk.bf16.gmra.mrb[28].mxu1 %vm503_vm2, %v4597_v44 }
  0xe1   : > { %3222 = vmatprep.mubr.msk.bf16.mxu1 %vm503_vm2, %v4017_v8  ;;  %v5013_v8 = vld [vmem:[#allocation10_spill] sm:$0xff] }
  0xe3   : > { %3371 = vmatmul.mubr.msk.bf16.gmra.mrb[12].mxu0 %vm503_vm2, %v4306_v43 }
  0xe4   : > { %3374 = vmatprep.mubr.msk.bf16.mxu0 %vm503_vm2, %v4312_v34 }
  0xe8   : > { %3223 = vmatmul.mubr.msk.bf16.vlgmr.msra.gmra.mrb[0].mxu1 %vm503_vm2, %v4027_v14  ;;  %v2132_v14 = vrot.slane %v304_v9, 1 }
  0xe9   : > { %3425 = vmatpush3.bf16.msra.mxu1 %v5011_v10  ;;  %3226 = vmatprep.mubr.msk.bf16.mxu1 %vm503_vm2, %v4050_v27  ;;  %v2133_v27 = vrot.slane %v305_v29, 1 }
  0xeb   : > { %3375 = vmatmul.mubr.msk.bf16.gmra.mrb[16].mxu0 %vm503_vm2, %v5012_v56 }
  0xec   : > { %3378 = vmatprep.mubr.msk.bf16.mxu0 %vm503_vm2, %v4383_v5 }
  0xf0   : > { %3227 = vmatmul.mubr.msk.bf16.gmra.mrb[4].mxu1 %vm503_vm2, %v4062_v35  ;;  %v2134_v35 = vsel %vm372_vm1, %v2132_v14, %v2133_v27 }
  0xf1   : > { %3230 = vmatprep.mubr.msk.bf16.mxu1 %vm503_vm2, %v4090_v49  ;;  %v2136_v49 = vsel %vm372_vm1, %v2133_v27, %v2135_v21 }
  0xf3   : > { %3379 = vmatmul.mubr.msk.bf16.gmra.mrb[20].mxu0 %vm503_vm2, %v4431_v3 }
  0xf4   : > { %3382 = vmatprep.mubr.msk.bf16.mxu0 %vm503_vm2, %v5013_v8 }
  0xf8   : > { %3231 = vmatmul.mubr.msk.bf16.gmra.mrb[8].mxu1 %vm503_vm2, %v4100_v55  ;;  %v2141_v55 = vpack.c.bf16 %v2136_v49, %v2134_v35 }
  0xf9   : > { %3234 = vmatprep.mubr.msk.bf16.mxu1 %vm503_vm2, %v4134_v19 }
  0xfb   : > { %3383 = vmatmul.mubr.msk.bf16.gmra.mrb[24].mxu0 %vm503_vm2, %v4476_v58 }
  0xfc   : > { %3386 = vmatprep.mubr.msk.bf16.mxu0 %vm503_vm2, %v4607_v53 }
 0x100   : > { %3235 = vmatmul.mubr.msk.bf16.gmra.mrb[12].mxu1 %vm503_vm2, %v4170_v51 }
 0x101   : > { %3238 = vmatprep.mubr.msk.bf16.mxu1 %vm503_vm2, %v4195_v30 }
 0x103   : > { %3387 = vmatmul.mubr.msk.bf16.gmra.mrb[28].mxu0 %vm503_vm2, %v2141_v55 }
 0x104   : > { %3392 = vmatprep.mubr.msk.bf16.mxu0 %vm503_vm2, %v4308_v37 }
 0x108   : > { %3239 = vmatmul.mubr.msk.bf16.gmra.mrb[16].mxu1 %vm503_vm2, %v4213_v50 }
 0x109   : > { %3242 = vmatprep.mubr.msk.bf16.mxu1 %vm503_vm2, %v4251_v31 }
 0x10b   : > { %3393 = vmatmul.mubr.msk.bf16.vlgmr.msra.gmra.mrb[0].mxu0 %vm503_vm2, %v4356_v62 }
 0x10c   : > { %3396 = vmatprep.mubr.msk.bf16.mxu0 %vm503_vm2, %v4387_v33 }
 0x110   : > { %3243 = vmatmul.mubr.msk.bf16.gmra.mrb[20].mxu1 %vm503_vm2, %v4269_v15 }
 0x111   : > { %3246 = vmatprep.mubr.msk.bf16.mxu1 %vm503_vm2, %v4320_v11 }
 0x113   : > { %3397 = vmatmul.mubr.msk.bf16.gmra.mrb[4].mxu0 %vm503_vm2, %v4403_v23 }
 0x114   : > { %3400 = vmatprep.mubr.msk.bf16.mxu0 %vm503_vm2, %v4448_v17 }
 0x118   : > { %3247 = vmatmul.mubr.msk.bf16.gmra.mrb[24].mxu1 %vm503_vm2, %v4339_v38 }
 0x119   : > { %3250 = vmatprep.mubr.msk.bf16.mxu1 %vm503_vm2, %v4396_v52 }
 0x11b   : > { %3401 = vmatmul.mubr.msk.bf16.gmra.mrb[8].mxu0 %vm503_vm2, %v4450_v39 }
 0x11c   : > { %3404 = vmatprep.mubr.msk.bf16.mxu0 %vm503_vm2, %v4489_v7 }
 0x120   : > { %3251 = vmatmul.mubr.msk.bf16.gmra.mrb[28].mxu1 %vm503_vm2, %v4578_v46 }
 0x121   : > { %3272 = vmatprep.mubr.msk.bf16.mxu1 %vm503_vm2, %v4306_v43 }
 0x123   : > { %3405 = vmatmul.mubr.msk.bf16.gmra.mrb[12].mxu0 %vm503_vm2, %v4498_v12 }
 0x124   : > { %3408 = vmatprep.mubr.msk.bf16.mxu0 %vm503_vm2, %v4529_v2 }
 0x128   : > { %3273 = vmatmul.mubr.msk.bf16.vlgmr.msra.gmra.mrb[16].mxu1 %vm503_vm2, %v4312_v34 }
 0x129   : > { %3276 = vmatprep.mubr.msk.bf16.mxu1 %vm503_vm2, %v5012_v56 }
 0x12b   : > { %3409 = vmatmul.mubr.msk.bf16.gmra.mrb[16].mxu0 %vm503_vm2, %v4533_v25 }
 0x12c   : > { %3412 = vmatprep.mubr.msk.bf16.mxu0 %vm503_vm2, %v4559_v22 }
 0x130   : > { %3277 = vmatmul.mubr.msk.bf16.gmra.mrb[20].mxu1 %vm503_vm2, %v4383_v5 }
 0x131   : > { %3280 = vmatprep.mubr.msk.bf16.mxu1 %vm503_vm2, %v4431_v3 }
 0x133   : > { %3413 = vmatmul.mubr.msk.bf16.gmra.mrb[20].mxu0 %vm503_vm2, %v4567_v45 }
 0x134   : > { %3416 = vmatprep.mubr.msk.bf16.mxu0 %vm503_vm2, %v4593_v42 }
 0x138   : > { %3281 = vmatmul.mubr.msk.bf16.gmra.mrb[24].mxu1 %vm503_vm2, %v5013_v8 }
 0x139   : > { %3284 = vmatprep.mubr.msk.bf16.mxu1 %vm503_vm2, %v4476_v58 }
 0x13b   : > { %3417 = vmatmul.mubr.msk.bf16.gmra.mrb[24].mxu0 %vm503_vm2, %v4597_v44 }
 0x13c   : > { %3420 = vmatprep.mubr.msk.bf16.mxu0 %vm503_vm2, %v4611_v18 }
 0x140   : > { %3285 = vmatmul.mubr.msk.bf16.gmra.mrb[28].mxu1 %vm503_vm2, %v4607_v53 }
 0x143   : > { %3421 = vmatmul.mubr.msk.bf16.gmra.mrb[28].mxu0 %vm503_vm2, %v2350_v6 }
 0x1bb   : > { %v3224_v19 = vpop.f32.mrb[0].mxu1 }
 0x1bc   : > { %v1347_v28 = vpop.f32.mrb[1].mxu1 }
 0x1bd   : > { %v3225_v50 = vpop.f32.mrb[2].mxu1 }
 0x1be   : > { %v1350_v51 = vpop.f32.mrb[3].mxu1 }
 0x1c3   : > { %v3228_v57 = vpop.f32.mrb[4].mxu1 }
 0x1c4   : > { %v1363_v30 = vpop.f32.mrb[5].mxu1 }
 0x1c5   : > { %v3229_v16 = vpop.f32.mrb[6].mxu1 }
 0x1c6   : > { %v1366_v60 = vpop.f32.mrb[7].mxu1 }
 0x1cb   : > { %v3232_v31 = vpop.f32.mrb[8].mxu1 }
 0x1cc   : > { %v1379_v15 = vpop.f32.mrb[9].mxu1 }
 0x1cd   : > { %v3233_v11 = vpop.f32.mrb[10].mxu1 }
 0x1ce   : > { %v1382_v43 = vpop.f32.mrb[11].mxu1 }
 0x1d3   : > { %v3236_v37 = vpop.f32.mrb[12].mxu1 }
 0x1d4   : > { %v1395_v34 = vpop.f32.mrb[13].mxu1 }
 0x1d5   : > { %v4833_v38 = vpop.f32.mrb[14].mxu1 }
 0x1d6   : > { %v4835_v62 = vpop.f32.mrb[15].mxu1 }
 0x1de   : > { %v3394_v5 = vpop.f32.mrb[0].mxu0 }
 0x1df   : > { %v3426_v33 = vadd.f32 %v3394_v5, %v3224_v19  ;;  %v2391_v52 = vpop.f32.mrb[1].mxu0 }
 0x1e0   : > { %v3427_v23 = vadd.f32 %v2391_v52, %v1347_v28  ;;  %v3395_v3 = vpop.f32.mrb[2].mxu0 }
 0x1e1   : > { %v3428_v17 = vadd.f32 %v3395_v3, %v3225_v50  ;;  %v2394_v39 = vpop.f32.mrb[3].mxu0  ;;  %v2590_v25 = vmul.f32 %v3426_v33, %v3426_v33 }
 0x1e2   : > { %v3429_v58 = vadd.f32 %v2394_v39, %v1350_v51  ;;  %v2588_v7 = vmul.f32 %v3427_v23, %v3427_v23 }
 0x1e3   : > { %v2591_v36 = vmul.f32 %v3428_v17, %v3428_v17 }
 0x1e4   : > { %v2550_v12 = vadd.f32 %v3429_v58, %v3427_v23  ;;  %v2589_v2 = vmul.f32 %v3429_v58, %v3429_v58 }
 0x1e6   : > { %v2551_v22 = vadd.f32 %v3426_v33, %v2550_v12  ;;  %v2620_v45 = vadd.f32 %v2589_v2, %v2588_v7  ;;  %v3398_v46 = vpop.f32.mrb[4].mxu0 }
 0x1e7   : > { %v3430_v42 = vadd.f32 %v3398_v46, %v3228_v57  ;;  %v2407_v44 = vpop.f32.mrb[5].mxu0 }
 0x1e8   : > { %v2621_v63 = vadd.f32 %v2620_v45, %v2590_v25  ;;  %v3431_v13 = vadd.f32 %v2407_v44, %v1363_v30  ;;  %v2552_v40 = vadd.f32 %v3428_v17, %v2551_v22  ;;  %v3399_v48 = vpop.f32.mrb[6].mxu0 }
 0x1e9   : > { %v3432_v53 = vadd.f32 %v3399_v48, %v3229_v16  ;;  %v2410_v18 = vpop.f32.mrb[7].mxu0  ;;  %v2594_v24 = vmul.f32 %v3430_v42, %v3430_v42 }
 0x1ea   : > { %v2553_v41 = vadd.f32 %v3431_v13, %v2552_v40  ;;  %v2592_v59 = vmul.f32 %v3431_v13, %v3431_v13  ;;  %v2622_v47 = vadd.f32 %v2621_v63, %v2591_v36  ;;  %v3433_v1 = vadd.f32 %v2410_v18, %v1366_v60 }
 0x1eb   : > { %v2595_v6 = vmul.f32 %v3432_v53, %v3432_v53 }
 0x1ec   : > { %v2623_v9 = vadd.f32 %v2622_v47, %v2592_v59  ;;  %v2554_v29 = vadd.f32 %v3433_v1, %v2553_v41  ;;  %v2593_v54 = vmul.f32 %v3433_v1, %v3433_v1 }
 0x1ee   : > { %v2555_v32 = vadd.f32 %v3430_v42, %v2554_v29  ;;  %v2624_v0 = vadd.f32 %v2623_v9, %v2593_v54  ;;  %v3402_v26 = vpop.f32.mrb[8].mxu0 }
 0x1ef   : > { %v3434_v4 = vadd.f32 %v3402_v26, %v3232_v31  ;;  %v2423_v61 = vpop.f32.mrb[9].mxu0 }
 0x1f0   : > { %v2625_v20 = vadd.f32 %v2624_v0, %v2594_v24  ;;  %v3435_v10 = vadd.f32 %v2423_v61, %v1379_v15  ;;  %v2556_v56 = vadd.f32 %v3432_v53, %v2555_v32  ;;  %v3403_v8 = vpop.f32.mrb[10].mxu0 }
 0x1f1   : > { %v3436_v14 = vadd.f32 %v3403_v8, %v3233_v11  ;;  %v2426_v27 = vpop.f32.mrb[11].mxu0  ;;  %v2598_v51 = vmul.f32 %v3434_v4, %v3434_v4 }
 0x1f2   : > { %v2557_v21 = vadd.f32 %v3435_v10, %v2556_v56  ;;  %v2596_v35 = vmul.f32 %v3435_v10, %v3435_v10  ;;  %v2626_v49 = vadd.f32 %v2625_v20, %v2595_v6  ;;  %v3437_v55 = vadd.f32 %v2426_v27, %v1382_v43 }
 0x1f3   : > { %v2599_v5 = vmul.f32 %v3436_v14, %v3436_v14 }
 0x1f4   : > { %v2627_v19 = vadd.f32 %v2626_v49, %v2596_v35  ;;  %v2558_v28 = vadd.f32 %v3437_v55, %v2557_v21  ;;  %v2597_v50 = vmul.f32 %v3437_v55, %v3437_v55 }
 0x1f6   : > { %v2559_v57 = vadd.f32 %v3434_v4, %v2558_v28  ;;  %v2628_v30 = vadd.f32 %v2627_v19, %v2597_v50  ;;  %v3406_v16 = vpop.f32.mrb[12].mxu0 }
 0x1f7   : > { %v3438_v60 = vadd.f32 %v3406_v16, %v3236_v37  ;;  %v2439_v31 = vpop.f32.mrb[13].mxu0 }
 0x1f8   : > { %v2629_v33 = vadd.f32 %v2628_v30, %v2598_v51  ;;  %v3439_v15 = vadd.f32 %v2439_v31, %v1395_v34  ;;  %v2560_v52 = vadd.f32 %v3436_v14, %v2559_v57  ;;  %v3407_v23 = vpop.f32.mrb[14].mxu0 }
 0x1f9   : > { %v3440_v11 = vadd.f32 %v3407_v23, %v4833_v38  ;;  %v2442_v3 = vpop.f32.mrb[15].mxu0  ;;  %v2602_v46 = vmul.f32 %v3438_v60, %v3438_v60 }
 0x1fa   : > { %v2561_v17 = vadd.f32 %v3439_v15, %v2560_v52  ;;  %v2600_v39 = vmul.f32 %v3439_v15, %v3439_v15  ;;  %v2630_v43 = vadd.f32 %v2629_v33, %v2599_v5  ;;  %v3441_v58 = vadd.f32 %v2442_v3, %v4835_v62 }
 0x1fb   : > { %v3274_v7 = vpop.f32.mrb[16].mxu1  ;;  %v2603_v38 = vmul.f32 %v3440_v11, %v3440_v11 }
 0x1fc   : > { %v1623_v12 = vpop.f32.mrb[17].mxu1  ;;  %v2631_v2 = vadd.f32 %v2630_v43, %v2600_v39  ;;  %v2562_v25 = vadd.f32 %v3441_v58, %v2561_v17  ;;  %v2601_v22 = vmul.f32 %v3441_v58, %v3441_v58 }
 0x1fd   : > { %v3275_v37 = vpop.f32.mrb[18].mxu1 }
 0x1fe   : > { %v1626_v45 = vpop.f32.mrb[19].mxu1  ;;  %v2563_v42 = vadd.f32 %v3438_v60, %v2562_v25  ;;  %v2632_v34 = vadd.f32 %v2631_v2, %v2601_v22  ;;  %v3410_v44 = vpop.f32.mrb[16].mxu0 }
 0x1ff   : > { %v3442_v36 = vadd.f32 %v3410_v44, %v3274_v7  ;;  %v2455_v63 = vpop.f32.mrb[17].mxu0 }
 0x200   : > { %v2633_v13 = vadd.f32 %v2632_v34, %v2602_v46  ;;  %v3443_v40 = vadd.f32 %v2455_v63, %v1623_v12  ;;  %v2564_v48 = vadd.f32 %v3440_v11, %v2563_v42  ;;  %v3411_v53 = vpop.f32.mrb[18].mxu0 }
 0x201   : > { %v3444_v18 = vadd.f32 %v3411_v53, %v3275_v37  ;;  %v2458_v62 = vpop.f32.mrb[19].mxu0  ;;  %v2606_v4 = vmul.f32 %v3442_v36, %v3442_v36 }
 0x202   : > { %v2565_v41 = vadd.f32 %v3443_v40, %v2564_v48  ;;  %v2604_v59 = vmul.f32 %v3443_v40, %v3443_v40  ;;  %v2634_v47 = vadd.f32 %v2633_v13, %v2603_v38  ;;  %v3445_v1 = vadd.f32 %v2458_v62, %v1626_v45 }
 0x203   : > { %v3278_v9 = vpop.f32.mrb[20].mxu1  ;;  %v2607_v8 = vmul.f32 %v3444_v18, %v3444_v18 }
 0x204   : > { %v1639_v29 = vpop.f32.mrb[21].mxu1  ;;  %v2635_v54 = vadd.f32 %v2634_v47, %v2604_v59  ;;  %v2566_v24 = vadd.f32 %v3445_v1, %v2565_v41  ;;  %v2605_v32 = vmul.f32 %v3445_v1, %v3445_v1 }
 0x205   : > { %v3279_v0 = vpop.f32.mrb[22].mxu1 }
 0x206   : > { %v1642_v26 = vpop.f32.mrb[23].mxu1  ;;  %v2567_v61 = vadd.f32 %v3442_v36, %v2566_v24  ;;  %v2636_v6 = vadd.f32 %v2635_v54, %v2605_v32  ;;  %v3414_v20 = vpop.f32.mrb[20].mxu0 }
 0x207   : > { %v3446_v10 = vadd.f32 %v3414_v20, %v3278_v9  ;;  %v2471_v56 = vpop.f32.mrb[21].mxu0 }
 0x208   : > { %v2637_v14 = vadd.f32 %v2636_v6, %v2606_v4  ;;  %v3447_v27 = vadd.f32 %v2471_v56, %v1639_v29  ;;  %v2568_v21 = vadd.f32 %v3444_v18, %v2567_v61  ;;  %v3415_v35 = vpop.f32.mrb[22].mxu0 }
 0x209   : > { %v3448_v49 = vadd.f32 %v3415_v35, %v3279_v0  ;;  %v2474_v55 = vpop.f32.mrb[23].mxu0  ;;  %v2610_v15 = vmul.f32 %v3446_v10, %v3446_v10 }
 0x20a   : > { %v2569_v19 = vadd.f32 %v3447_v27, %v2568_v21  ;;  %v2608_v28 = vmul.f32 %v3447_v27, %v3447_v27  ;;  %v2638_v50 = vadd.f32 %v2637_v14, %v2607_v8  ;;  %v3449_v51 = vadd.f32 %v2474_v55, %v1642_v26 }
 0x20b   : > { %v3282_v57 = vpop.f32.mrb[24].mxu1  ;;  %v2611_v39 = vmul.f32 %v3448_v49, %v3448_v49 }
 0x20c   : > { %v1655_v30 = vpop.f32.mrb[25].mxu1  ;;  %v2639_v16 = vadd.f32 %v2638_v50, %v2608_v28  ;;  %v2570_v60 = vadd.f32 %v3449_v51, %v2569_v19  ;;  %v2609_v31 = vmul.f32 %v3449_v51, %v3449_v51 }
 0x20d   : > { %v3283_v5 = vpop.f32.mrb[26].mxu1 }
 0x20e   : > { %v1658_v33 = vpop.f32.mrb[27].mxu1  ;;  %v2571_v52 = vadd.f32 %v3446_v10, %v2570_v60  ;;  %v2640_v23 = vadd.f32 %v2639_v16, %v2609_v31  ;;  %v3418_v11 = vpop.f32.mrb[24].mxu0 }
 0x20f   : > { %v3450_v3 = vadd.f32 %v3418_v11, %v3282_v57  ;;  %v2487_v17 = vpop.f32.mrb[25].mxu0 }
 0x210   : > { %v2641_v43 = vadd.f32 %v2640_v23, %v2610_v15  ;;  %v3451_v58 = vadd.f32 %v2487_v17, %v1655_v30  ;;  %v2572_v7 = vadd.f32 %v3448_v49, %v2571_v52  ;;  %v3419_v12 = vpop.f32.mrb[26].mxu0 }
 0x211   : > { %v3452_v2 = vadd.f32 %v3419_v12, %v3283_v5  ;;  %v2490_v25 = vpop.f32.mrb[27].mxu0  ;;  %v2614_v40 = vmul.f32 %v3450_v3, %v3450_v3 }
 0x212   : > { %v2573_v22 = vadd.f32 %v3451_v58, %v2572_v7  ;;  %v2612_v37 = vmul.f32 %v3451_v58, %v3451_v58  ;;  %v2642_v45 = vadd.f32 %v2641_v43, %v2611_v39  ;;  %v3453_v46 = vadd.f32 %v2490_v25, %v1658_v33 }
 0x213   : > { %v3286_v42 = vpop.f32.mrb[28].mxu1  ;;  %v2615_v59 = vmul.f32 %v3452_v2, %v3452_v2 }
 0x214   : > { %v1671_v34 = vpop.f32.mrb[29].mxu1  ;;  %v2643_v44 = vadd.f32 %v2642_v45, %v2612_v37  ;;  %v2574_v36 = vadd.f32 %v3453_v46, %v2573_v22  ;;  %v2613_v63 = vmul.f32 %v3453_v46, %v3453_v46 }
 0x215   : > { %v3287_v38 = vpop.f32.mrb[30].mxu1 }
 0x216   : > { %v1674_v13 = vpop.f32.mrb[31].mxu1  ;;  %v2575_v48 = vadd.f32 %v3450_v3, %v2574_v36  ;;  %v2644_v53 = vadd.f32 %v2643_v44, %v2613_v63  ;;  %v3422_v18 = vpop.f32.mrb[28].mxu0 }
 0x217   : > { %v3454_v62 = vadd.f32 %v3422_v18, %v3286_v42  ;;  %v2503_v41 = vpop.f32.mrb[29].mxu0 }
 0x218   : > { %v2645_v47 = vadd.f32 %v2644_v53, %v2614_v40  ;;  %v3455_v1 = vadd.f32 %v2503_v41, %v1671_v34  ;;  %v2576_v9 = vadd.f32 %v3452_v2, %v2575_v48  ;;  %v3423_v29 = vpop.f32.mrb[30].mxu0 }
 0x219   : > { %v3456_v54 = vadd.f32 %v3423_v29, %v3287_v38  ;;  %v2506_v24 = vpop.f32.mrb[31].mxu0  ;;  %v2618_v10 = vmul.f32 %v3454_v62, %v3454_v62 }
 0x21a   : > { %v2577_v32 = vadd.f32 %v3455_v1, %v2576_v9  ;;  %v2616_v0 = vmul.f32 %v3455_v1, %v3455_v1  ;;  %v2646_v26 = vadd.f32 %v2645_v47, %v2615_v59  ;;  %v3457_v4 = vadd.f32 %v2506_v24, %v1674_v13 }
 0x21b   : > { %v2619_v14 = vmul.f32 %v3456_v54, %v3456_v54 }
 0x21c   : > { %v2647_v61 = vadd.f32 %v2646_v26, %v2616_v0  ;;  %v2578_v6 = vadd.f32 %v3457_v4, %v2577_v32  ;;  %v2617_v20 = vmul.f32 %v3457_v4, %v3457_v4 }
 0x21e   : > { %v2579_v56 = vadd.f32 %v3454_v62, %v2578_v6  ;;  %v2648_v8 = vadd.f32 %v2647_v61, %v2617_v20 }
 0x220   : > { %v2580_v27 = vadd.f32 %v3456_v54, %v2579_v56  ;;  %v2649_v21 = vadd.f32 %v2648_v8, %v2618_v10 }
 0x222   : > { %v2581_v35 = vrot.slane %v2580_v27, 4  ;;  %v2650_v49 = vadd.f32 %v2649_v21, %v2619_v14 }
 0x224   : > { %v2582_v55 = vadd.f32 %v2581_v35, %v2580_v27  ;;  %v2651_v19 = vrot.slane %v2650_v49, 4 }
 0x226   : > { %v2583_v28 = vrot.slane %v2582_v55, 2  ;;  %v2652_v50 = vadd.f32 %v2651_v19, %v2650_v49 }
 0x228   : > { %v2584_v51 = vadd.f32 %v2583_v28, %v2582_v55  ;;  %v2653_v57 = vrot.slane %v2652_v50, 2 }
 0x22a   : > { %v2585_v30 = vrot.slane %v2584_v51, 1  ;;  %v2654_v16 = vadd.f32 %v2653_v57, %v2652_v50 }
 0x22c   : > { %v2586_v60 = vadd.f32 %v2585_v30, %v2584_v51  ;;  %v2655_v31 = vrot.slane %v2654_v16, 1 }
 0x22e   : > { %2587 = vst [vmem:[%s182_s7] sm:$0x1] %v2586_v60  ;;  %v2656_v5 = vadd.f32 %v2655_v31, %v2654_v16 }
 0x22f   : > { %3802 = shalt.err (!%p3799_p5)
}
 0x230   : > { %s3803_s4 = scalar_lea.hbm %s4850_s19, 16  ;;  %s3807_s11 = scalar_lea.hbm %s4931_s2, 32 }
 0x231   : > { %p3804_p6 = scmp.ne.s32.totalorder %s4850_s19, %s3803_s4  ;;  %p3808_p10 = scmp.lt.u32.totalorder %s4850_s19, %s4931_s2 }
 0x232   : > { %p3809_p11 = scmp.lt.u32.totalorder %s3807_s11, %s3803_s4  ;;  %p3811_p13 = scmp.lt.u32.totalorder %s3803_s4, %s4850_s19 }
 0x233   : > { %p3805_p7 = pnand %p3804_p6, %p3963_p4 }
 0x234   : > { %p3810_p12 = por %p3809_p11, %p3808_p10 }
 0x235   : > { %p3806_p9 = pneg %p3805_p7 }
 0x236   : > { %p3812_p0 = por %p3811_p13, %p3810_p12 }
 0x238   : > { %p3813_p1 = pnand %p3812_p0, %p3806_p9 }
 0x23a   : > { %3816 = shalt.err (!%p3813_p1)
}
 0x23b   : > { %3693 = dma.vmem_to_hbm [thread:$0]  (%p3963_p4), %s4852_s8, 16, %s4850_s19, %s2659_s26   ;;  %2657 = vst [vmem:[%s188_s9] sm:$0x1] %v2656_v5 }
 0x23c   : > { %s2663_s21 = scalar_lea.sflag [#allocation5], %s4840_s5  ;;  %s3817_s27 = scalar_lea.vmem %s4859_s10, 16 }
 0x23d   : > { %p3818_p2 = scmp.ne.s32.totalorder %s4859_s10, %s3817_s27  ;;  %s3902_s28 = smov [#allocation4]  }
 0x23e   : > { %s3821_s29 = sshll.u32 %s3902_s28, 4  ;;  %s3822_s29 = int_to_ptr.vmem [resolvable:$false] %s3821_s29 }
 0x23f   : > { %p3819_p3 = pnand %p3818_p2, %p3963_p4  ;;  %s3823_s30 = scalar_lea.vmem %s3822_s29, 32 }
 0x240   : > { %p3824_p6 = scmp.lt.s32.totalorder %s4859_s10, %s3822_s29  ;;  %p3825_p7 = scmp.lt.s32.totalorder %s3823_s30, %s3817_s27 }
 0x241   : > { %p3820_p5 = pneg %p3819_p3 }
 0x242   : > { %p3826_p9 = por %p3825_p7, %p3824_p6 }
 0x244   : > { %p3827_p10 = pnand %p3826_p9, %p3820_p5 }
 0x246   : > { %3830 = shalt.err (!%p3827_p10)
}
 0x247   : > { %s3831_s5 = scalar_lea.hbm %s4857_s23, 16  ;;  %s3835_s19 = scalar_lea.hbm %s4932_s3, 32 }
 0x248   : > { %p3832_p11 = scmp.ne.s32.totalorder %s4857_s23, %s3831_s5  ;;  %p3836_p0 = scmp.lt.u32.totalorder %s4857_s23, %s4932_s3 }
 0x249   : > { %p3837_p1 = scmp.lt.u32.totalorder %s3835_s19, %s3831_s5  ;;  %p3839_p3 = scmp.lt.u32.totalorder %s3831_s5, %s4857_s23 }
 0x24a   : > { %p3833_p12 = pnand %p3832_p11, %p3963_p4 }
 0x24b   : > { %p3838_p2 = por %p3837_p1, %p3836_p0 }
 0x24c   : > { %p3834_p13 = pneg %p3833_p12 }
 0x24d   : > { %p3840_p5 = por %p3839_p3, %p3838_p2 }
 0x24f   : > { %p3841_p6 = pnand %p3840_p5, %p3834_p13 }
 0x251   : > { %3844 = shalt.err (!%p3841_p6)
}
 0x252   : > { %3694 = dma.vmem_to_hbm [thread:$0]  (%p3963_p4), %s4859_s10, 16, %s4857_s23, %s2663_s21  }
 0x253 PF: > { %p3704_p7 = scmp.ge.s32.totalorder %s3899_s17, 2  ;;  %s2702_s6 = sand.u32 1, %s3879_s12  }
 0x254   : > { %s2703_s7 = scalar_lea.sflag [#allocation3], %s2702_s6 }
 0x255   : > { %p3698_p9 = pnand %p3704_p7, %p3970_p8 }
 0x257   : > { %3870 = dma.done.wait (!%p3698_p9), %s2703_s7, 16  }
 0x258   : > { %3872 = vsyncadd (!%p3698_p9), %s2703_s7, 4294967280  ;;  %s2711_s11 = scalar_lea.sflag [#allocation5], %s2702_s6 }
 0x259   : > { %3874 = dma.done.wait (!%p3698_p9), %s2711_s11, 16  }
 0x25a   : > { %3876 = vsyncadd (!%p3698_p9), %s2711_s11, 4294967280  ;;  %s20_s17 = sadd.s32 1, %s3899_s17   ;;  %s5014_s12 = smov %s3883_s13 }
 0x25b   : > { %p17_p10 = scmp.ge.s32.totalorder %s20_s17, 4   ;;  %s5015_s13 = smov %s3887_s14 }
 0x25c   : > { %s5016_s14 = smov %s3976_s25  ;;  %s5017_s15 = smov %s3895_s16 }
 0x25d   : > { %s5018_s16 = smov %s5020_s20  ;;  %19 = sbr.rel (!%p17_p10) target bundleno = 6 (0x6), region = 89 }
 0x264   :  { %2715 = vsyncpa [#allocation3], 1 }
 0x265   :  { %2717 = vsyncpa [#allocation3 + $0x1], 1 }
 0x266   :  { %2718 = vsyncpa [#allocation5], 1 }
 0x267   :  { %2720 = vsyncpa [#allocation5 + $0x1], 1 }

</bundles_post_ra>
